<compile_context>
chip_gen: v6e
topology: v6e:2x2x1
jax: 0.10.0
libtpu: 0.0.40
codegen_flags: <defaults>
</compile_context>

<pallas_src>
import functools

import jax
import jax.numpy as jnp
from jax.experimental import pallas as pl
from jax.experimental.pallas import tpu as pltpu


# ------------------------------ in-kernel helpers ------------------------------

def _silu(v):
    # x * sigmoid(x); divide goes to the EUP approx-reciprocal slot.
    return v * pl.reciprocal(1.0 + jnp.exp(-v), approx=True)


def _softplus(v):
    # matches torch.nn.functional.softplus (threshold=20); exp computed once.
    ev = jnp.exp(jnp.minimum(v, 20.0))
    return jnp.where(v > 20.0, v, jnp.log(1.0 + ev))


# ---------------------------------- kernel ----------------------------------

def _mamba_forward_kernel(
    B, L, n_layers,
    x_ref, pool_ref, r_ref, tile_ref,
    w_emb, b_emb,
    w_in, b_in,
    conv_w, bias_d,
    w_proj, b_proj,
    w_dt, a_exp, w_out,
    gb, w_fc, b_fc,
    o_ref,
    da_s, dbu_s, cm_s, hs_s,
):
    f32 = jnp.float32
    D = w_emb.shape[1]
    N = w_dt.shape[1]
    K = conv_w.shape[1]
    ND = N * D
    LB = L * B

    # causal-conv masks, shared across layers (rows are l-major: r = l*B + b)
    row = jax.lax.broadcasted_iota(jnp.int32, (LB, 1), 0)
    shift_mask = [None] + [(row >= s * B).astype(f32) for s in range(1, K)]

    # ---- embedding ----
    h = jnp.dot(x_ref[...], w_emb[...], preferred_element_type=f32) + b_emb[...]

    # ---- Mamba blocks (statically unrolled over layers) ----
    for li in range(n_layers):
        bd = bias_d[li]                        # (3, D): [conv_b ; b_dt ; b_out]

        # fused in-projection (x | z)
        xz = jnp.dot(h, w_in[li], preferred_element_type=f32) + b_in[li]
        xc = xz[:, :D]
        z = xz[:, D:]

        # causal depthwise conv1d: sublane rolls (XLU) + causal masks, no MXU
        cw = conv_w[li]                        # (K, D)
        conv = xc * cw[K - 1:K, :]
        for k in range(K - 1):
            s = K - 1 - k
            conv = conv + (pltpu.roll(xc, s * B, 0) * shift_mask[s]) * cw[k:k + 1, :]
        xs = _silu(conv + bd[0:1, :])          # (L*B, D)

        # fused x-projection: [B_exp(N*D) | C_exp(N*D) | dt_x(N)] (aligned lane slices)
        proj = jnp.dot(xs, w_proj[li], preferred_element_type=f32) + b_proj[li]
        cm_s[...] = proj[:, ND:2 * ND]         # park C in VMEM until after the scan
        bm_exp = proj[:, :ND]
        dt_in = proj[:, 2 * ND:2 * ND + N]

        dt = _softplus(
            jnp.dot(dt_in, w_dt[li], preferred_element_type=f32) + bd[1:2, :])

        # vectorized pre-scan tensors (state-dim expansion done on the MXU):
        #   da [r, n*D+d] = exp(dt[r,d] * -exp(A[d,n]))
        #   dbu[r, n*D+d] = dt[r,d] * xs[r,d] * Bm[r,n]
        da_s[...] = jnp.exp(jnp.dot(dt, a_exp[li], preferred_element_type=f32))
        dbu_s[...] = (jnp.dot(dt * xs, tile_ref[...], preferred_element_type=f32)
                      * bm_exp)

        # selective scan: L serial steps of one FMA on a (B, N*D) tile; all
        # batches advance together, state stays in vregs, operands sliced from VMEM.
        hst = jnp.zeros((B, ND), f32)
        for l in range(L):
            sl = pl.ds(l * B, B)
            hst = da_s[sl, :] * hst + dbu_s[sl, :]
            hs_s[sl, :] = hst
        # TODO(synk): for L >> 16 switch to a chunked scan instead of a full unroll.

        # deferred C-contraction: one elementwise pass + one MXU matmul
        y = jnp.dot(hs_s[...] * cm_s[...], r_ref[...], preferred_element_type=f32)

        y = y * _silu(z)
        h = jnp.dot(y, w_out[li], preferred_element_type=f32) + bd[2:3, :]
        # TODO(synk): the module's self.D parameter is never used in forward(); omitted.

    # ---- LayerNorm + mean over sequence (pooling matmul) + fc head ----
    mu = jnp.mean(h, axis=1, keepdims=True)
    var = jnp.mean((h - mu) ** 2, axis=1, keepdims=True)
    gbv = gb[...]
    hn = (h - mu) * jax.lax.rsqrt(var + 1e-5) * gbv[0:1, :] + gbv[1:2, :]
    pooled = jnp.dot(pool_ref[...], hn, preferred_element_type=f32)      # (B, D)
    o_ref[...] = (
        jnp.dot(pooled, w_fc[...], preferred_element_type=f32) + b_fc[...])


# --------------------------------- wrapper ---------------------------------

def mamba_forward_pallas(x, params):
    B, L, F = x.shape
    st = params['stacked']
    n_layers = st['w_in'].shape[0]
    D = params['w_emb'].shape[1]
    N = st['w_dt'].shape[1]
    C = params['w_fc'].shape[1]

    # l-major token layout (row = l*B + b): the scan advances every batch per step.
    x_lm = x.transpose(1, 0, 2).reshape(L * B, F).astype(jnp.float32)
    # mean-over-sequence as a matmul: pool[b, l*B + b] = 1/L
    pool_mat = jnp.tile(jnp.eye(B, dtype=jnp.float32), (1, L)) / float(L)

    kernel = functools.partial(_mamba_forward_kernel, B, L, n_layers)

    inputs = (
        x_lm, pool_mat, st['r_mat'], st['tile_mat'],
        params['w_emb'], params['b_emb'].reshape(1, D),
        st['w_in'], st['b_in'],
        st['conv_w'], st['bias_d'],
        st['w_proj'], st['b_proj'],
        st['w_dt'], st['a_exp'], st['w_out'],
        jnp.stack([params['gamma'], params['beta']], axis=0),
        params['w_fc'], params['b_fc'].reshape(1, C),
    )
    vmem_spec = pl.BlockSpec(memory_space=pltpu.MemorySpace.VMEM)
    return pl.pallas_call(
        kernel,
        out_shape=jax.ShapeDtypeStruct((B, C), jnp.float32),
        in_specs=[vmem_spec] * len(inputs),
        out_specs=vmem_spec,
        scratch_shapes=[pltpu.VMEM((L * B, N * D), jnp.float32) for _ in range(4)],
    )(*inputs)


# ------------------------ deterministic parameter init ------------------------

def init_mamba_params(key, num_features, num_classes, d_model=32,
                      d_state=16, d_conv=4, n_layers=2):
    keys = iter(jax.random.split(key, 8 + 20 * n_layers))

    def w(shape, s=0.1):
        return s * jax.random.normal(next(keys), shape, dtype=jnp.float32)

    params = {
        'w_emb': w((num_features, d_model)), 'b_emb': w((d_model,)),
        'gamma': jnp.ones((d_model,), jnp.float32),
        'beta': jnp.zeros((d_model,), jnp.float32),
        'w_fc': w((d_model, num_classes)), 'b_fc': w((num_classes,)),
        'layers': [],
    }
    A = jnp.tile(jnp.arange(1, d_state + 1, dtype=jnp.float32)[None, :], (d_model, 1))
    for _ in range(n_layers):
        lp = {
            'w_in_x': w((d_model, d_model)), 'b_in_x': w((d_model,)),
            'w_in_z': w((d_model, d_model)), 'b_in_z': w((d_model,)),
            'conv_w': w((d_conv, d_model)), 'conv_b': w((d_model,)),
            'w_dt_x': w((d_model, d_state)), 'b_dt_x': w((d_state,)),
            'w_B': w((d_model, d_state)), 'b_B': w((d_state,)),
            'w_C': w((d_model, d_state)), 'b_C': w((d_state,)),
            'w_dt': w((d_state, d_model)), 'b_dt': w((d_model,)),
            'A': A,
            # TODO(synk): self.D parameter is unused in the module's forward(); omitted.
            'w_out': w((d_model, d_model)), 'b_out': w((d_model,)),
        }
        params['layers'].append(lp)

    # ---- packed / precomputed tensors consumed by the single fused kernel ----
    D, N = d_model, d_state
    lyrs = params['layers']
    eye_d = jnp.eye(D, dtype=jnp.float32)
    tile_mat = jnp.tile(eye_d, (1, N))     # (D, N*D): lane-tiles a (.,D) row N times
    r_mat = jnp.tile(eye_d, (N, 1))        # (N*D, D): segmented sum over the N groups

    def stk(fn):
        return jnp.stack([fn(lp) for lp in lyrs], axis=0)

    params['stacked'] = {
        'w_in': stk(lambda lp: jnp.concatenate([lp['w_in_x'], lp['w_in_z']], axis=1)),
        'b_in': stk(lambda lp: jnp.concatenate(
            [lp['b_in_x'], lp['b_in_z']]).reshape(1, 2 * D)),
        'conv_w': stk(lambda lp: lp['conv_w']),
        'bias_d': stk(lambda lp: jnp.stack(
            [lp['conv_b'], lp['b_dt'], lp['b_out']], axis=0)),
        'w_proj': stk(lambda lp: jnp.concatenate(
            [jnp.repeat(lp['w_B'], D, axis=1),
             jnp.repeat(lp['w_C'], D, axis=1),
             lp['w_dt_x']], axis=1)),
        'b_proj': stk(lambda lp: jnp.concatenate(
            [jnp.repeat(lp['b_B'], D), jnp.repeat(lp['b_C'], D),
             lp['b_dt_x']]).reshape(1, 2 * N * D + N)),
        'w_dt': stk(lambda lp: lp['w_dt']),
        'a_exp': stk(lambda lp: tile_mat * (-jnp.exp(lp['A'])).T.reshape(1, N * D)),
        'w_out': stk(lambda lp: lp['w_out']),
        'tile_mat': tile_mat,
        'r_mat': r_mat,
    }
    return params


# ------------------------------ pure-JAX reference ------------------------------

def _sigmoid_exact(v):
    return 1.0 / (1.0 + jnp.exp(-v))


def _silu_ref(v):
    return v * _sigmoid_exact(v)


def _softplus_ref(v):
    return jnp.where(v > 20.0, v, jnp.log(1.0 + jnp.exp(jnp.minimum(v, 20.0))))


def ref_block(x, p):
    B, L, D = x.shape
    K = p['conv_w'].shape[0]
    xc = x @ p['w_in_x'] + p['b_in_x']
    z = x @ p['w_in_z'] + p['b_in_z']
    conv = jnp.zeros_like(xc)
    for k in range(K):
        shift = K - 1 - k
        shifted = jnp.pad(xc, ((0, 0), (shift, 0), (0, 0)))[:, :L, :]
        conv = conv + shifted * p['conv_w'][k][None, None, :]
    conv = conv + p['conv_b']
    xs = _silu_ref(conv)
    dt_in = xs @ p['w_dt_x'] + p['b_dt_x']
    Bm = xs @ p['w_B'] + p['b_B']
    Cm = xs @ p['w_C'] + p['b_C']
    dt = _softplus_ref(dt_in @ p['w_dt'] + p['b_dt'])
    A_neg = -jnp.exp(p['A'])
    dA = jnp.exp(jnp.einsum('bld,dn->bldn', dt, A_neg))
    dBu = jnp.einsum('bld,bln,bld->bldn', dt, Bm, xs)
    h = jnp.zeros((B, D, A_neg.shape[1]), jnp.float32)
    ys = []
    for i in range(L):
        h = dA[:, i] * h + dBu[:, i]
        ys.append(jnp.einsum('bdn,bn->bd', h, Cm[:, i]))
    y = jnp.stack(ys, axis=1)
    y = y * _silu_ref(z)
    return y @ p['w_out'] + p['b_out']


def ref_forward(x, params):
    h = x @ params['w_emb'] + params['b_emb']
    for lp in params['layers']:
        h = ref_block(h, lp)
    mu = jnp.mean(h, axis=-1, keepdims=True)
    var = jnp.mean((h - mu) ** 2, axis=-1, keepdims=True)
    hn = (h - mu) / jnp.sqrt(var + 1e-5) * params['gamma'] + params['beta']
    pooled = jnp.mean(hn, axis=1)
    return pooled @ params['w_fc'] + params['b_fc']


# ----------------------------------- main -----------------------------------

if __name__ == "__main__":
    key = jax.random.PRNGKey(0)
    pkey, xkey = jax.random.split(key)

    B, L, F, C = 2, 16, 8, 3      # batch, seq_len, num_features, num_classes
    D_MODEL = 32

    params = init_mamba_params(pkey, num_features=F, num_classes=C, d_model=D_MODEL)
    x = jax.random.normal(xkey, (B, L, F), dtype=jnp.float32)

    out = mamba_forward_pallas(x, params)
    out = jax.block_until_ready(out)

    assert out.shape == (B, C)
    assert bool(jnp.all(jnp.isfinite(out)))

    ref = ref_forward(x, params)
    max_diff = float(jnp.max(jnp.abs(out - ref)))
    assert max_diff < 5e-2, f"mismatch vs reference: max abs diff {max_diff}"

    print("KERNEL_OK")
</pallas_src>

<mosaic_0001>
module attributes {stable_mosaic.version = 11 : i64} {
  func.func @_mamba_forward_kernel(%arg0: memref<32x8xf32, #tpu.memory_space<vmem>>, %arg1: memref<2x32xf32, #tpu.memory_space<vmem>>, %arg2: memref<512x32xf32, #tpu.memory_space<vmem>>, %arg3: memref<32x512xf32, #tpu.memory_space<vmem>>, %arg4: memref<8x32xf32, #tpu.memory_space<vmem>>, %arg5: memref<1x32xf32, #tpu.memory_space<vmem>>, %arg6: memref<2x32x64xf32, #tpu.memory_space<vmem>>, %arg7: memref<2x1x64xf32, #tpu.memory_space<vmem>>, %arg8: memref<2x4x32xf32, #tpu.memory_space<vmem>>, %arg9: memref<2x3x32xf32, #tpu.memory_space<vmem>>, %arg10: memref<2x32x1040xf32, #tpu.memory_space<vmem>>, %arg11: memref<2x1x1040xf32, #tpu.memory_space<vmem>>, %arg12: memref<2x16x32xf32, #tpu.memory_space<vmem>>, %arg13: memref<2x32x512xf32, #tpu.memory_space<vmem>>, %arg14: memref<2x32x32xf32, #tpu.memory_space<vmem>>, %arg15: memref<2x32xf32, #tpu.memory_space<vmem>>, %arg16: memref<32x3xf32, #tpu.memory_space<vmem>>, %arg17: memref<1x3xf32, #tpu.memory_space<vmem>>, %arg18: memref<2x3xf32, #tpu.memory_space<vmem>>, %arg19: memref<32x512xf32, #tpu.memory_space<vmem>>, %arg20: memref<32x512xf32, #tpu.memory_space<vmem>>, %arg21: memref<32x512xf32, #tpu.memory_space<vmem>>, %arg22: memref<32x512xf32, #tpu.memory_space<vmem>>) attributes {dimension_semantics = [], scalar_prefetch = 0 : i64, scratch_operands = 4 : i64, tpu.core_type = #tpu.core_type<tc>} {
    %0 = tpu.iota {dimensions = array<i32: 0>} : vector<32x1xi32>
    %c2_i32 = arith.constant 2 : i32
    %1 = vector.broadcast %c2_i32 : i32 to vector<32x1xi32>
    %2 = arith.cmpi sge, %0, %1 : vector<32x1xi32>
    %3 = arith.extui %2 : vector<32x1xi1> to vector<32x1xi32>
    %4 = arith.sitofp %3 : vector<32x1xi32> to vector<32x1xf32>
    %c4_i32 = arith.constant 4 : i32
    %5 = vector.broadcast %c4_i32 : i32 to vector<32x1xi32>
    %6 = arith.cmpi sge, %0, %5 : vector<32x1xi32>
    %7 = arith.extui %6 : vector<32x1xi1> to vector<32x1xi32>
    %8 = arith.sitofp %7 : vector<32x1xi32> to vector<32x1xf32>
    %c6_i32 = arith.constant 6 : i32
    %9 = vector.broadcast %c6_i32 : i32 to vector<32x1xi32>
    %10 = arith.cmpi sge, %0, %9 : vector<32x1xi32>
    %11 = arith.extui %10 : vector<32x1xi1> to vector<32x1xi32>
    %12 = arith.sitofp %11 : vector<32x1xi32> to vector<32x1xf32>
    %c0 = arith.constant 0 : index
    %c0_0 = arith.constant 0 : index
    %13 = vector.load %arg0[%c0, %c0_0] : memref<32x8xf32, #tpu.memory_space<vmem>>, vector<32x8xf32>
    %c0_1 = arith.constant 0 : index
    %c0_2 = arith.constant 0 : index
    %14 = vector.load %arg4[%c0_1, %c0_2] : memref<8x32xf32, #tpu.memory_space<vmem>>, vector<8x32xf32>
    %cst = arith.constant dense<0.000000e+00> : vector<32x32xf32>
    %15 = tpu.matmul %13, %14, %cst {dimension_numbers = #tpu.dot_dimension_numbers<[1], [0], [0], [1], [0, 0, 1, 1], [], []>} : vector<32x8xf32>, vector<8x32xf32>, vector<32x32xf32> -> vector<32x32xf32>
    %c0_3 = arith.constant 0 : index
    %c0_4 = arith.constant 0 : index
    %16 = vector.load %arg5[%c0_3, %c0_4] : memref<1x32xf32, #tpu.memory_space<vmem>>, vector<1x32xf32>
    %17 = vector.broadcast %16 : vector<1x32xf32> to vector<32x32xf32>
    %18 = arith.addf %15, %17 : vector<32x32xf32>
    %c0_5 = arith.constant 0 : index
    %c0_6 = arith.constant 0 : index
    %c0_7 = arith.constant 0 : index
    %19 = vector.load %arg9[%c0_5, %c0_6, %c0_7] : memref<2x3x32xf32, #tpu.memory_space<vmem>>, vector<1x3x32xf32>
    %20 = vector.shape_cast %19 : vector<1x3x32xf32> to vector<3x32xf32>
    %c0_8 = arith.constant 0 : index
    %c0_9 = arith.constant 0 : index
    %c0_10 = arith.constant 0 : index
    %21 = vector.load %arg6[%c0_8, %c0_9, %c0_10] : memref<2x32x64xf32, #tpu.memory_space<vmem>>, vector<1x32x64xf32>
    %22 = vector.shape_cast %21 : vector<1x32x64xf32> to vector<32x64xf32>
    %cst_11 = arith.constant dense<0.000000e+00> : vector<32x64xf32>
    %23 = tpu.matmul %18, %22, %cst_11 {dimension_numbers = #tpu.dot_dimension_numbers<[1], [0], [0], [1], [0, 0, 1, 1], [], []>} : vector<32x32xf32>, vector<32x64xf32>, vector<32x64xf32> -> vector<32x64xf32>
    %c0_12 = arith.constant 0 : index
    %c0_13 = arith.constant 0 : index
    %c0_14 = arith.constant 0 : index
    %24 = vector.load %arg7[%c0_12, %c0_13, %c0_14] : memref<2x1x64xf32, #tpu.memory_space<vmem>>, vector<1x1x64xf32>
    %25 = vector.shape_cast %24 : vector<1x1x64xf32> to vector<1x64xf32>
    %26 = vector.broadcast %25 : vector<1x64xf32> to vector<32x64xf32>
    %27 = arith.addf %23, %26 : vector<32x64xf32>
    %28 = vector.extract_strided_slice %27 {offsets = [0, 0], sizes = [32, 32], strides = [1, 1]} : vector<32x64xf32> to vector<32x32xf32>
    %29 = vector.extract_strided_slice %27 {offsets = [0, 32], sizes = [32, 32], strides = [1, 1]} : vector<32x64xf32> to vector<32x32xf32>
    %c0_15 = arith.constant 0 : index
    %c0_16 = arith.constant 0 : index
    %c0_17 = arith.constant 0 : index
    %30 = vector.load %arg8[%c0_15, %c0_16, %c0_17] : memref<2x4x32xf32, #tpu.memory_space<vmem>>, vector<1x4x32xf32>
    %31 = vector.shape_cast %30 : vector<1x4x32xf32> to vector<4x32xf32>
    %32 = vector.extract_strided_slice %31 {offsets = [3, 0], sizes = [1, 32], strides = [1, 1]} : vector<4x32xf32> to vector<1x32xf32>
    %33 = vector.broadcast %32 : vector<1x32xf32> to vector<32x32xf32>
    %34 = arith.mulf %28, %33 : vector<32x32xf32>
    %c6_i32_18 = arith.constant 6 : i32
    %35 = tpu.dynamic_rotate %28 by %c6_i32_18 dim 0 : vector<32x32xf32>, i32 -> vector<32x32xf32>
    %36 = vector.broadcast %12 : vector<32x1xf32> to vector<32x32xf32>
    %37 = arith.mulf %35, %36 : vector<32x32xf32>
    %38 = vector.extract_strided_slice %31 {offsets = [0, 0], sizes = [1, 32], strides = [1, 1]} : vector<4x32xf32> to vector<1x32xf32>
    %39 = vector.broadcast %38 : vector<1x32xf32> to vector<32x32xf32>
    %40 = arith.mulf %37, %39 : vector<32x32xf32>
    %41 = arith.addf %34, %40 : vector<32x32xf32>
    %c4_i32_19 = arith.constant 4 : i32
    %42 = tpu.dynamic_rotate %28 by %c4_i32_19 dim 0 : vector<32x32xf32>, i32 -> vector<32x32xf32>
    %43 = vector.broadcast %8 : vector<32x1xf32> to vector<32x32xf32>
    %44 = arith.mulf %42, %43 : vector<32x32xf32>
    %45 = vector.extract_strided_slice %31 {offsets = [1, 0], sizes = [1, 32], strides = [1, 1]} : vector<4x32xf32> to vector<1x32xf32>
    %46 = vector.broadcast %45 : vector<1x32xf32> to vector<32x32xf32>
    %47 = arith.mulf %44, %46 : vector<32x32xf32>
    %48 = arith.addf %41, %47 : vector<32x32xf32>
    %c2_i32_20 = arith.constant 2 : i32
    %49 = tpu.dynamic_rotate %28 by %c2_i32_20 dim 0 : vector<32x32xf32>, i32 -> vector<32x32xf32>
    %50 = vector.broadcast %4 : vector<32x1xf32> to vector<32x32xf32>
    %51 = arith.mulf %49, %50 : vector<32x32xf32>
    %52 = vector.extract_strided_slice %31 {offsets = [2, 0], sizes = [1, 32], strides = [1, 1]} : vector<4x32xf32> to vector<1x32xf32>
    %53 = vector.broadcast %52 : vector<1x32xf32> to vector<32x32xf32>
    %54 = arith.mulf %51, %53 : vector<32x32xf32>
    %55 = arith.addf %48, %54 : vector<32x32xf32>
    %56 = vector.extract_strided_slice %20 {offsets = [0, 0], sizes = [1, 32], strides = [1, 1]} : vector<3x32xf32> to vector<1x32xf32>
    %57 = vector.broadcast %56 : vector<1x32xf32> to vector<32x32xf32>
    %58 = arith.addf %55, %57 : vector<32x32xf32>
    %cst_21 = arith.constant 0.000000e+00 : f32
    %59 = vector.broadcast %cst_21 : f32 to vector<32x32xf32>
    %60 = arith.subf %59, %58 : vector<32x32xf32>
    %61 = math.exp %60 : vector<32x32xf32>
    %cst_22 = arith.constant 1.000000e+00 : f32
    %62 = vector.broadcast %cst_22 : f32 to vector<32x32xf32>
    %63 = arith.addf %62, %61 : vector<32x32xf32>
    %64 = tpu.reciprocal %63 {approx = true} : vector<32x32xf32> -> vector<32x32xf32>
    %65 = arith.mulf %58, %64 : vector<32x32xf32>
    %c0_23 = arith.constant 0 : index
    %c0_24 = arith.constant 0 : index
    %c0_25 = arith.constant 0 : index
    %66 = vector.load %arg10[%c0_23, %c0_24, %c0_25] : memref<2x32x1040xf32, #tpu.memory_space<vmem>>, vector<1x32x1040xf32>
    %67 = vector.shape_cast %66 : vector<1x32x1040xf32> to vector<32x1040xf32>
    %cst_26 = arith.constant dense<0.000000e+00> : vector<32x1040xf32>
    %68 = tpu.matmul %65, %67, %cst_26 {dimension_numbers = #tpu.dot_dimension_numbers<[1], [0], [0], [1], [0, 0, 1, 1], [], []>} : vector<32x32xf32>, vector<32x1040xf32>, vector<32x1040xf32> -> vector<32x1040xf32>
    %c0_27 = arith.constant 0 : index
    %c0_28 = arith.constant 0 : index
    %c0_29 = arith.constant 0 : index
    %69 = vector.load %arg11[%c0_27, %c0_28, %c0_29] : memref<2x1x1040xf32, #tpu.memory_space<vmem>>, vector<1x1x1040xf32>
    %70 = vector.shape_cast %69 : vector<1x1x1040xf32> to vector<1x1040xf32>
    %71 = vector.broadcast %70 : vector<1x1040xf32> to vector<32x1040xf32>
    %72 = arith.addf %68, %71 : vector<32x1040xf32>
    %73 = vector.extract_strided_slice %72 {offsets = [0, 512], sizes = [32, 512], strides = [1, 1]} : vector<32x1040xf32> to vector<32x512xf32>
    %c0_30 = arith.constant 0 : index
    %c0_31 = arith.constant 0 : index
    %74 = vector.load %arg21[%c0_30, %c0_31] : memref<32x512xf32, #tpu.memory_space<vmem>>, vector<32x512xf32>
    tpu.vector_store %arg21[%c0_30, %c0_31], %73 {strides = array<i32>} : memref<32x512xf32, #tpu.memory_space<vmem>>, vector<32x512xf32>,
    %75 = vector.extract_strided_slice %72 {offsets = [0, 0], sizes = [32, 512], strides = [1, 1]} : vector<32x1040xf32> to vector<32x512xf32>
    %76 = vector.extract_strided_slice %72 {offsets = [0, 1024], sizes = [32, 16], strides = [1, 1]} : vector<32x1040xf32> to vector<32x16xf32>
    %c0_32 = arith.constant 0 : index
    %c0_33 = arith.constant 0 : index
    %c0_34 = arith.constant 0 : index
    %77 = vector.load %arg12[%c0_32, %c0_33, %c0_34] : memref<2x16x32xf32, #tpu.memory_space<vmem>>, vector<1x16x32xf32>
    %78 = vector.shape_cast %77 : vector<1x16x32xf32> to vector<16x32xf32>
    %cst_35 = arith.constant dense<0.000000e+00> : vector<32x32xf32>
    %79 = tpu.matmul %76, %78, %cst_35 {dimension_numbers = #tpu.dot_dimension_numbers<[1], [0], [0], [1], [0, 0, 1, 1], [], []>} : vector<32x16xf32>, vector<16x32xf32>, vector<32x32xf32> -> vector<32x32xf32>
    %80 = vector.extract_strided_slice %20 {offsets = [1, 0], sizes = [1, 32], strides = [1, 1]} : vector<3x32xf32> to vector<1x32xf32>
    %81 = vector.broadcast %80 : vector<1x32xf32> to vector<32x32xf32>
    %82 = arith.addf %79, %81 : vector<32x32xf32>
    %cst_36 = arith.constant 2.000000e+01 : f32
    %83 = vector.broadcast %cst_36 : f32 to vector<32x32xf32>
    %84 = arith.minimumf %82, %83 : vector<32x32xf32>
    %85 = math.exp %84 : vector<32x32xf32>
    %cst_37 = arith.constant 2.000000e+01 : f32
    %86 = vector.broadcast %cst_37 : f32 to vector<32x32xf32>
    %87 = arith.cmpf ogt, %82, %86 : vector<32x32xf32>
    %cst_38 = arith.constant 1.000000e+00 : f32
    %88 = vector.broadcast %cst_38 : f32 to vector<32x32xf32>
    %89 = arith.addf %88, %85 : vector<32x32xf32>
    %90 = math.log %89 : vector<32x32xf32>
    %91 = arith.select %87, %82, %90 : vector<32x32xi1>, vector<32x32xf32>
    %c0_39 = arith.constant 0 : index
    %c0_40 = arith.constant 0 : index
    %c0_41 = arith.constant 0 : index
    %92 = vector.load %arg13[%c0_39, %c0_40, %c0_41] : memref<2x32x512xf32, #tpu.memory_space<vmem>>, vector<1x32x512xf32>
    %93 = vector.shape_cast %92 : vector<1x32x512xf32> to vector<32x512xf32>
    %cst_42 = arith.constant dense<0.000000e+00> : vector<32x512xf32>
    %94 = tpu.matmul %91, %93, %cst_42 {dimension_numbers = #tpu.dot_dimension_numbers<[1], [0], [0], [1], [0, 0, 1, 1], [], []>} : vector<32x32xf32>, vector<32x512xf32>, vector<32x512xf32> -> vector<32x512xf32>
    %95 = math.exp %94 : vector<32x512xf32>
    %c0_43 = arith.constant 0 : index
    %c0_44 = arith.constant 0 : index
    %96 = vector.load %arg19[%c0_43, %c0_44] : memref<32x512xf32, #tpu.memory_space<vmem>>, vector<32x512xf32>
    tpu.vector_store %arg19[%c0_43, %c0_44], %95 {strides = array<i32>} : memref<32x512xf32, #tpu.memory_space<vmem>>, vector<32x512xf32>,
    %97 = arith.mulf %91, %65 : vector<32x32xf32>
    %c0_45 = arith.constant 0 : index
    %c0_46 = arith.constant 0 : index
    %98 = vector.load %arg3[%c0_45, %c0_46] : memref<32x512xf32, #tpu.memory_space<vmem>>, vector<32x512xf32>
    %cst_47 = arith.constant dense<0.000000e+00> : vector<32x512xf32>
    %99 = tpu.matmul %97, %98, %cst_47 {dimension_numbers = #tpu.dot_dimension_numbers<[1], [0], [0], [1], [0, 0, 1, 1], [], []>} : vector<32x32xf32>, vector<32x512xf32>, vector<32x512xf32> -> vector<32x512xf32>
    %100 = arith.mulf %99, %75 : vector<32x512xf32>
    %c0_48 = arith.constant 0 : index
    %c0_49 = arith.constant 0 : index
    %101 = vector.load %arg20[%c0_48, %c0_49] : memref<32x512xf32, #tpu.memory_space<vmem>>, vector<32x512xf32>
    tpu.vector_store %arg20[%c0_48, %c0_49], %100 {strides = array<i32>} : memref<32x512xf32, #tpu.memory_space<vmem>>, vector<32x512xf32>,
    %cst_50 = arith.constant 0.000000e+00 : f32
    %102 = vector.broadcast %cst_50 : f32 to vector<2x512xf32>
    %c0_51 = arith.constant 0 : index
    %c0_52 = arith.constant 0 : index
    %103 = vector.load %arg19[%c0_51, %c0_52] : memref<32x512xf32, #tpu.memory_space<vmem>>, vector<2x512xf32>
    %104 = arith.mulf %103, %102 : vector<2x512xf32>
    %c0_53 = arith.constant 0 : index
    %c0_54 = arith.constant 0 : index
    %105 = vector.load %arg20[%c0_53, %c0_54] : memref<32x512xf32, #tpu.memory_space<vmem>>, vector<2x512xf32>
    %106 = arith.addf %104, %105 : vector<2x512xf32>
    %c0_55 = arith.constant 0 : index
    %c0_56 = arith.constant 0 : index
    %107 = vector.load %arg22[%c0_55, %c0_56] : memref<32x512xf32, #tpu.memory_space<vmem>>, vector<2x512xf32>
    tpu.vector_store %arg22[%c0_55, %c0_56], %106 {strides = array<i32>} : memref<32x512xf32, #tpu.memory_space<vmem>>, vector<2x512xf32>,
    %c2 = arith.constant 2 : index
    %c0_57 = arith.constant 0 : index
    %108 = vector.load %arg19[%c2, %c0_57] : memref<32x512xf32, #tpu.memory_space<vmem>>, vector<2x512xf32>
    %109 = arith.mulf %108, %106 : vector<2x512xf32>
    %c2_58 = arith.constant 2 : index
    %c0_59 = arith.constant 0 : index
    %110 = vector.load %arg20[%c2_58, %c0_59] : memref<32x512xf32, #tpu.memory_space<vmem>>, vector<2x512xf32>
    %111 = arith.addf %109, %110 : vector<2x512xf32>
    %c2_60 = arith.constant 2 : index
    %c0_61 = arith.constant 0 : index
    %112 = vector.load %arg22[%c2_60, %c0_61] : memref<32x512xf32, #tpu.memory_space<vmem>>, vector<2x512xf32>
    tpu.vector_store %arg22[%c2_60, %c0_61], %111 {strides = array<i32>} : memref<32x512xf32, #tpu.memory_space<vmem>>, vector<2x512xf32>,
    %c4 = arith.constant 4 : index
    %c0_62 = arith.constant 0 : index
    %113 = vector.load %arg19[%c4, %c0_62] : memref<32x512xf32, #tpu.memory_space<vmem>>, vector<2x512xf32>
    %114 = arith.mulf %113, %111 : vector<2x512xf32>
    %c4_63 = arith.constant 4 : index
    %c0_64 = arith.constant 0 : index
    %115 = vector.load %arg20[%c4_63, %c0_64] : memref<32x512xf32, #tpu.memory_space<vmem>>, vector<2x512xf32>
    %116 = arith.addf %114, %115 : vector<2x512xf32>
    %c4_65 = arith.constant 4 : index
    %c0_66 = arith.constant 0 : index
    %117 = vector.load %arg22[%c4_65, %c0_66] : memref<32x512xf32, #tpu.memory_space<vmem>>, vector<2x512xf32>
    tpu.vector_store %arg22[%c4_65, %c0_66], %116 {strides = array<i32>} : memref<32x512xf32, #tpu.memory_space<vmem>>, vector<2x512xf32>,
    %c6 = arith.constant 6 : index
    %c0_67 = arith.constant 0 : index
    %118 = vector.load %arg19[%c6, %c0_67] : memref<32x512xf32, #tpu.memory_space<vmem>>, vector<2x512xf32>
    %119 = arith.mulf %118, %116 : vector<2x512xf32>
    %c6_68 = arith.constant 6 : index
    %c0_69 = arith.constant 0 : index
    %120 = vector.load %arg20[%c6_68, %c0_69] : memref<32x512xf32, #tpu.memory_space<vmem>>, vector<2x512xf32>
    %121 = arith.addf %119, %120 : vector<2x512xf32>
    %c6_70 = arith.constant 6 : index
    %c0_71 = arith.constant 0 : index
    %122 = vector.load %arg22[%c6_70, %c0_71] : memref<32x512xf32, #tpu.memory_space<vmem>>, vector<2x512xf32>
    tpu.vector_store %arg22[%c6_70, %c0_71], %121 {strides = array<i32>} : memref<32x512xf32, #tpu.memory_space<vmem>>, vector<2x512xf32>,
    %c8 = arith.constant 8 : index
    %c0_72 = arith.constant 0 : index
    %123 = vector.load %arg19[%c8, %c0_72] : memref<32x512xf32, #tpu.memory_space<vmem>>, vector<2x512xf32>
    %124 = arith.mulf %123, %121 : vector<2x512xf32>
    %c8_73 = arith.constant 8 : index
    %c0_74 = arith.constant 0 : index
    %125 = vector.load %arg20[%c8_73, %c0_74] : memref<32x512xf32, #tpu.memory_space<vmem>>, vector<2x512xf32>
    %126 = arith.addf %124, %125 : vector<2x512xf32>
    %c8_75 = arith.constant 8 : index
    %c0_76 = arith.constant 0 : index
    %127 = vector.load %arg22[%c8_75, %c0_76] : memref<32x512xf32, #tpu.memory_space<vmem>>, vector<2x512xf32>
    tpu.vector_store %arg22[%c8_75, %c0_76], %126 {strides = array<i32>} : memref<32x512xf32, #tpu.memory_space<vmem>>, vector<2x512xf32>,
    %c10 = arith.constant 10 : index
    %c0_77 = arith.constant 0 : index
    %128 = vector.load %arg19[%c10, %c0_77] : memref<32x512xf32, #tpu.memory_space<vmem>>, vector<2x512xf32>
    %129 = arith.mulf %128, %126 : vector<2x512xf32>
    %c10_78 = arith.constant 10 : index
    %c0_79 = arith.constant 0 : index
    %130 = vector.load %arg20[%c10_78, %c0_79] : memref<32x512xf32, #tpu.memory_space<vmem>>, vector<2x512xf32>
    %131 = arith.addf %129, %130 : vector<2x512xf32>
    %c10_80 = arith.constant 10 : index
    %c0_81 = arith.constant 0 : index
    %132 = vector.load %arg22[%c10_80, %c0_81] : memref<32x512xf32, #tpu.memory_space<vmem>>, vector<2x512xf32>
    tpu.vector_store %arg22[%c10_80, %c0_81], %131 {strides = array<i32>} : memref<32x512xf32, #tpu.memory_space<vmem>>, vector<2x512xf32>,
    %c12 = arith.constant 12 : index
    %c0_82 = arith.constant 0 : index
    %133 = vector.load %arg19[%c12, %c0_82] : memref<32x512xf32, #tpu.memory_space<vmem>>, vector<2x512xf32>
    %134 = arith.mulf %133, %131 : vector<2x512xf32>
    %c12_83 = arith.constant 12 : index
    %c0_84 = arith.constant 0 : index
    %135 = vector.load %arg20[%c12_83, %c0_84] : memref<32x512xf32, #tpu.memory_space<vmem>>, vector<2x512xf32>
    %136 = arith.addf %134, %135 : vector<2x512xf32>
    %c12_85 = arith.constant 12 : index
    %c0_86 = arith.constant 0 : index
    %137 = vector.load %arg22[%c12_85, %c0_86] : memref<32x512xf32, #tpu.memory_space<vmem>>, vector<2x512xf32>
    tpu.vector_store %arg22[%c12_85, %c0_86], %136 {strides = array<i32>} : memref<32x512xf32, #tpu.memory_space<vmem>>, vector<2x512xf32>,
    %c14 = arith.constant 14 : index
    %c0_87 = arith.constant 0 : index
    %138 = vector.load %arg19[%c14, %c0_87] : memref<32x512xf32, #tpu.memory_space<vmem>>, vector<2x512xf32>
    %139 = arith.mulf %138, %136 : vector<2x512xf32>
    %c14_88 = arith.constant 14 : index
    %c0_89 = arith.constant 0 : index
    %140 = vector.load %arg20[%c14_88, %c0_89] : memref<32x512xf32, #tpu.memory_space<vmem>>, vector<2x512xf32>
    %141 = arith.addf %139, %140 : vector<2x512xf32>
    %c14_90 = arith.constant 14 : index
    %c0_91 = arith.constant 0 : index
    %142 = vector.load %arg22[%c14_90, %c0_91] : memref<32x512xf32, #tpu.memory_space<vmem>>, vector<2x512xf32>
    tpu.vector_store %arg22[%c14_90, %c0_91], %141 {strides = array<i32>} : memref<32x512xf32, #tpu.memory_space<vmem>>, vector<2x512xf32>,
    %c16 = arith.constant 16 : index
    %c0_92 = arith.constant 0 : index
    %143 = vector.load %arg19[%c16, %c0_92] : memref<32x512xf32, #tpu.memory_space<vmem>>, vector<2x512xf32>
    %144 = arith.mulf %143, %141 : vector<2x512xf32>
    %c16_93 = arith.constant 16 : index
    %c0_94 = arith.constant 0 : index
    %145 = vector.load %arg20[%c16_93, %c0_94] : memref<32x512xf32, #tpu.memory_space<vmem>>, vector<2x512xf32>
    %146 = arith.addf %144, %145 : vector<2x512xf32>
    %c16_95 = arith.constant 16 : index
    %c0_96 = arith.constant 0 : index
    %147 = vector.load %arg22[%c16_95, %c0_96] : memref<32x512xf32, #tpu.memory_space<vmem>>, vector<2x512xf32>
    tpu.vector_store %arg22[%c16_95, %c0_96], %146 {strides = array<i32>} : memref<32x512xf32, #tpu.memory_space<vmem>>, vector<2x512xf32>,
    %c18 = arith.constant 18 : index
    %c0_97 = arith.constant 0 : index
    %148 = vector.load %arg19[%c18, %c0_97] : memref<32x512xf32, #tpu.memory_space<vmem>>, vector<2x512xf32>
    %149 = arith.mulf %148, %146 : vector<2x512xf32>
    %c18_98 = arith.constant 18 : index
    %c0_99 = arith.constant 0 : index
    %150 = vector.load %arg20[%c18_98, %c0_99] : memref<32x512xf32, #tpu.memory_space<vmem>>, vector<2x512xf32>
    %151 = arith.addf %149, %150 : vector<2x512xf32>
    %c18_100 = arith.constant 18 : index
    %c0_101 = arith.constant 0 : index
    %152 = vector.load %arg22[%c18_100, %c0_101] : memref<32x512xf32, #tpu.memory_space<vmem>>, vector<2x512xf32>
    tpu.vector_store %arg22[%c18_100, %c0_101], %151 {strides = array<i32>} : memref<32x512xf32, #tpu.memory_space<vmem>>, vector<2x512xf32>,
    %c20 = arith.constant 20 : index
    %c0_102 = arith.constant 0 : index
    %153 = vector.load %arg19[%c20, %c0_102] : memref<32x512xf32, #tpu.memory_space<vmem>>, vector<2x512xf32>
    %154 = arith.mulf %153, %151 : vector<2x512xf32>
    %c20_103 = arith.constant 20 : index
    %c0_104 = arith.constant 0 : index
    %155 = vector.load %arg20[%c20_103, %c0_104] : memref<32x512xf32, #tpu.memory_space<vmem>>, vector<2x512xf32>
    %156 = arith.addf %154, %155 : vector<2x512xf32>
    %c20_105 = arith.constant 20 : index
    %c0_106 = arith.constant 0 : index
    %157 = vector.load %arg22[%c20_105, %c0_106] : memref<32x512xf32, #tpu.memory_space<vmem>>, vector<2x512xf32>
    tpu.vector_store %arg22[%c20_105, %c0_106], %156 {strides = array<i32>} : memref<32x512xf32, #tpu.memory_space<vmem>>, vector<2x512xf32>,
    %c22 = arith.constant 22 : index
    %c0_107 = arith.constant 0 : index
    %158 = vector.load %arg19[%c22, %c0_107] : memref<32x512xf32, #tpu.memory_space<vmem>>, vector<2x512xf32>
    %159 = arith.mulf %158, %156 : vector<2x512xf32>
    %c22_108 = arith.constant 22 : index
    %c0_109 = arith.constant 0 : index
    %160 = vector.load %arg20[%c22_108, %c0_109] : memref<32x512xf32, #tpu.memory_space<vmem>>, vector<2x512xf32>
    %161 = arith.addf %159, %160 : vector<2x512xf32>
    %c22_110 = arith.constant 22 : index
    %c0_111 = arith.constant 0 : index
    %162 = vector.load %arg22[%c22_110, %c0_111] : memref<32x512xf32, #tpu.memory_space<vmem>>, vector<2x512xf32>
    tpu.vector_store %arg22[%c22_110, %c0_111], %161 {strides = array<i32>} : memref<32x512xf32, #tpu.memory_space<vmem>>, vector<2x512xf32>,
    %c24 = arith.constant 24 : index
    %c0_112 = arith.constant 0 : index
    %163 = vector.load %arg19[%c24, %c0_112] : memref<32x512xf32, #tpu.memory_space<vmem>>, vector<2x512xf32>
    %164 = arith.mulf %163, %161 : vector<2x512xf32>
    %c24_113 = arith.constant 24 : index
    %c0_114 = arith.constant 0 : index
    %165 = vector.load %arg20[%c24_113, %c0_114] : memref<32x512xf32, #tpu.memory_space<vmem>>, vector<2x512xf32>
    %166 = arith.addf %164, %165 : vector<2x512xf32>
    %c24_115 = arith.constant 24 : index
    %c0_116 = arith.constant 0 : index
    %167 = vector.load %arg22[%c24_115, %c0_116] : memref<32x512xf32, #tpu.memory_space<vmem>>, vector<2x512xf32>
    tpu.vector_store %arg22[%c24_115, %c0_116], %166 {strides = array<i32>} : memref<32x512xf32, #tpu.memory_space<vmem>>, vector<2x512xf32>,
    %c26 = arith.constant 26 : index
    %c0_117 = arith.constant 0 : index
    %168 = vector.load %arg19[%c26, %c0_117] : memref<32x512xf32, #tpu.memory_space<vmem>>, vector<2x512xf32>
    %169 = arith.mulf %168, %166 : vector<2x512xf32>
    %c26_118 = arith.constant 26 : index
    %c0_119 = arith.constant 0 : index
    %170 = vector.load %arg20[%c26_118, %c0_119] : memref<32x512xf32, #tpu.memory_space<vmem>>, vector<2x512xf32>
    %171 = arith.addf %169, %170 : vector<2x512xf32>
    %c26_120 = arith.constant 26 : index
    %c0_121 = arith.constant 0 : index
    %172 = vector.load %arg22[%c26_120, %c0_121] : memref<32x512xf32, #tpu.memory_space<vmem>>, vector<2x512xf32>
    tpu.vector_store %arg22[%c26_120, %c0_121], %171 {strides = array<i32>} : memref<32x512xf32, #tpu.memory_space<vmem>>, vector<2x512xf32>,
    %c28 = arith.constant 28 : index
    %c0_122 = arith.constant 0 : index
    %173 = vector.load %arg19[%c28, %c0_122] : memref<32x512xf32, #tpu.memory_space<vmem>>, vector<2x512xf32>
    %174 = arith.mulf %173, %171 : vector<2x512xf32>
    %c28_123 = arith.constant 28 : index
    %c0_124 = arith.constant 0 : index
    %175 = vector.load %arg20[%c28_123, %c0_124] : memref<32x512xf32, #tpu.memory_space<vmem>>, vector<2x512xf32>
    %176 = arith.addf %174, %175 : vector<2x512xf32>
    %c28_125 = arith.constant 28 : index
    %c0_126 = arith.constant 0 : index
    %177 = vector.load %arg22[%c28_125, %c0_126] : memref<32x512xf32, #tpu.memory_space<vmem>>, vector<2x512xf32>
    tpu.vector_store %arg22[%c28_125, %c0_126], %176 {strides = array<i32>} : memref<32x512xf32, #tpu.memory_space<vmem>>, vector<2x512xf32>,
    %c30 = arith.constant 30 : index
    %c0_127 = arith.constant 0 : index
    %178 = vector.load %arg19[%c30, %c0_127] : memref<32x512xf32, #tpu.memory_space<vmem>>, vector<2x512xf32>
    %179 = arith.mulf %178, %176 : vector<2x512xf32>
    %c30_128 = arith.constant 30 : index
    %c0_129 = arith.constant 0 : index
    %180 = vector.load %arg20[%c30_128, %c0_129] : memref<32x512xf32, #tpu.memory_space<vmem>>, vector<2x512xf32>
    %181 = arith.addf %179, %180 : vector<2x512xf32>
    %c30_130 = arith.constant 30 : index
    %c0_131 = arith.constant 0 : index
    %182 = vector.load %arg22[%c30_130, %c0_131] : memref<32x512xf32, #tpu.memory_space<vmem>>, vector<2x512xf32>
    tpu.vector_store %arg22[%c30_130, %c0_131], %181 {strides = array<i32>} : memref<32x512xf32, #tpu.memory_space<vmem>>, vector<2x512xf32>,
    %c0_132 = arith.constant 0 : index
    %c0_133 = arith.constant 0 : index
    %183 = vector.load %arg22[%c0_132, %c0_133] : memref<32x512xf32, #tpu.memory_space<vmem>>, vector<32x512xf32>
    %c0_134 = arith.constant 0 : index
    %c0_135 = arith.constant 0 : index
    %184 = vector.load %arg21[%c0_134, %c0_135] : memref<32x512xf32, #tpu.memory_space<vmem>>, vector<32x512xf32>
    %185 = arith.mulf %183, %184 : vector<32x512xf32>
    %c0_136 = arith.constant 0 : index
    %c0_137 = arith.constant 0 : index
    %186 = vector.load %arg2[%c0_136, %c0_137] : memref<512x32xf32, #tpu.memory_space<vmem>>, vector<512x32xf32>
    %cst_138 = arith.constant dense<0.000000e+00> : vector<32x32xf32>
    %187 = tpu.matmul %185, %186, %cst_138 {dimension_numbers = #tpu.dot_dimension_numbers<[1], [0], [0], [1], [0, 0, 1, 1], [], []>} : vector<32x512xf32>, vector<512x32xf32>, vector<32x32xf32> -> vector<32x32xf32>
    %cst_139 = arith.constant 0.000000e+00 : f32
    %188 = vector.broadcast %cst_139 : f32 to vector<32x32xf32>
    %189 = arith.subf %188, %29 : vector<32x32xf32>
    %190 = math.exp %189 : vector<32x32xf32>
    %cst_140 = arith.constant 1.000000e+00 : f32
    %191 = vector.broadcast %cst_140 : f32 to vector<32x32xf32>
    %192 = arith.addf %191, %190 : vector<32x32xf32>
    %193 = tpu.reciprocal %192 {approx = true} : vector<32x32xf32> -> vector<32x32xf32>
    %194 = arith.mulf %29, %193 : vector<32x32xf32>
    %195 = arith.mulf %187, %194 : vector<32x32xf32>
    %c0_141 = arith.constant 0 : index
    %c0_142 = arith.constant 0 : index
    %c0_143 = arith.constant 0 : index
    %196 = vector.load %arg14[%c0_141, %c0_142, %c0_143] : memref<2x32x32xf32, #tpu.memory_space<vmem>>, vector<1x32x32xf32>
    %197 = vector.shape_cast %196 : vector<1x32x32xf32> to vector<32x32xf32>
    %cst_144 = arith.constant dense<0.000000e+00> : vector<32x32xf32>
    %198 = tpu.matmul %195, %197, %cst_144 {dimension_numbers = #tpu.dot_dimension_numbers<[1], [0], [0], [1], [0, 0, 1, 1], [], []>} : vector<32x32xf32>, vector<32x32xf32>, vector<32x32xf32> -> vector<32x32xf32>
    %199 = vector.extract_strided_slice %20 {offsets = [2, 0], sizes = [1, 32], strides = [1, 1]} : vector<3x32xf32> to vector<1x32xf32>
    %200 = vector.broadcast %199 : vector<1x32xf32> to vector<32x32xf32>
    %201 = arith.addf %198, %200 : vector<32x32xf32>
    %c1 = arith.constant 1 : index
    %c0_145 = arith.constant 0 : index
    %c0_146 = arith.constant 0 : index
    %202 = vector.load %arg9[%c1, %c0_145, %c0_146] : memref<2x3x32xf32, #tpu.memory_space<vmem>>, vector<1x3x32xf32>
    %203 = vector.shape_cast %202 : vector<1x3x32xf32> to vector<3x32xf32>
    %c1_147 = arith.constant 1 : index
    %c0_148 = arith.constant 0 : index
    %c0_149 = arith.constant 0 : index
    %204 = vector.load %arg6[%c1_147, %c0_148, %c0_149] : memref<2x32x64xf32, #tpu.memory_space<vmem>>, vector<1x32x64xf32>
    %205 = vector.shape_cast %204 : vector<1x32x64xf32> to vector<32x64xf32>
    %cst_150 = arith.constant dense<0.000000e+00> : vector<32x64xf32>
    %206 = tpu.matmul %201, %205, %cst_150 {dimension_numbers = #tpu.dot_dimension_numbers<[1], [0], [0], [1], [0, 0, 1, 1], [], []>} : vector<32x32xf32>, vector<32x64xf32>, vector<32x64xf32> -> vector<32x64xf32>
    %c1_151 = arith.constant 1 : index
    %c0_152 = arith.constant 0 : index
    %c0_153 = arith.constant 0 : index
    %207 = vector.load %arg7[%c1_151, %c0_152, %c0_153] : memref<2x1x64xf32, #tpu.memory_space<vmem>>, vector<1x1x64xf32>
    %208 = vector.shape_cast %207 : vector<1x1x64xf32> to vector<1x64xf32>
    %209 = vector.broadcast %208 : vector<1x64xf32> to vector<32x64xf32>
    %210 = arith.addf %206, %209 : vector<32x64xf32>
    %211 = vector.extract_strided_slice %210 {offsets = [0, 0], sizes = [32, 32], strides = [1, 1]} : vector<32x64xf32> to vector<32x32xf32>
    %212 = vector.extract_strided_slice %210 {offsets = [0, 32], sizes = [32, 32], strides = [1, 1]} : vector<32x64xf32> to vector<32x32xf32>
    %c1_154 = arith.constant 1 : index
    %c0_155 = arith.constant 0 : index
    %c0_156 = arith.constant 0 : index
    %213 = vector.load %arg8[%c1_154, %c0_155, %c0_156] : memref<2x4x32xf32, #tpu.memory_space<vmem>>, vector<1x4x32xf32>
    %214 = vector.shape_cast %213 : vector<1x4x32xf32> to vector<4x32xf32>
    %215 = vector.extract_strided_slice %214 {offsets = [3, 0], sizes = [1, 32], strides = [1, 1]} : vector<4x32xf32> to vector<1x32xf32>
    %216 = vector.broadcast %215 : vector<1x32xf32> to vector<32x32xf32>
    %217 = arith.mulf %211, %216 : vector<32x32xf32>
    %c6_i32_157 = arith.constant 6 : i32
    %218 = tpu.dynamic_rotate %211 by %c6_i32_157 dim 0 : vector<32x32xf32>, i32 -> vector<32x32xf32>
    %219 = vector.broadcast %12 : vector<32x1xf32> to vector<32x32xf32>
    %220 = arith.mulf %218, %219 : vector<32x32xf32>
    %221 = vector.extract_strided_slice %214 {offsets = [0, 0], sizes = [1, 32], strides = [1, 1]} : vector<4x32xf32> to vector<1x32xf32>
    %222 = vector.broadcast %221 : vector<1x32xf32> to vector<32x32xf32>
    %223 = arith.mulf %220, %222 : vector<32x32xf32>
    %224 = arith.addf %217, %223 : vector<32x32xf32>
    %c4_i32_158 = arith.constant 4 : i32
    %225 = tpu.dynamic_rotate %211 by %c4_i32_158 dim 0 : vector<32x32xf32>, i32 -> vector<32x32xf32>
    %226 = vector.broadcast %8 : vector<32x1xf32> to vector<32x32xf32>
    %227 = arith.mulf %225, %226 : vector<32x32xf32>
    %228 = vector.extract_strided_slice %214 {offsets = [1, 0], sizes = [1, 32], strides = [1, 1]} : vector<4x32xf32> to vector<1x32xf32>
    %229 = vector.broadcast %228 : vector<1x32xf32> to vector<32x32xf32>
    %230 = arith.mulf %227, %229 : vector<32x32xf32>
    %231 = arith.addf %224, %230 : vector<32x32xf32>
    %c2_i32_159 = arith.constant 2 : i32
    %232 = tpu.dynamic_rotate %211 by %c2_i32_159 dim 0 : vector<32x32xf32>, i32 -> vector<32x32xf32>
    %233 = vector.broadcast %4 : vector<32x1xf32> to vector<32x32xf32>
    %234 = arith.mulf %232, %233 : vector<32x32xf32>
    %235 = vector.extract_strided_slice %214 {offsets = [2, 0], sizes = [1, 32], strides = [1, 1]} : vector<4x32xf32> to vector<1x32xf32>
    %236 = vector.broadcast %235 : vector<1x32xf32> to vector<32x32xf32>
    %237 = arith.mulf %234, %236 : vector<32x32xf32>
    %238 = arith.addf %231, %237 : vector<32x32xf32>
    %239 = vector.extract_strided_slice %203 {offsets = [0, 0], sizes = [1, 32], strides = [1, 1]} : vector<3x32xf32> to vector<1x32xf32>
    %240 = vector.broadcast %239 : vector<1x32xf32> to vector<32x32xf32>
    %241 = arith.addf %238, %240 : vector<32x32xf32>
    %cst_160 = arith.constant 0.000000e+00 : f32
    %242 = vector.broadcast %cst_160 : f32 to vector<32x32xf32>
    %243 = arith.subf %242, %241 : vector<32x32xf32>
    %244 = math.exp %243 : vector<32x32xf32>
    %cst_161 = arith.constant 1.000000e+00 : f32
    %245 = vector.broadcast %cst_161 : f32 to vector<32x32xf32>
    %246 = arith.addf %245, %244 : vector<32x32xf32>
    %247 = tpu.reciprocal %246 {approx = true} : vector<32x32xf32> -> vector<32x32xf32>
    %248 = arith.mulf %241, %247 : vector<32x32xf32>
    %c1_162 = arith.constant 1 : index
    %c0_163 = arith.constant 0 : index
    %c0_164 = arith.constant 0 : index
    %249 = vector.load %arg10[%c1_162, %c0_163, %c0_164] : memref<2x32x1040xf32, #tpu.memory_space<vmem>>, vector<1x32x1040xf32>
    %250 = vector.shape_cast %249 : vector<1x32x1040xf32> to vector<32x1040xf32>
    %cst_165 = arith.constant dense<0.000000e+00> : vector<32x1040xf32>
    %251 = tpu.matmul %248, %250, %cst_165 {dimension_numbers = #tpu.dot_dimension_numbers<[1], [0], [0], [1], [0, 0, 1, 1], [], []>} : vector<32x32xf32>, vector<32x1040xf32>, vector<32x1040xf32> -> vector<32x1040xf32>
    %c1_166 = arith.constant 1 : index
    %c0_167 = arith.constant 0 : index
    %c0_168 = arith.constant 0 : index
    %252 = vector.load %arg11[%c1_166, %c0_167, %c0_168] : memref<2x1x1040xf32, #tpu.memory_space<vmem>>, vector<1x1x1040xf32>
    %253 = vector.shape_cast %252 : vector<1x1x1040xf32> to vector<1x1040xf32>
    %254 = vector.broadcast %253 : vector<1x1040xf32> to vector<32x1040xf32>
    %255 = arith.addf %251, %254 : vector<32x1040xf32>
    %256 = vector.extract_strided_slice %255 {offsets = [0, 512], sizes = [32, 512], strides = [1, 1]} : vector<32x1040xf32> to vector<32x512xf32>
    %c0_169 = arith.constant 0 : index
    %c0_170 = arith.constant 0 : index
    %257 = vector.load %arg21[%c0_169, %c0_170] : memref<32x512xf32, #tpu.memory_space<vmem>>, vector<32x512xf32>
    tpu.vector_store %arg21[%c0_169, %c0_170], %256 {strides = array<i32>} : memref<32x512xf32, #tpu.memory_space<vmem>>, vector<32x512xf32>,
    %258 = vector.extract_strided_slice %255 {offsets = [0, 0], sizes = [32, 512], strides = [1, 1]} : vector<32x1040xf32> to vector<32x512xf32>
    %259 = vector.extract_strided_slice %255 {offsets = [0, 1024], sizes = [32, 16], strides = [1, 1]} : vector<32x1040xf32> to vector<32x16xf32>
    %c1_171 = arith.constant 1 : index
    %c0_172 = arith.constant 0 : index
    %c0_173 = arith.constant 0 : index
    %260 = vector.load %arg12[%c1_171, %c0_172, %c0_173] : memref<2x16x32xf32, #tpu.memory_space<vmem>>, vector<1x16x32xf32>
    %261 = vector.shape_cast %260 : vector<1x16x32xf32> to vector<16x32xf32>
    %cst_174 = arith.constant dense<0.000000e+00> : vector<32x32xf32>
    %262 = tpu.matmul %259, %261, %cst_174 {dimension_numbers = #tpu.dot_dimension_numbers<[1], [0], [0], [1], [0, 0, 1, 1], [], []>} : vector<32x16xf32>, vector<16x32xf32>, vector<32x32xf32> -> vector<32x32xf32>
    %263 = vector.extract_strided_slice %203 {offsets = [1, 0], sizes = [1, 32], strides = [1, 1]} : vector<3x32xf32> to vector<1x32xf32>
    %264 = vector.broadcast %263 : vector<1x32xf32> to vector<32x32xf32>
    %265 = arith.addf %262, %264 : vector<32x32xf32>
    %cst_175 = arith.constant 2.000000e+01 : f32
    %266 = vector.broadcast %cst_175 : f32 to vector<32x32xf32>
    %267 = arith.minimumf %265, %266 : vector<32x32xf32>
    %268 = math.exp %267 : vector<32x32xf32>
    %cst_176 = arith.constant 2.000000e+01 : f32
    %269 = vector.broadcast %cst_176 : f32 to vector<32x32xf32>
    %270 = arith.cmpf ogt, %265, %269 : vector<32x32xf32>
    %cst_177 = arith.constant 1.000000e+00 : f32
    %271 = vector.broadcast %cst_177 : f32 to vector<32x32xf32>
    %272 = arith.addf %271, %268 : vector<32x32xf32>
    %273 = math.log %272 : vector<32x32xf32>
    %274 = arith.select %270, %265, %273 : vector<32x32xi1>, vector<32x32xf32>
    %c1_178 = arith.constant 1 : index
    %c0_179 = arith.constant 0 : index
    %c0_180 = arith.constant 0 : index
    %275 = vector.load %arg13[%c1_178, %c0_179, %c0_180] : memref<2x32x512xf32, #tpu.memory_space<vmem>>, vector<1x32x512xf32>
    %276 = vector.shape_cast %275 : vector<1x32x512xf32> to vector<32x512xf32>
    %cst_181 = arith.constant dense<0.000000e+00> : vector<32x512xf32>
    %277 = tpu.matmul %274, %276, %cst_181 {dimension_numbers = #tpu.dot_dimension_numbers<[1], [0], [0], [1], [0, 0, 1, 1], [], []>} : vector<32x32xf32>, vector<32x512xf32>, vector<32x512xf32> -> vector<32x512xf32>
    %278 = math.exp %277 : vector<32x512xf32>
    %c0_182 = arith.constant 0 : index
    %c0_183 = arith.constant 0 : index
    %279 = vector.load %arg19[%c0_182, %c0_183] : memref<32x512xf32, #tpu.memory_space<vmem>>, vector<32x512xf32>
    tpu.vector_store %arg19[%c0_182, %c0_183], %278 {strides = array<i32>} : memref<32x512xf32, #tpu.memory_space<vmem>>, vector<32x512xf32>,
    %280 = arith.mulf %274, %248 : vector<32x32xf32>
    %c0_184 = arith.constant 0 : index
    %c0_185 = arith.constant 0 : index
    %281 = vector.load %arg3[%c0_184, %c0_185] : memref<32x512xf32, #tpu.memory_space<vmem>>, vector<32x512xf32>
    %cst_186 = arith.constant dense<0.000000e+00> : vector<32x512xf32>
    %282 = tpu.matmul %280, %281, %cst_186 {dimension_numbers = #tpu.dot_dimension_numbers<[1], [0], [0], [1], [0, 0, 1, 1], [], []>} : vector<32x32xf32>, vector<32x512xf32>, vector<32x512xf32> -> vector<32x512xf32>
    %283 = arith.mulf %282, %258 : vector<32x512xf32>
    %c0_187 = arith.constant 0 : index
    %c0_188 = arith.constant 0 : index
    %284 = vector.load %arg20[%c0_187, %c0_188] : memref<32x512xf32, #tpu.memory_space<vmem>>, vector<32x512xf32>
    tpu.vector_store %arg20[%c0_187, %c0_188], %283 {strides = array<i32>} : memref<32x512xf32, #tpu.memory_space<vmem>>, vector<32x512xf32>,
    %cst_189 = arith.constant 0.000000e+00 : f32
    %285 = vector.broadcast %cst_189 : f32 to vector<2x512xf32>
    %c0_190 = arith.constant 0 : index
    %c0_191 = arith.constant 0 : index
    %286 = vector.load %arg19[%c0_190, %c0_191] : memref<32x512xf32, #tpu.memory_space<vmem>>, vector<2x512xf32>
    %287 = arith.mulf %286, %285 : vector<2x512xf32>
    %c0_192 = arith.constant 0 : index
    %c0_193 = arith.constant 0 : index
    %288 = vector.load %arg20[%c0_192, %c0_193] : memref<32x512xf32, #tpu.memory_space<vmem>>, vector<2x512xf32>
    %289 = arith.addf %287, %288 : vector<2x512xf32>
    %c0_194 = arith.constant 0 : index
    %c0_195 = arith.constant 0 : index
    %290 = vector.load %arg22[%c0_194, %c0_195] : memref<32x512xf32, #tpu.memory_space<vmem>>, vector<2x512xf32>
    tpu.vector_store %arg22[%c0_194, %c0_195], %289 {strides = array<i32>} : memref<32x512xf32, #tpu.memory_space<vmem>>, vector<2x512xf32>,
    %c2_196 = arith.constant 2 : index
    %c0_197 = arith.constant 0 : index
    %291 = vector.load %arg19[%c2_196, %c0_197] : memref<32x512xf32, #tpu.memory_space<vmem>>, vector<2x512xf32>
    %292 = arith.mulf %291, %289 : vector<2x512xf32>
    %c2_198 = arith.constant 2 : index
    %c0_199 = arith.constant 0 : index
    %293 = vector.load %arg20[%c2_198, %c0_199] : memref<32x512xf32, #tpu.memory_space<vmem>>, vector<2x512xf32>
    %294 = arith.addf %292, %293 : vector<2x512xf32>
    %c2_200 = arith.constant 2 : index
    %c0_201 = arith.constant 0 : index
    %295 = vector.load %arg22[%c2_200, %c0_201] : memref<32x512xf32, #tpu.memory_space<vmem>>, vector<2x512xf32>
    tpu.vector_store %arg22[%c2_200, %c0_201], %294 {strides = array<i32>} : memref<32x512xf32, #tpu.memory_space<vmem>>, vector<2x512xf32>,
    %c4_202 = arith.constant 4 : index
    %c0_203 = arith.constant 0 : index
    %296 = vector.load %arg19[%c4_202, %c0_203] : memref<32x512xf32, #tpu.memory_space<vmem>>, vector<2x512xf32>
    %297 = arith.mulf %296, %294 : vector<2x512xf32>
    %c4_204 = arith.constant 4 : index
    %c0_205 = arith.constant 0 : index
    %298 = vector.load %arg20[%c4_204, %c0_205] : memref<32x512xf32, #tpu.memory_space<vmem>>, vector<2x512xf32>
    %299 = arith.addf %297, %298 : vector<2x512xf32>
    %c4_206 = arith.constant 4 : index
    %c0_207 = arith.constant 0 : index
    %300 = vector.load %arg22[%c4_206, %c0_207] : memref<32x512xf32, #tpu.memory_space<vmem>>, vector<2x512xf32>
    tpu.vector_store %arg22[%c4_206, %c0_207], %299 {strides = array<i32>} : memref<32x512xf32, #tpu.memory_space<vmem>>, vector<2x512xf32>,
    %c6_208 = arith.constant 6 : index
    %c0_209 = arith.constant 0 : index
    %301 = vector.load %arg19[%c6_208, %c0_209] : memref<32x512xf32, #tpu.memory_space<vmem>>, vector<2x512xf32>
    %302 = arith.mulf %301, %299 : vector<2x512xf32>
    %c6_210 = arith.constant 6 : index
    %c0_211 = arith.constant 0 : index
    %303 = vector.load %arg20[%c6_210, %c0_211] : memref<32x512xf32, #tpu.memory_space<vmem>>, vector<2x512xf32>
    %304 = arith.addf %302, %303 : vector<2x512xf32>
    %c6_212 = arith.constant 6 : index
    %c0_213 = arith.constant 0 : index
    %305 = vector.load %arg22[%c6_212, %c0_213] : memref<32x512xf32, #tpu.memory_space<vmem>>, vector<2x512xf32>
    tpu.vector_store %arg22[%c6_212, %c0_213], %304 {strides = array<i32>} : memref<32x512xf32, #tpu.memory_space<vmem>>, vector<2x512xf32>,
    %c8_214 = arith.constant 8 : index
    %c0_215 = arith.constant 0 : index
    %306 = vector.load %arg19[%c8_214, %c0_215] : memref<32x512xf32, #tpu.memory_space<vmem>>, vector<2x512xf32>
    %307 = arith.mulf %306, %304 : vector<2x512xf32>
    %c8_216 = arith.constant 8 : index
    %c0_217 = arith.constant 0 : index
    %308 = vector.load %arg20[%c8_216, %c0_217] : memref<32x512xf32, #tpu.memory_space<vmem>>, vector<2x512xf32>
    %309 = arith.addf %307, %308 : vector<2x512xf32>
    %c8_218 = arith.constant 8 : index
    %c0_219 = arith.constant 0 : index
    %310 = vector.load %arg22[%c8_218, %c0_219] : memref<32x512xf32, #tpu.memory_space<vmem>>, vector<2x512xf32>
    tpu.vector_store %arg22[%c8_218, %c0_219], %309 {strides = array<i32>} : memref<32x512xf32, #tpu.memory_space<vmem>>, vector<2x512xf32>,
    %c10_220 = arith.constant 10 : index
    %c0_221 = arith.constant 0 : index
    %311 = vector.load %arg19[%c10_220, %c0_221] : memref<32x512xf32, #tpu.memory_space<vmem>>, vector<2x512xf32>
    %312 = arith.mulf %311, %309 : vector<2x512xf32>
    %c10_222 = arith.constant 10 : index
    %c0_223 = arith.constant 0 : index
    %313 = vector.load %arg20[%c10_222, %c0_223] : memref<32x512xf32, #tpu.memory_space<vmem>>, vector<2x512xf32>
    %314 = arith.addf %312, %313 : vector<2x512xf32>
    %c10_224 = arith.constant 10 : index
    %c0_225 = arith.constant 0 : index
    %315 = vector.load %arg22[%c10_224, %c0_225] : memref<32x512xf32, #tpu.memory_space<vmem>>, vector<2x512xf32>
    tpu.vector_store %arg22[%c10_224, %c0_225], %314 {strides = array<i32>} : memref<32x512xf32, #tpu.memory_space<vmem>>, vector<2x512xf32>,
    %c12_226 = arith.constant 12 : index
    %c0_227 = arith.constant 0 : index
    %316 = vector.load %arg19[%c12_226, %c0_227] : memref<32x512xf32, #tpu.memory_space<vmem>>, vector<2x512xf32>
    %317 = arith.mulf %316, %314 : vector<2x512xf32>
    %c12_228 = arith.constant 12 : index
    %c0_229 = arith.constant 0 : index
    %318 = vector.load %arg20[%c12_228, %c0_229] : memref<32x512xf32, #tpu.memory_space<vmem>>, vector<2x512xf32>
    %319 = arith.addf %317, %318 : vector<2x512xf32>
    %c12_230 = arith.constant 12 : index
    %c0_231 = arith.constant 0 : index
    %320 = vector.load %arg22[%c12_230, %c0_231] : memref<32x512xf32, #tpu.memory_space<vmem>>, vector<2x512xf32>
    tpu.vector_store %arg22[%c12_230, %c0_231], %319 {strides = array<i32>} : memref<32x512xf32, #tpu.memory_space<vmem>>, vector<2x512xf32>,
    %c14_232 = arith.constant 14 : index
    %c0_233 = arith.constant 0 : index
    %321 = vector.load %arg19[%c14_232, %c0_233] : memref<32x512xf32, #tpu.memory_space<vmem>>, vector<2x512xf32>
    %322 = arith.mulf %321, %319 : vector<2x512xf32>
    %c14_234 = arith.constant 14 : index
    %c0_235 = arith.constant 0 : index
    %323 = vector.load %arg20[%c14_234, %c0_235] : memref<32x512xf32, #tpu.memory_space<vmem>>, vector<2x512xf32>
    %324 = arith.addf %322, %323 : vector<2x512xf32>
    %c14_236 = arith.constant 14 : index
    %c0_237 = arith.constant 0 : index
    %325 = vector.load %arg22[%c14_236, %c0_237] : memref<32x512xf32, #tpu.memory_space<vmem>>, vector<2x512xf32>
    tpu.vector_store %arg22[%c14_236, %c0_237], %324 {strides = array<i32>} : memref<32x512xf32, #tpu.memory_space<vmem>>, vector<2x512xf32>,
    %c16_238 = arith.constant 16 : index
    %c0_239 = arith.constant 0 : index
    %326 = vector.load %arg19[%c16_238, %c0_239] : memref<32x512xf32, #tpu.memory_space<vmem>>, vector<2x512xf32>
    %327 = arith.mulf %326, %324 : vector<2x512xf32>
    %c16_240 = arith.constant 16 : index
    %c0_241 = arith.constant 0 : index
    %328 = vector.load %arg20[%c16_240, %c0_241] : memref<32x512xf32, #tpu.memory_space<vmem>>, vector<2x512xf32>
    %329 = arith.addf %327, %328 : vector<2x512xf32>
    %c16_242 = arith.constant 16 : index
    %c0_243 = arith.constant 0 : index
    %330 = vector.load %arg22[%c16_242, %c0_243] : memref<32x512xf32, #tpu.memory_space<vmem>>, vector<2x512xf32>
    tpu.vector_store %arg22[%c16_242, %c0_243], %329 {strides = array<i32>} : memref<32x512xf32, #tpu.memory_space<vmem>>, vector<2x512xf32>,
    %c18_244 = arith.constant 18 : index
    %c0_245 = arith.constant 0 : index
    %331 = vector.load %arg19[%c18_244, %c0_245] : memref<32x512xf32, #tpu.memory_space<vmem>>, vector<2x512xf32>
    %332 = arith.mulf %331, %329 : vector<2x512xf32>
    %c18_246 = arith.constant 18 : index
    %c0_247 = arith.constant 0 : index
    %333 = vector.load %arg20[%c18_246, %c0_247] : memref<32x512xf32, #tpu.memory_space<vmem>>, vector<2x512xf32>
    %334 = arith.addf %332, %333 : vector<2x512xf32>
    %c18_248 = arith.constant 18 : index
    %c0_249 = arith.constant 0 : index
    %335 = vector.load %arg22[%c18_248, %c0_249] : memref<32x512xf32, #tpu.memory_space<vmem>>, vector<2x512xf32>
    tpu.vector_store %arg22[%c18_248, %c0_249], %334 {strides = array<i32>} : memref<32x512xf32, #tpu.memory_space<vmem>>, vector<2x512xf32>,
    %c20_250 = arith.constant 20 : index
    %c0_251 = arith.constant 0 : index
    %336 = vector.load %arg19[%c20_250, %c0_251] : memref<32x512xf32, #tpu.memory_space<vmem>>, vector<2x512xf32>
    %337 = arith.mulf %336, %334 : vector<2x512xf32>
    %c20_252 = arith.constant 20 : index
    %c0_253 = arith.constant 0 : index
    %338 = vector.load %arg20[%c20_252, %c0_253] : memref<32x512xf32, #tpu.memory_space<vmem>>, vector<2x512xf32>
    %339 = arith.addf %337, %338 : vector<2x512xf32>
    %c20_254 = arith.constant 20 : index
    %c0_255 = arith.constant 0 : index
    %340 = vector.load %arg22[%c20_254, %c0_255] : memref<32x512xf32, #tpu.memory_space<vmem>>, vector<2x512xf32>
    tpu.vector_store %arg22[%c20_254, %c0_255], %339 {strides = array<i32>} : memref<32x512xf32, #tpu.memory_space<vmem>>, vector<2x512xf32>,
    %c22_256 = arith.constant 22 : index
    %c0_257 = arith.constant 0 : index
    %341 = vector.load %arg19[%c22_256, %c0_257] : memref<32x512xf32, #tpu.memory_space<vmem>>, vector<2x512xf32>
    %342 = arith.mulf %341, %339 : vector<2x512xf32>
    %c22_258 = arith.constant 22 : index
    %c0_259 = arith.constant 0 : index
    %343 = vector.load %arg20[%c22_258, %c0_259] : memref<32x512xf32, #tpu.memory_space<vmem>>, vector<2x512xf32>
    %344 = arith.addf %342, %343 : vector<2x512xf32>
    %c22_260 = arith.constant 22 : index
    %c0_261 = arith.constant 0 : index
    %345 = vector.load %arg22[%c22_260, %c0_261] : memref<32x512xf32, #tpu.memory_space<vmem>>, vector<2x512xf32>
    tpu.vector_store %arg22[%c22_260, %c0_261], %344 {strides = array<i32>} : memref<32x512xf32, #tpu.memory_space<vmem>>, vector<2x512xf32>,
    %c24_262 = arith.constant 24 : index
    %c0_263 = arith.constant 0 : index
    %346 = vector.load %arg19[%c24_262, %c0_263] : memref<32x512xf32, #tpu.memory_space<vmem>>, vector<2x512xf32>
    %347 = arith.mulf %346, %344 : vector<2x512xf32>
    %c24_264 = arith.constant 24 : index
    %c0_265 = arith.constant 0 : index
    %348 = vector.load %arg20[%c24_264, %c0_265] : memref<32x512xf32, #tpu.memory_space<vmem>>, vector<2x512xf32>
    %349 = arith.addf %347, %348 : vector<2x512xf32>
    %c24_266 = arith.constant 24 : index
    %c0_267 = arith.constant 0 : index
    %350 = vector.load %arg22[%c24_266, %c0_267] : memref<32x512xf32, #tpu.memory_space<vmem>>, vector<2x512xf32>
    tpu.vector_store %arg22[%c24_266, %c0_267], %349 {strides = array<i32>} : memref<32x512xf32, #tpu.memory_space<vmem>>, vector<2x512xf32>,
    %c26_268 = arith.constant 26 : index
    %c0_269 = arith.constant 0 : index
    %351 = vector.load %arg19[%c26_268, %c0_269] : memref<32x512xf32, #tpu.memory_space<vmem>>, vector<2x512xf32>
    %352 = arith.mulf %351, %349 : vector<2x512xf32>
    %c26_270 = arith.constant 26 : index
    %c0_271 = arith.constant 0 : index
    %353 = vector.load %arg20[%c26_270, %c0_271] : memref<32x512xf32, #tpu.memory_space<vmem>>, vector<2x512xf32>
    %354 = arith.addf %352, %353 : vector<2x512xf32>
    %c26_272 = arith.constant 26 : index
    %c0_273 = arith.constant 0 : index
    %355 = vector.load %arg22[%c26_272, %c0_273] : memref<32x512xf32, #tpu.memory_space<vmem>>, vector<2x512xf32>
    tpu.vector_store %arg22[%c26_272, %c0_273], %354 {strides = array<i32>} : memref<32x512xf32, #tpu.memory_space<vmem>>, vector<2x512xf32>,
    %c28_274 = arith.constant 28 : index
    %c0_275 = arith.constant 0 : index
    %356 = vector.load %arg19[%c28_274, %c0_275] : memref<32x512xf32, #tpu.memory_space<vmem>>, vector<2x512xf32>
    %357 = arith.mulf %356, %354 : vector<2x512xf32>
    %c28_276 = arith.constant 28 : index
    %c0_277 = arith.constant 0 : index
    %358 = vector.load %arg20[%c28_276, %c0_277] : memref<32x512xf32, #tpu.memory_space<vmem>>, vector<2x512xf32>
    %359 = arith.addf %357, %358 : vector<2x512xf32>
    %c28_278 = arith.constant 28 : index
    %c0_279 = arith.constant 0 : index
    %360 = vector.load %arg22[%c28_278, %c0_279] : memref<32x512xf32, #tpu.memory_space<vmem>>, vector<2x512xf32>
    tpu.vector_store %arg22[%c28_278, %c0_279], %359 {strides = array<i32>} : memref<32x512xf32, #tpu.memory_space<vmem>>, vector<2x512xf32>,
    %c30_280 = arith.constant 30 : index
    %c0_281 = arith.constant 0 : index
    %361 = vector.load %arg19[%c30_280, %c0_281] : memref<32x512xf32, #tpu.memory_space<vmem>>, vector<2x512xf32>
    %362 = arith.mulf %361, %359 : vector<2x512xf32>
    %c30_282 = arith.constant 30 : index
    %c0_283 = arith.constant 0 : index
    %363 = vector.load %arg20[%c30_282, %c0_283] : memref<32x512xf32, #tpu.memory_space<vmem>>, vector<2x512xf32>
    %364 = arith.addf %362, %363 : vector<2x512xf32>
    %c30_284 = arith.constant 30 : index
    %c0_285 = arith.constant 0 : index
    %365 = vector.load %arg22[%c30_284, %c0_285] : memref<32x512xf32, #tpu.memory_space<vmem>>, vector<2x512xf32>
    tpu.vector_store %arg22[%c30_284, %c0_285], %364 {strides = array<i32>} : memref<32x512xf32, #tpu.memory_space<vmem>>, vector<2x512xf32>,
    %c0_286 = arith.constant 0 : index
    %c0_287 = arith.constant 0 : index
    %366 = vector.load %arg22[%c0_286, %c0_287] : memref<32x512xf32, #tpu.memory_space<vmem>>, vector<32x512xf32>
    %c0_288 = arith.constant 0 : index
    %c0_289 = arith.constant 0 : index
    %367 = vector.load %arg21[%c0_288, %c0_289] : memref<32x512xf32, #tpu.memory_space<vmem>>, vector<32x512xf32>
    %368 = arith.mulf %366, %367 : vector<32x512xf32>
    %c0_290 = arith.constant 0 : index
    %c0_291 = arith.constant 0 : index
    %369 = vector.load %arg2[%c0_290, %c0_291] : memref<512x32xf32, #tpu.memory_space<vmem>>, vector<512x32xf32>
    %cst_292 = arith.constant dense<0.000000e+00> : vector<32x32xf32>
    %370 = tpu.matmul %368, %369, %cst_292 {dimension_numbers = #tpu.dot_dimension_numbers<[1], [0], [0], [1], [0, 0, 1, 1], [], []>} : vector<32x512xf32>, vector<512x32xf32>, vector<32x32xf32> -> vector<32x32xf32>
    %cst_293 = arith.constant 0.000000e+00 : f32
    %371 = vector.broadcast %cst_293 : f32 to vector<32x32xf32>
    %372 = arith.subf %371, %212 : vector<32x32xf32>
    %373 = math.exp %372 : vector<32x32xf32>
    %cst_294 = arith.constant 1.000000e+00 : f32
    %374 = vector.broadcast %cst_294 : f32 to vector<32x32xf32>
    %375 = arith.addf %374, %373 : vector<32x32xf32>
    %376 = tpu.reciprocal %375 {approx = true} : vector<32x32xf32> -> vector<32x32xf32>
    %377 = arith.mulf %212, %376 : vector<32x32xf32>
    %378 = arith.mulf %370, %377 : vector<32x32xf32>
    %c1_295 = arith.constant 1 : index
    %c0_296 = arith.constant 0 : index
    %c0_297 = arith.constant 0 : index
    %379 = vector.load %arg14[%c1_295, %c0_296, %c0_297] : memref<2x32x32xf32, #tpu.memory_space<vmem>>, vector<1x32x32xf32>
    %380 = vector.shape_cast %379 : vector<1x32x32xf32> to vector<32x32xf32>
    %cst_298 = arith.constant dense<0.000000e+00> : vector<32x32xf32>
    %381 = tpu.matmul %378, %380, %cst_298 {dimension_numbers = #tpu.dot_dimension_numbers<[1], [0], [0], [1], [0, 0, 1, 1], [], []>} : vector<32x32xf32>, vector<32x32xf32>, vector<32x32xf32> -> vector<32x32xf32>
    %382 = vector.extract_strided_slice %203 {offsets = [2, 0], sizes = [1, 32], strides = [1, 1]} : vector<3x32xf32> to vector<1x32xf32>
    %383 = vector.broadcast %382 : vector<1x32xf32> to vector<32x32xf32>
    %384 = arith.addf %381, %383 : vector<32x32xf32>
    %cst_299 = arith.constant dense<0.000000e+00> : vector<32xf32>
    %385 = vector.multi_reduction <add>, %384, %cst_299 [1] : vector<32x32xf32> to vector<32xf32>
    %386 = vector.shape_cast %385 : vector<32xf32> to vector<32x1xf32>
    %cst_300 = arith.constant 3.200000e+01 : f32
    %387 = vector.broadcast %cst_300 : f32 to vector<32x1xf32>
    %388 = arith.divf %386, %387 : vector<32x1xf32>
    %389 = vector.broadcast %388 : vector<32x1xf32> to vector<32x32xf32>
    %390 = arith.subf %384, %389 : vector<32x32xf32>
    %391 = arith.mulf %390, %390 : vector<32x32xf32>
    %cst_301 = arith.constant dense<0.000000e+00> : vector<32xf32>
    %392 = vector.multi_reduction <add>, %391, %cst_301 [1] : vector<32x32xf32> to vector<32xf32>
    %393 = vector.shape_cast %392 : vector<32xf32> to vector<32x1xf32>
    %cst_302 = arith.constant 3.200000e+01 : f32
    %394 = vector.broadcast %cst_302 : f32 to vector<32x1xf32>
    %395 = arith.divf %393, %394 : vector<32x1xf32>
    %c0_303 = arith.constant 0 : index
    %c0_304 = arith.constant 0 : index
    %396 = vector.load %arg15[%c0_303, %c0_304] : memref<2x32xf32, #tpu.memory_space<vmem>>, vector<2x32xf32>
    %397 = vector.broadcast %388 : vector<32x1xf32> to vector<32x32xf32>
    %398 = arith.subf %384, %397 : vector<32x32xf32>
    %cst_305 = arith.constant 9.99999974E-6 : f32
    %399 = vector.broadcast %cst_305 : f32 to vector<32x1xf32>
    %400 = arith.addf %395, %399 : vector<32x1xf32>
    %401 = math.rsqrt %400 : vector<32x1xf32>
    %402 = vector.broadcast %401 : vector<32x1xf32> to vector<32x32xf32>
    %403 = arith.mulf %398, %402 : vector<32x32xf32>
    %404 = vector.extract_strided_slice %396 {offsets = [0, 0], sizes = [1, 32], strides = [1, 1]} : vector<2x32xf32> to vector<1x32xf32>
    %405 = vector.broadcast %404 : vector<1x32xf32> to vector<32x32xf32>
    %406 = arith.mulf %403, %405 : vector<32x32xf32>
    %407 = vector.extract_strided_slice %396 {offsets = [1, 0], sizes = [1, 32], strides = [1, 1]} : vector<2x32xf32> to vector<1x32xf32>
    %408 = vector.broadcast %407 : vector<1x32xf32> to vector<32x32xf32>
    %409 = arith.addf %406, %408 : vector<32x32xf32>
    %c0_306 = arith.constant 0 : index
    %c0_307 = arith.constant 0 : index
    %410 = vector.load %arg1[%c0_306, %c0_307] : memref<2x32xf32, #tpu.memory_space<vmem>>, vector<2x32xf32>
    %cst_308 = arith.constant dense<0.000000e+00> : vector<2x32xf32>
    %411 = tpu.matmul %410, %409, %cst_308 {dimension_numbers = #tpu.dot_dimension_numbers<[1], [0], [0], [1], [0, 0, 1, 1], [], []>} : vector<2x32xf32>, vector<32x32xf32>, vector<2x32xf32> -> vector<2x32xf32>
    %c0_309 = arith.constant 0 : index
    %c0_310 = arith.constant 0 : index
    %412 = vector.load %arg16[%c0_309, %c0_310] : memref<32x3xf32, #tpu.memory_space<vmem>>, vector<32x3xf32>
    %cst_311 = arith.constant dense<0.000000e+00> : vector<2x3xf32>
    %413 = tpu.matmul %411, %412, %cst_311 {dimension_numbers = #tpu.dot_dimension_numbers<[1], [0], [0], [1], [0, 0, 1, 1], [], []>} : vector<2x32xf32>, vector<32x3xf32>, vector<2x3xf32> -> vector<2x3xf32>
    %c0_312 = arith.constant 0 : index
    %c0_313 = arith.constant 0 : index
    %414 = vector.load %arg17[%c0_312, %c0_313] : memref<1x3xf32, #tpu.memory_space<vmem>>, vector<1x3xf32>
    %415 = vector.broadcast %414 : vector<1x3xf32> to vector<2x3xf32>
    %416 = arith.addf %413, %415 : vector<2x3xf32>
    %c0_314 = arith.constant 0 : index
    %c0_315 = arith.constant 0 : index
    %417 = vector.load %arg18[%c0_314, %c0_315] : memref<2x3xf32, #tpu.memory_space<vmem>>, vector<2x3xf32>
    tpu.vector_store %arg18[%c0_314, %c0_315], %416 {strides = array<i32>} : memref<2x3xf32, #tpu.memory_space<vmem>>, vector<2x3xf32>,
    return
  }
}

</mosaic_0001>

<bundles_post_ra>
// kernel: tpu_custom_call.1
= control target key start
LH: loop header
LB: loop body
LE: loop exit
PB: predicated region body
PF: predicated region fallthrough
CT: control target
= control target key end

     0   :  { %s7835_s0 = inlined_call_operand.vmem [shape: f32[32,8], index: 0, kind: input, shape index: {}]   ;;  %s7836_s1 = inlined_call_operand.vmem [shape: f32[2,32], index: 1, kind: input, shape index: {}]   ;;  %s7837_s2 = inlined_call_operand.vmem [shape: f32[512,32], index: 2, kind: input, shape index: {}]   ;;  %s7838_s3 = inlined_call_operand.vmem [shape: f32[32,512], index: 3, kind: input, shape index: {}]   ;;  %s7839_s4 = inlined_call_operand.vmem [shape: f32[8,32], index: 4, kind: input, shape index: {}]   ;;  %s7840_s5 = inlined_call_operand.hbm [shape: f32[1,32], index: 5, kind: input, shape index: {}]   ;;  %s7841_s6 = inlined_call_operand.hbm [shape: f32[2,32,64], index: 6, kind: input, shape index: {}]   ;;  %s7842_s7 = inlined_call_operand.hbm [shape: f32[2,1,64], index: 7, kind: input, shape index: {}]   ;;  %s7843_s8 = inlined_call_operand.hbm [shape: f32[2,4,32], index: 8, kind: input, shape index: {}]   ;;  %s7844_s9 = inlined_call_operand.vmem [shape: f32[2,3,32], index: 9, kind: input, shape index: {}]   ;;  %s7845_s10 = inlined_call_operand.vmem [shape: f32[2,32,1040], index: 10, kind: input, shape index: {}]   ;;  %s7846_s11 = inlined_call_operand.hbm [shape: f32[2,1,1040], index: 11, kind: input, shape index: {}]   ;;  %s7847_s12 = inlined_call_operand.vmem [shape: f32[2,16,32], index: 12, kind: input, shape index: {}]   ;;  %s7848_s13 = inlined_call_operand.hbm [shape: f32[2,32,512], index: 13, kind: input, shape index: {}]   ;;  %s7849_s14 = inlined_call_operand.hbm [shape: f32[2,32,32], index: 14, kind: input, shape index: {}]   ;;  %s7850_s15 = inlined_call_operand.vmem [shape: f32[2,32], index: 15, kind: input, shape index: {}]   ;;  %s7851_s16 = inlined_call_operand.vmem [shape: f32[32,3], index: 16, kind: input, shape index: {}]   ;;  %s7852_s17 = inlined_call_operand.vmem [shape: f32[1,3], index: 17, kind: input, shape index: {}]   ;;  %s7853_s18 = inlined_call_operand.hbm [shape: f32[2,3], index: 18, kind: output, shape index: {}]  }
   0x1   :  { %7865 = sst [smem:[#allocation28_spill]] %s7835_s0 }
   0x2   :  { %7866 = sst [smem:[#allocation29_spill]] %s7836_s1 }
   0x3   :  { %7867 = sst [smem:[#allocation30_spill]] %s7837_s2 }
   0x4   :  { %23 = vsyncpa [#allocation7], 0 }
   0x5   :  { %24 = vsyncpa [#allocation10], 0 }
   0x6   :  { %25 = vsyncpa [#allocation13], 0 }
   0x7   :  { %26 = vsyncpa [#allocation16], 0 }
   0x8   :  { %27 = vsyncpa [#allocation8], 0  ;;  %s6140_s27 = smov [#allocation9]  }
   0x9   :  { %s53_s28 = sshll.u32 %s6140_s27, 4  ;;  %s54_s28 = int_to_ptr.vmem [resolvable:$true] %s53_s28 }
   0xa   :  { %s5978_s29 = scalar_lea.vmem %s54_s28, 1024  ;;  %p5983_p1 = scmp.lt.s32.totalorder %s54_s28, %s54_s28 }
   0xb   :  { %p5979_p0 = scmp.ne.s32.totalorder %s54_s28, %s5978_s29  ;;  %p5984_p2 = scmp.lt.s32.totalorder %s5978_s29, %s5978_s29 }
   0xd   :  { %p5985_p3 = por %p5984_p2, %p5983_p1 }
   0xf   :  { %p5986_p4 = pnand %p5985_p3, %p5979_p0 }
  0x11   :  { %5989 = shalt.err (!%p5986_p4)
}
  0x12   :  { %s6141_s30 = smov 128   ;;  %s6142_s0 = smov 8  }
  0x13   :  { %59 = dma.hbm_to_vmem [thread:$0]  %s7841_s6, 1024, %s54_s28, [#allocation10], %s6141_s30, %s6141_s30, %s6142_s0  }
  0x14   :  { %s6143_s20 = smov [#allocation12]  }
  0x15   :  { %s77_s21 = sshll.u32 %s6143_s20, 4  ;;  %s78_s21 = int_to_ptr.vmem [resolvable:$true] %s77_s21 }
  0x16   :  { %s5998_s22 = scalar_lea.vmem %s78_s21, 128  ;;  %p6003_p6 = scmp.lt.s32.totalorder %s78_s21, %s78_s21 }
  0x17   :  { %p5999_p5 = scmp.ne.s32.totalorder %s78_s21, %s5998_s22  ;;  %p6004_p7 = scmp.lt.s32.totalorder %s5998_s22, %s5998_s22 }
  0x19   :  { %p6005_p8 = por %p6004_p7, %p6003_p6 }
  0x1b   :  { %p6006_p9 = pnand %p6005_p8, %p5999_p5 }
  0x1d   :  { %6009 = shalt.err (!%p6006_p9)
}
  0x1e   :  { %s6144_s2 = smov 64   ;;  %s6145_s23 = smov 4  }
  0x1f   :  { %83 = dma.hbm_to_vmem [thread:$0]  %s7843_s8, 128, %s78_s21, [#allocation13], %s6144_s2, %s6144_s2, %s6145_s23  }
  0x20   :  { %s6146_s26 = smov [#allocation15]  }
  0x21   :  { %s107_s27 = sshll.u32 %s6146_s26, 4  ;;  %s108_s27 = int_to_ptr.vmem [resolvable:$true] %s107_s27 }
  0x22   :  { %s6018_s6 = scalar_lea.vmem %s108_s27, 4096  ;;  %p6023_p11 = scmp.lt.s32.totalorder %s108_s27, %s108_s27 }
  0x23   :  { %p6019_p10 = scmp.ne.s32.totalorder %s108_s27, %s6018_s6  ;;  %p6024_p12 = scmp.lt.s32.totalorder %s6018_s6, %s6018_s6 }
  0x25   :  { %p6025_p13 = por %p6024_p12, %p6023_p11 }
  0x27   :  { %p6026_p0 = pnand %p6025_p13, %p6019_p10 }
  0x29   :  { %6029 = shalt.err (!%p6026_p0)
}
  0x2a   :  { %s6147_s28 = smov 512   ;;  %s6148_s29 = smov 32  }
  0x2b   :  { %113 = dma.hbm_to_vmem [thread:$0]  %s7848_s13, 4096, %s108_s27, [#allocation16], %s6147_s28, %s6147_s28, %s6148_s29  }
  0x2c   :  { %s6149_s20 = smov [#allocation6]   ;;  %s6150_s8 = smov [#allocation11]  }
  0x2d   :  { %s44_s22 = sshll.u32 %s6149_s20, 4  ;;  %s65_s21 = sshll.u32 %s6150_s8, 4  ;;  %s45_s22 = int_to_ptr.vmem [resolvable:$true] %s44_s22  ;;  %s66_s21 = int_to_ptr.vmem [resolvable:$true] %s65_s21 }
  0x2e   :  { %s6038_s2 = scalar_lea.vmem %s45_s22, 16  ;;  %s6042_s23 = scalar_lea.vmem %s45_s22, 32 }
  0x2f   :  { %p6039_p1 = scmp.ne.s32.totalorder %s45_s22, %s6038_s2  ;;  %p6043_p2 = scmp.lt.s32.totalorder %s45_s22, %s45_s22 }
  0x30   :  { %p6044_p3 = scmp.lt.s32.totalorder %s6042_s23, %s6038_s2 }
  0x32   :  { %p6045_p4 = por %p6044_p3, %p6043_p2 }
  0x34   :  { %p6046_p5 = pnand %p6045_p4, %p6039_p1 }
  0x36   :  { %6049 = shalt.err (!%p6046_p5)
}
  0x37   :  { %47 = dma.hbm_to_vmem [thread:$0]  %s7840_s5, 16, %s45_s22, [#allocation7]  }
  0x38   :  { %s6058_s26 = scalar_lea.vmem %s66_s21, 32  ;;  %p6063_p7 = scmp.lt.s32.totalorder %s66_s21, %s66_s21 }
  0x39   :  { %p6059_p6 = scmp.ne.s32.totalorder %s66_s21, %s6058_s26  ;;  %p6064_p8 = scmp.lt.s32.totalorder %s6058_s26, %s6058_s26 }
  0x3b   :  { %p6065_p9 = por %p6064_p8, %p6063_p7 }
  0x3d   :  { %p6066_p10 = pnand %p6065_p9, %p6059_p6 }
  0x3f   :  { %6069 = shalt.err (!%p6066_p10)
}
  0x40   :  { %s6151_s13 = smov 16   ;;  %s6152_s27 = smov 1  }
  0x41   :  { %71 = dma.hbm_to_vmem [thread:$0]  %s7842_s7, 32, %s66_s21, [#allocation10], %s6151_s13, %s6151_s13, %s6152_s27  }
  0x42   :  { %s6153_s29 = smov [#allocation14]  }
  0x43   :  { %s93_s19 = sshll.u32 %s6153_s29, 4  ;;  %s94_s19 = int_to_ptr.vmem [resolvable:$true] %s93_s19 }
  0x44   :  { %s6078_s1 = scalar_lea.vmem %s94_s19, 288  ;;  %p6083_p12 = scmp.lt.s32.totalorder %s94_s19, %s94_s19 }
  0x45   :  { %p6079_p11 = scmp.ne.s32.totalorder %s94_s19, %s6078_s1  ;;  %p6084_p13 = scmp.lt.s32.totalorder %s6078_s1, %s6078_s1 }
  0x47   :  { %p6085_p0 = por %p6084_p13, %p6083_p12 }
  0x49   :  { %p6086_p1 = pnand %p6085_p0, %p6079_p11 }
  0x4b   :  { %6089 = shalt.err (!%p6086_p1)
}
  0x4c   :  { %s6154_s5 = smov 144   ;;  %s6155_s20 = smov 9  }
  0x4d   :  { %99 = dma.hbm_to_vmem [thread:$0]  %s7846_s11, 288, %s94_s19, [#allocation13], %s6154_s5, %s6154_s5, %s6155_s20  }
  0x4e   :  { %s6156_s2 = smov [#allocation17]  }
  0x4f   :  { %s119_s23 = sshll.u32 %s6156_s2, 4  ;;  %s120_s23 = int_to_ptr.vmem [resolvable:$true] %s119_s23 }
  0x50   :  { %s6098_s7 = scalar_lea.vmem %s120_s23, 1024  ;;  %p6103_p3 = scmp.lt.s32.totalorder %s120_s23, %s120_s23 }
  0x51   :  { %p6099_p2 = scmp.ne.s32.totalorder %s120_s23, %s6098_s7  ;;  %p6104_p4 = scmp.lt.s32.totalorder %s6098_s7, %s6098_s7 }
  0x53   :  { %p6105_p5 = por %p6104_p4, %p6103_p3 }
  0x55   :  { %p6106_p6 = pnand %p6105_p5, %p6099_p2 }
  0x57   :  { %6109 = shalt.err (!%p6106_p6)
}
  0x58   :  { %125 = dma.hbm_to_vmem [thread:$0]  %s7849_s14, 1024, %s120_s23, [#allocation16], %s6141_s30, %s6141_s30, %s6142_s0  }
  0x59   :  { %6130 = dma.done.wait [#allocation7], 16  }
  0x5a   :  { %6131 = vsyncadd [#allocation7], 4294967280 }
  0x5b   :  { %6132 = dma.done.wait [#allocation10], 1056  }
  0x5c   :  { %6133 = vsyncadd [#allocation10], 4294966240 }
  0x5d   :  { %6134 = dma.done.wait [#allocation13], 416  }
  0x5e   :  { %6135 = vsyncadd [#allocation13], 4294966880 }
  0x5f   :  { %6136 = dma.done.wait [#allocation16], 5120  }
  0x60   :  { %6137 = vsyncadd [#allocation16], 4294962176  ;;  %vm206_vm0 = vcmask 64512   ;;  %v198_v0 = vld [vmem:[%s7839_s4] sm:$0xff]  ;;  %s7868_s27 = sld [smem:[#allocation28_spill]]  ;;  %v307_v6 = vld [vmem:[#allocation9 + $0x10] sm:$0xff]  ;;  %v153_v37 = vlaneseq }
  0x61   :  { %5643 = vmatprep.subr.mxu0 %v198_v0  ;;  %v308_v4 = vld [vmem:[#allocation9 + $0x18] sm:$0xff]  ;;  %v306_v7 = vld [vmem:[#allocation9 + $0x8] sm:$0xff]  ;;  %v305_v8 = vld [vmem:[#allocation9] sm:$0xff]  ;;  %vm316_vm1 = vcmask 261120   ;;  %v7859_v18 = vmov 0.0   ;;  %s6158_s13 = smov 96  }
  0x62   :  { %5644 = vmatpush3.msra.mxu0 %v198_v0  ;;  %5651 = vmatprep.subr.mxu1 %v308_v4  ;;  %v5245_v10 = vld [vmem:[#allocation6] ss:$0 sm:$0xff]  ;;  %v560_v20 = vld [vmem:[%s7845_s10 + $0xf0] sm:$0xff]  ;;  %v557_v21 = vld [vmem:[%s7845_s10 + $0xd8] sm:$0xff]  ;;  %v6358_v38 = vshrl.u32 %v153_v37, 7  ;;  %vm1090_vm8 = vcmask 130048  }
  0x63   :  { %5652 = vmatpush3.msra.mxu1 %v308_v4  ;;  %v558_v19 = vld [vmem:[%s7845_s10 + $0xe0] sm:$0xff]  ;;  %v559_v22 = vld [vmem:[%s7845_s10 + $0xe8] sm:$0xff]  ;;  %v549_v23 = vld [vmem:[%s7845_s10 + $0x98] sm:$0xff]  ;;  %s7874_s19 = sld [smem:[#allocation30_spill]] }
  0x64   :  { %5653 = vmatprep.subr.mxu1 %v307_v6  ;;  %651 = vmatprep.subr.mxu0 %v558_v19  ;;  %v551_v24 = vld [vmem:[%s7845_s10 + $0xa8] sm:$0xff]  ;;  %v548_v25 = vld [vmem:[%s7845_s10 + $0x90] sm:$0xff]  ;;  %v550_v26 = vld [vmem:[%s7845_s10 + $0xa0] sm:$0xff]  ;;  %v6361_v39 = vsub.s32 3, %v6358_v38  ;;  %v6364_v42 = vsub.s32 0, %v6358_v38  ;;  %v6367_v43 = vsub.s32 1, %v6358_v38 }
  0x65   :  { %5654 = vmatpush3.msra.mxu1 %v307_v6  ;;  %v540_v27 = vld [vmem:[%s7845_s10 + $0x50] sm:$0xff]  ;;  %v542_v28 = vld [vmem:[%s7845_s10 + $0x60] sm:$0xff]  ;;  %v539_v29 = vld [vmem:[%s7845_s10 + $0x48] sm:$0xff]  ;;  %vm158_vm2 = vcmp.ge.s32.totalorder %v6358_v38, 2  ;;  %vm170_vm3 = vcmp.ge.s32.totalorder %v6358_v38, 4  ;;  %v6372_v45 = vsub.s32 2, %v6358_v38 }
  0x66   :  { %v194_v1 = vld [vmem:[%s7868_s27] sm:$0xff]  ;;  %v195_v2 = vld [vmem:[%s7868_s27 + $0x8] sm:$0xff]  ;;  %v196_v3 = vld [vmem:[%s7868_s27 + $0x10] sm:$0xff]  ;;  %5655 = vmatprep.subr.mxu1 %v306_v7  ;;  %vm182_vm4 = vcmp.ge.s32.totalorder %v6358_v38, 6  ;;  %vm427_vm5 = vcmp.lt.s32.totalorder %v6358_v38, 6  ;;  %vm452_vm6 = vcmp.lt.s32.totalorder %v6358_v38, 4 }
  0x67   :  { %5645 = vmatprep.mubr.msk.f32.mxu0 %vm206_vm0, %v194_v1  ;;  %v197_v5 = vld [vmem:[%s7868_s27 + $0x18] sm:$0xff]  ;;  %5656 = vmatpush3.msra.mxu1 %v306_v7  ;;  %v531_v31 = vld [vmem:[%s7845_s10 + $0x8] sm:$0xff]  ;;  %v530_v33 = vld [vmem:[%s7845_s10] sm:$0xff]  ;;  %vm477_vm7 = vcmp.lt.s32.totalorder %v6358_v38, 2  ;;  %v6391_v52 = vsel %vm158_vm2, 1.0, %v7859_v18  ;;  %v6394_v53 = vsel %vm170_vm3, 1.0, %v7859_v18 }
  0x68   :  { %5646 = vmatmul.mubr.msk.f32.vlgmr.msra.gmra.mxu0 %vm206_vm0, %v195_v2  ;;  %5657 = vmatprep.subr.mxu1 %v305_v8  ;;  %v541_v30 = vld [vmem:[%s7845_s10 + $0x58] sm:$0xff]  ;;  %v532_v34 = vld [vmem:[%s7845_s10 + $0x10] sm:$0xff]  ;;  %v562_v35 = vld [vmem:[%s7845_s10 + $0x100] sm:$0xff]  ;;  %7869 = vst [vmem:[#allocation24_spill] sm:$0xff] %v6391_v52  ;;  %v6400_v56 = vsel %vm182_vm4, 1.0, %v7859_v18  ;;  %vm6159_vm2 = vmmov 0  }
  0x69   :  { %5648 = vmatprep.mubr.msk.f32.mxu0 %vm206_vm0, %v196_v3  ;;  %5658 = vmatpush3.msra.mxu1 %v305_v8  ;;  %v533_v32 = vld [vmem:[%s7845_s10 + $0x18] sm:$0xff]  ;;  %v564_v36 = vld [vmem:[%s7845_s10 + $0x110] sm:$0xff]  ;;  %v5250_v40 = vld [vmem:[#allocation11] ss:$0 sm:$0xff]  ;;  %7870 = vst [vmem:[#allocation25_spill] sm:$0xff] %v6394_v53  ;;  %s7887_s11 = sld [smem:[#allocation29_spill]] }
  0x6a   :  { %740 = vmatprep.subr.mxu1 %v560_v20  ;;  %652 = vmatpush1.msra.mxu0 %v557_v21  ;;  %v414_v41 = vld [vmem:[#allocation12] sm:$0xf]  ;;  %v6384_v50 = vld [vmem:[%s7844_s9] sm:$0x7]  ;;  %7871 = vst [vmem:[#allocation26_spill] sm:$0xff] %v6400_v56  ;;  %vm5222_vm3 = vcmask 17408  }
  0x6b   :  { %653 = vmatprep.subr.mxu0 %v549_v23  ;;  %v418_v47 = vrot.slane %v414_v41, %v6361_v39  ;;  %v439_v49 = vrot.slane %v414_v41, %v6364_v42  ;;  %v6387_v51 = vrot.slane %v414_v41, %v6367_v43  ;;  %v6403_v58 = vrot.slane %v414_v41, %v6372_v45 }
  0x6c   :  { %5649 = vmatmul.mubr.msk.f32.gmra.mxu0 %vm206_vm0, %v197_v5  ;;  %v6411_v62 = vrot.slane %v6384_v50, %v6364_v42 }
  0x6d   :  { %691 = vmatprep.mubr.f32.mxu0 %v7859_v18  ;;  %654 = vmatpush1.msra.mxu0 %v548_v25 }
  0x6e   :  { %655 = vmatprep.subr.mxu0 %v540_v27 }
  0x6f   :  { %656 = vmatpush1.msra.mxu0 %v539_v29 }
  0x70   :  { %657 = vmatprep.subr.mxu0 %v531_v31 }
  0x71   :  { %658 = vmatpush1.msra.mxu0 %v530_v33 }
  0x72   :  { %829 = vmatprep.subr.mxu0 %v562_v35 }
 0x128   :  { %v5647_v9 = vpop.f32.mrf.mxu0 }
 0x129   :  { %v291_v13 = vadd.f32 %v5647_v9, %v5245_v10 }
 0x12a   :  { %v285_v11 = vpop.f32.mrf.mxu0 }
 0x12b   :  { %v286_v12 = vadd.f32 %v5245_v10, %v285_v11 }
 0x12c   :  { %v5650_v14 = vpop.f32.mrf.mxu0 }
 0x12d   :  { %5659 = vmatprep.mubr.msk.f32.mxu1 %vm316_vm1, %v286_v12  ;;  %v301_v17 = vadd.f32 %v5650_v14, %v5245_v10 }
 0x12e   :  { %v295_v15 = vpop.f32.mrf.mxu0  ;;  %5660 = vmatmul.mubr.msk.f32.vlgmr.msra.gmra.mxu1 %vm316_vm1, %v291_v13 }
 0x12f   :  { %v296_v16 = vadd.f32 %v5245_v10, %v295_v15  ;;  %741 = vmatpush1.msra.mxu1 %v559_v22 }
 0x130   :  { %742 = vmatprep.subr.mxu1 %v551_v24 }
 0x131   :  { %5662 = vmatprep.mubr.msk.f32.mxu1 %vm316_vm1, %v296_v16  ;;  %743 = vmatpush1.msra.mxu1 %v550_v26 }
 0x132   :  { %5663 = vmatmul.mubr.msk.f32.gmra.mxu1 %vm316_vm1, %v301_v17  ;;  %744 = vmatprep.subr.mxu1 %v542_v28 }
 0x133   :  { %780 = vmatprep.mubr.f32.mxu1 %v7859_v18  ;;  %745 = vmatpush1.msra.mxu1 %v541_v30 }
 0x134   :  { %746 = vmatprep.subr.mxu1 %v533_v32 }
 0x135   :  { %747 = vmatpush1.msra.mxu1 %v532_v34 }
 0x136   :  { %918 = vmatprep.subr.mxu1 %v564_v36 }
 0x1ee   :  { %v5661_v44 = vpop.f32.mrf.mxu1 }
 0x1ef   :  { %v6374_v46 = vadd.f32 %v5661_v44, %v5250_v40 }
 0x1f0   :  { %v395_v48 = vpop.f32.mrf.mxu1 }
 0x1f1   :  { %v2499_v54 = vsub.f32 0.0, %v6374_v46  ;;  %v6397_v55 = vadd.f32 %v5250_v40, %v395_v48  ;;  %v420_v59 = vmul.f32 %v418_v47, %v6374_v46  ;;  %v424_v60 = vrot.slane %v6374_v46, 2 }
 0x1f2   :  { %v5664_v57 = vpop.f32.mrf.mxu1  ;;  %v449_v63 = vrot.slane %v6374_v46, 4  ;;  %v474_v3 = vrot.slane %v6374_v46, 6 }
 0x1f3   :  { %v6407_v61 = vadd.f32 %v5664_v57, %v5250_v40  ;;  %v2504_v0 = vmul.f32 1.442695, %v2499_v54  ;;  %v423_v1 = vrot.slane %v6397_v55, 2  ;;  %v448_v2 = vrot.slane %v6397_v55, 4 }
 0x1f4   :  { %v419_v4 = vmul.f32 %v418_v47, %v6397_v55  ;;  %v2498_v5 = vsub.f32 0.0, %v6397_v55  ;;  %v473_v8 = vrot.slane %v6397_v55, 6  ;;  %v405_v10 = vpop.f32.mrf.mxu1 }
 0x1f5   :  { %v426_v6 = vrot.slane %v6407_v61, 2  ;;  %5798 = vpow2.f32 %v2504_v0  ;;  %v430_v7 = vsel %vm427_vm5, %v423_v1, %v424_v60  ;;  %v451_v9 = vrot.slane %v6407_v61, 4 }
 0x1f6   :  { %v441_v11 = vmul.f32 %v439_v49, %v430_v7  ;;  %v455_v12 = vsel %vm452_vm6, %v448_v2, %v449_v63  ;;  %v2502_v13 = vmul.f32 1.442695, %v2498_v5  ;;  %v422_v14 = vmul.f32 %v418_v47, %v6407_v61 }
 0x1f7   :  { %v431_v15 = vsel %vm427_vm5, %v426_v6, %v423_v1  ;;  %v456_v16 = vsel %vm452_vm6, %v451_v9, %v448_v2  ;;  %v476_v17 = vrot.slane %v6407_v61, 6  ;;  %v2501_v19 = vsub.f32 0.0, %v6407_v61 }
 0x1f8   :  { %v432_v20 = vmul.f32 %v6400_v56, %v431_v15  ;;  %v457_v21 = vmul.f32 %v6394_v53, %v456_v16  ;;  %v6435_v22 = vadd.f32 %v5250_v40, %v405_v10  ;;  %5800 = vpow2.f32 %v2502_v13 }
 0x1f9   :  { %v466_v23 = vmul.f32 %v6387_v51, %v455_v12  ;;  %v480_v24 = vsel %vm477_vm7, %v473_v8, %v474_v3  ;;  %v481_v25 = vsel %vm477_vm7, %v476_v17, %v473_v8  ;;  %v2508_v26 = vmul.f32 1.442695, %v2501_v19 }
 0x1fa   :  { %v440_v27 = vmul.f32 %v439_v49, %v432_v20  ;;  %v482_v28 = vmul.f32 %v6391_v52, %v481_v25  ;;  %v425_v29 = vrot.slane %v6435_v22, 2  ;;  %v445_v30 = vadd.f32 %v441_v11, %v420_v59 }
 0x1fb   :  { %v421_v31 = vmul.f32 %v418_v47, %v6435_v22  ;;  %v450_v32 = vrot.slane %v6435_v22, 4  ;;  %v475_v33 = vrot.slane %v6435_v22, 6  ;;  %v2500_v34 = vsub.f32 0.0, %v6435_v22 }
 0x1fc   :  { %v428_v35 = vsel %vm427_vm5, %v425_v29, %v426_v6  ;;  %v429_v36 = vsel %vm427_vm5, %v424_v60, %v425_v29  ;;  %v444_v37 = vadd.f32 %v440_v27, %v419_v4  ;;  %v465_v40 = vmul.f32 %v6387_v51, %v457_v21 }
 0x1fd   :  { %v442_v41 = vmul.f32 %v439_v49, %v429_v36  ;;  %v443_v44 = vmul.f32 %v439_v49, %v428_v35  ;;  %v453_v47 = vsel %vm452_vm6, %v450_v32, %v451_v9  ;;  %v454_v48 = vsel %vm452_vm6, %v449_v63, %v450_v32 }
 0x1fe   :  { %5802 = vpow2.f32 %v2508_v26  ;;  %v467_v54 = vmul.f32 %v6387_v51, %v454_v48  ;;  %v478_v57 = vsel %vm477_vm7, %v475_v33, %v476_v17  ;;  %v479_v59 = vsel %vm477_vm7, %v474_v3, %v475_v33 }
 0x1ff   :  { %v446_v60 = vadd.f32 %v442_v41, %v421_v31  ;;  %v2506_v0 = vmul.f32 1.442695, %v2500_v34  ;;  %v469_v1 = vadd.f32 %v465_v40, %v444_v37  ;;  %v490_v49 = vmul.f32 %v6403_v58, %v482_v28 }
 0x200   :  { %v468_v2 = vmul.f32 %v6387_v51, %v453_v47  ;;  %v470_v4 = vadd.f32 %v466_v23, %v445_v30  ;;  %v491_v5 = vmul.f32 %v6403_v58, %v480_v24  ;;  %v447_v63 = vadd.f32 %v443_v44, %v422_v14 }
 0x201   :  { %v471_v6 = vadd.f32 %v467_v54, %v446_v60  ;;  %5804 = vpow2.f32 %v2506_v0  ;;  %v494_v7 = vadd.f32 %v490_v49, %v469_v1  ;;  %v492_v8 = vmul.f32 %v6403_v58, %v479_v59  ;;  %v561_v49 = vld [vmem:[%s7845_s10 + $0xf8] sm:$0xff] }
 0x202   :  { %v5799_v9 = vpop.eup %5798  ;;  %v495_v10 = vadd.f32 %v491_v5, %v470_v4  ;;  %v472_v11 = vadd.f32 %v468_v2, %v447_v63  ;;  %v493_v3 = vmul.f32 %v6403_v58, %v478_v57  ;;  %v555_v2 = vld [vmem:[%s7845_s10 + $0xc8] sm:$0xff]  ;;  %v552_v63 = vld [vmem:[%s7845_s10 + $0xb0] sm:$0xff] }
 0x203   :  { %v2511_v12 = vadd.f32 1.0, %v5799_v9  ;;  %v502_v13 = vadd.f32 %v6411_v62, %v494_v7  ;;  %v496_v15 = vadd.f32 %v492_v8, %v471_v6  ;;  %v554_v6 = vld [vmem:[%s7845_s10 + $0xc0] sm:$0xff]  ;;  %v544_v7 = vld [vmem:[%s7845_s10 + $0x70] sm:$0xff] }
 0x204   :  { %v503_v51 = vadd.f32 %v6411_v62, %v495_v10  ;;  %v497_v16 = vadd.f32 %v493_v3, %v472_v11  ;;  %v546_v8 = vld [vmem:[%s7845_s10 + $0x80] sm:$0xff]  ;;  %v543_v11 = vld [vmem:[%s7845_s10 + $0x68] sm:$0xff]  ;;  %v545_v3 = vld [vmem:[%s7845_s10 + $0x78] sm:$0xff] }
 0x205   :  { %v5801_v17 = vpop.eup %5800  ;;  %v506_v19 = vsub.f32 0.0, %v502_v13  ;;  %v6470_v14 = vadd.f32 %v6411_v62, %v496_v15  ;;  %5806 = vrcp.f32 %v2511_v12  ;;  %v535_v12 = vld [vmem:[%s7845_s10 + $0x28] sm:$0xff] }
 0x206   :  { %v2510_v20 = vadd.f32 1.0, %v5801_v17  ;;  %v507_v21 = vsub.f32 0.0, %v503_v51  ;;  %v6473_v23 = vadd.f32 %v6411_v62, %v497_v16  ;;  %v536_v16 = vld [vmem:[%s7845_s10 + $0x30] sm:$0xff]  ;;  %v565_v17 = vld [vmem:[%s7845_s10 + $0x118] sm:$0xff] }
 0x207   :  { %v510_v24 = vmul.f32 1.442695, %v506_v19  ;;  %v508_v58 = vsub.f32 0.0, %v6470_v14  ;;  %v556_v19 = vld [vmem:[%s7845_s10 + $0xd0] sm:$0xff] }
 0x208   :  { %5808 = vrcp.f32 %v2510_v20  ;;  %v512_v25 = vmul.f32 1.442695, %v507_v21  ;;  %v509_v26 = vsub.f32 0.0, %v6473_v23  ;;  %v538_v20 = vld [vmem:[%s7845_s10 + $0x40] sm:$0xff]  ;;  %v1085_v21 = vld [vmem:[%s7847_s12 + $0x8] sm:$0xff] }
 0x209   :  { %5810 = vpow2.f32 %v510_v24  ;;  %v514_v27 = vmul.f32 1.442695, %v508_v58 }
 0x20a   :  { %5812 = vpow2.f32 %v512_v25  ;;  %v516_v29 = vmul.f32 1.442695, %v509_v26 }
 0x20b   :  { %v5803_v28 = vpop.eup %5802  ;;  %5814 = vpow2.f32 %v514_v27 }
 0x20c   :  { %v2513_v32 = vadd.f32 1.0, %v5803_v28  ;;  %5816 = vpow2.f32 %v516_v29 }
 0x20e   :  { %v5805_v30 = vpop.eup %5804 }
 0x20f   :  { %v2512_v31 = vadd.f32 1.0, %v5805_v30 }
 0x211   :  { %5818 = vrcp.f32 %v2512_v31 }
 0x212   :  { %5820 = vrcp.f32 %v2513_v32  ;;  %v5807_v62 = vpop.eup %5806 }
 0x213   :  { %v2519_v44 = vmul.f32 %v5807_v62, %v6374_v46 }
 0x215   :  { %v5809_v33 = vpop.eup %5808 }
 0x216   :  { %v5811_v34 = vpop.eup %5810  ;;  %v2518_v35 = vmul.f32 %v5809_v33, %v6397_v55 }
 0x217   :  { %v5813_v36 = vpop.eup %5812  ;;  %v518_v37 = vadd.f32 1.0, %v5811_v34 }
 0x218   :  { %2526 = vrot.lane.b32.xlu0 %v2518_v35, %s6158_s13  ;;  %v519_v40 = vadd.f32 1.0, %v5813_v36  ;;  %v5815_v41 = vpop.eup %5814 }
 0x219   :  { %5822 = vrcp.f32 %v518_v37  ;;  %v520_v47 = vadd.f32 1.0, %v5815_v41  ;;  %v5817_v48 = vpop.eup %5816 }
 0x21a   :  { %5824 = vrcp.f32 %v519_v40  ;;  %v521_v55 = vadd.f32 1.0, %v5817_v48 }
 0x21b   :  { %5826 = vrcp.f32 %v520_v47 }
 0x21c   :  { %2528 = vrot.lane.b32.xlu0 %v2519_v44, %s6158_s13  ;;  %5828 = vrcp.f32 %v521_v55 }
 0x21e   :  { %v5819_v54 = vpop.eup %5818 }
 0x21f   :  { %v2520_v57 = vmul.f32 %v5819_v54, %v6435_v22  ;;  %v5821_v59 = vpop.eup %5820  ;;  %v563_v22 = vld [vmem:[%s7845_s10 + $0x108] sm:$0xff] }
 0x220   :  { %v2521_v60 = vmul.f32 %v5821_v59, %v6407_v61  ;;  %v553_v61 = vld [vmem:[%s7845_s10 + $0xb8] sm:$0xff]  ;;  %v7858_v59 = vsub.s32 4, %v6358_v38 }
 0x221   :  { %2530 = vrot.lane.b32.xlu1 %v2520_v57, %s6158_s13 }
 0x225   :  { %2532 = vrot.lane.b32.xlu1 %v2521_v60, %s6158_s13  ;;  %v7857_v60 = vsub.s32 6, %v6358_v38 }
 0x226   :  { %v5823_v0 = vpop.eup %5822 }
 0x227   :  { %v6485_v46 = vmul.f32 %v5823_v0, %v502_v13  ;;  %v5825_v1 = vpop.eup %5824  ;;  %v537_v13 = vld [vmem:[%s7845_s10 + $0x38] sm:$0xff] }
 0x228   :  { %v6505_v4 = vmul.f32 %v5825_v1, %v503_v51  ;;  %v5827_v5 = vpop.eup %5826  ;;  %v534_v51 = vld [vmem:[%s7845_s10 + $0x20] sm:$0xff] }
 0x229   :  { %5256 = vmatmul.mubr.msk.f32.vlgmr.msra.gmra.mxu0 %vm316_vm1, %v6485_v46  ;;  %5260 = vmatmul.mubr.msk.f32.vlgmr.msra.gmra.mxu1 %vm316_vm1, %v6485_v46  ;;  %v6526_v9 = vmul.f32 %v5827_v5, %v6470_v14  ;;  %v5829_v10 = vpop.eup %5828  ;;  %v547_v14 = vld [vmem:[%s7845_s10 + $0x88] sm:$0xff] }
 0x22a   :  { %697 = vmatprep.mubr.f32.mxu0 %v7859_v18  ;;  %786 = vmatprep.mubr.f32.mxu1 %v7859_v18  ;;  %v6547_v15 = vmul.f32 %v5829_v10, %v6473_v23  ;;  %v1084_v23 = vld [vmem:[%s7847_s12] sm:$0xff] }
 0x22b   :  { %830 = vmatpush1.msra.mxu0 %v561_v49  ;;  %919 = vmatpush1.msra.mxu1 %v563_v22  ;;  %v7856_v49 = vsub.s32 5, %v6358_v38  ;;  %v6665_v22 = vld [vmem:[#allocation14] sm:$0xff] }
 0x22c   :  { %831 = vmatprep.subr.mxu0 %v553_v61  ;;  %920 = vmatprep.subr.mxu1 %v555_v2  ;;  %v6674_v5 = vrot.slane %v6665_v22, %v7858_v59 }
 0x22d   :  { %5257 = vmatmul.mubr.msk.f32.gmra.mxu0 %vm316_vm1, %v6505_v4  ;;  %5261 = vmatmul.mubr.msk.f32.gmra.mxu1 %vm316_vm1, %v6505_v4 }
 0x22e   :  { %703 = vmatprep.mubr.f32.mxu0 %v7859_v18  ;;  %792 = vmatprep.mubr.f32.mxu1 %v7859_v18 }
 0x22f   :  { %832 = vmatpush1.msra.mxu0 %v552_v63  ;;  %921 = vmatpush1.msra.mxu1 %v554_v6  ;;  %v6679_v63 = vrot.slane %v6665_v22, %v7857_v60 }
 0x230   :  { %833 = vmatprep.subr.mxu0 %v544_v7  ;;  %922 = vmatprep.subr.mxu1 %v546_v8  ;;  %v6684_v8 = vrot.slane %v6665_v22, %v7856_v49 }
 0x231   :  { %5258 = vmatmul.mubr.msk.f32.gmra.mxu0 %vm316_vm1, %v6526_v9  ;;  %5262 = vmatmul.mubr.msk.f32.gmra.mxu1 %vm316_vm1, %v6526_v9 }
 0x232   :  { %709 = vmatprep.mubr.f32.mxu0 %v7859_v18  ;;  %798 = vmatprep.mubr.f32.mxu1 %v7859_v18 }
 0x233   :  { %834 = vmatpush1.msra.mxu0 %v543_v11  ;;  %923 = vmatpush1.msra.mxu1 %v545_v3 }
 0x234   :  { %835 = vmatprep.subr.mxu0 %v535_v12  ;;  %924 = vmatprep.subr.mxu1 %v537_v13 }
 0x235   :  { %5259 = vmatmul.mubr.msk.f32.gmra.mxu0 %vm316_vm1, %v6547_v15  ;;  %5263 = vmatmul.mubr.msk.f32.gmra.mxu1 %vm316_vm1, %v6547_v15 }
 0x236   :  { %836 = vmatpush1.msra.mxu0 %v534_v51  ;;  %869 = vmatprep.mubr.f32.mxu0 %v7859_v18  ;;  %v5255_v51 = vld [vmem:[#allocation14 + $0x8] ss:$0 sm:$0xff] }
 0x237   :  { %925 = vmatpush1.msra.mxu1 %v536_v16  ;;  %958 = vmatprep.mubr.f32.mxu1 %v7859_v18 }
 0x238   :  { %5665 = vmatprep.subr.mxu0 %v565_v17  ;;  %5679 = vmatprep.subr.mxu1 %v1085_v21 }
 0x239   :  { %5264 = vmatmul.mubr.msk.f32.vlgmr.msra.gmra.mxu0 %vm316_vm1, %v6485_v46  ;;  %5268 = vmatmul.mubr.msk.f32.vlgmr.msra.gmra.mxu1 %vm316_vm1, %v6485_v46 }
 0x23a   :  { %875 = vmatprep.mubr.f32.mxu0 %v7859_v18  ;;  %964 = vmatprep.mubr.f32.mxu1 %v7859_v18 }
 0x23b   :  { %5666 = vmatpush3.msra.mxu0 %v565_v17  ;;  %5680 = vmatpush3.msra.mxu1 %v1085_v21 }
 0x23c   :  { %5667 = vmatprep.subr.mxu0 %v556_v19  ;;  %5681 = vmatprep.subr.mxu1 %v1084_v23 }
 0x23d   :  { %5265 = vmatmul.mubr.msk.f32.gmra.mxu0 %vm316_vm1, %v6505_v4  ;;  %5269 = vmatmul.mubr.msk.f32.gmra.mxu1 %vm316_vm1, %v6505_v4 }
 0x23e   :  { %881 = vmatprep.mubr.f32.mxu0 %v7859_v18  ;;  %970 = vmatprep.mubr.f32.mxu1 %v7859_v18 }
 0x23f   :  { %5668 = vmatpush3.msra.mxu0 %v556_v19  ;;  %5682 = vmatpush3.msra.mxu1 %v1084_v23 }
 0x240   :  { %5669 = vmatprep.subr.mxu0 %v547_v14 }
 0x241   :  { %5266 = vmatmul.mubr.msk.f32.gmra.mxu0 %vm316_vm1, %v6526_v9  ;;  %5270 = vmatmul.mubr.msk.f32.gmra.mxu1 %vm316_vm1, %v6526_v9 }
 0x242   :  { %887 = vmatprep.mubr.f32.mxu0 %v7859_v18  ;;  %976 = vmatprep.mubr.f32.mxu1 %v7859_v18 }
 0x243   :  { %5670 = vmatpush3.msra.mxu0 %v547_v14 }
 0x244   :  { %5671 = vmatprep.subr.mxu0 %v538_v20 }
 0x245   :  { %5267 = vmatmul.mubr.msk.f32.gmra.mxu0 %vm316_vm1, %v6547_v15  ;;  %5271 = vmatmul.mubr.msk.f32.gmra.mxu1 %vm316_vm1, %v6547_v15 }
 0x246   :  { %5673 = vmatprep.mubr.msk.f32.mxu0 %vm316_vm1, %v6485_v46  ;;  %5672 = vmatpush3.msra.mxu0 %v538_v20 }
 0x249   :  { %5674 = vmatmul.mubr.msk.f32.vlgmr.msra.gmra.mxu0 %vm316_vm1, %v6505_v4 }
 0x24a   :  { %5676 = vmatprep.mubr.msk.f32.mxu0 %vm316_vm1, %v6526_v9 }
 0x24d   :  { %5677 = vmatmul.mubr.msk.f32.gmra.mxu0 %vm316_vm1, %v6547_v15 }
 0x24e   :  { %1312 = vmatprep.mubr.f32.mxu0 %v7859_v18 }
 0x2e9   :  { %v6610_v24 = vpop.f32.mrf.mxu0  ;;  %v6612_v58 = vpop.f32.mrf.mxu1 }
 0x2eb   :  { %v6614_v25 = vpop.f32.mrf.mxu0  ;;  %v6616_v26 = vpop.f32.mrf.mxu1 }
 0x2ed   :  { %v6618_v27 = vpop.f32.mrf.mxu0  ;;  %v6620_v28 = vpop.f32.mrf.mxu1 }
 0x2ef   :  { %v6622_v29 = vpop.f32.mrf.mxu0  ;;  %v6624_v30 = vpop.f32.mrf.mxu1 }
 0x2f1   :  { %v6626_v31 = vpop.f32.mrf.mxu0  ;;  %v6628_v32 = vpop.f32.mrf.mxu1 }
 0x2f3   :  { %v6630_v62 = vpop.f32.mrf.mxu0  ;;  %v6632_v33 = vpop.f32.mrf.mxu1 }
 0x2f5   :  { %v6634_v34 = vpop.f32.mrf.mxu0  ;;  %v6636_v35 = vpop.f32.mrf.mxu1 }
 0x2f7   :  { %v6638_v36 = vpop.f32.mrf.mxu0  ;;  %v6640_v37 = vpop.f32.mrf.mxu1 }
 0x2f9   :  { %v6642_v40 = vpop.f32.mrf.mxu0  ;;  %v6644_v41 = vpop.f32.mrf.mxu1 }
 0x2fb   :  { %v6646_v44 = vpop.f32.mrf.mxu0  ;;  %v6648_v47 = vpop.f32.mrf.mxu1 }
 0x2fd   :  { %v6650_v48 = vpop.f32.mrf.mxu0  ;;  %v6652_v54 = vpop.f32.mrf.mxu1 }
 0x2ff   :  { %v6654_v57 = vpop.f32.mrf.mxu0  ;;  %v6656_v55 = vpop.f32.mrf.mxu1 }
 0x301   :  { %v6660_v0 = vpop.f32.mrf.mxu0  ;;  %v6662_v1 = vpop.f32.mrf.mxu1 }
 0x303   :  { %v6667_v61 = vpop.f32.mrf.mxu0  ;;  %v6669_v2 = vpop.f32.mrf.mxu1 }
 0x305   :  { %v889_v6 = vpop.f32.mrf.mxu0  ;;  %v978_v7 = vpop.f32.mrf.mxu1 }
 0x306   :  { %v6687_v10 = vadd.f32 %v889_v6, %v6674_v5  ;;  %v6690_v11 = vadd.f32 %v978_v7, %v6679_v63  ;;  %v1233_v6 = vld [vmem:[#allocation15 + $0x68] sm:$0xff]  ;;  %v1235_v7 = vld [vmem:[#allocation15 + $0x78] sm:$0xff] }
 0x307   :  { %v891_v3 = vpop.f32.mrf.mxu0  ;;  %1272 = vmatprep.subr.mxu0 %v1233_v6  ;;  %1361 = vmatprep.subr.mxu1 %v1235_v7  ;;  %v1221_v6 = vld [vmem:[#allocation15 + $0x8] sm:$0xff]  ;;  %v1223_v7 = vld [vmem:[#allocation15 + $0x18] sm:$0xff] }
 0x308   :  { %7872 = vst [vmem:[#allocation27_spill] sm:$0xff] %v6690_v11  ;;  %v6693_v12 = vadd.f32 %v891_v3, %v6684_v8  ;;  %v1232_v3 = vld [vmem:[#allocation15 + $0x60] sm:$0xff] }
 0x309   :  { %v5675_v13 = vpop.f32.mrf.mxu0  ;;  %1273 = vmatpush1.msra.mxu0 %v1232_v3  ;;  %v1220_v3 = vld [vmem:[#allocation15] sm:$0xff] }
 0x30a   :  { %v1055_v19 = vadd.f32 %v5675_v13, %v5255_v51  ;;  %v1234_v13 = vld [vmem:[#allocation15 + $0x70] sm:$0xff] }
 0x30b   :  { %v1049_v16 = vpop.f32.mrf.mxu0 }
 0x30c   :  { %v1050_v17 = vadd.f32 %v5255_v51, %v1049_v16  ;;  %v1229_v16 = vld [vmem:[#allocation15 + $0x48] sm:$0xff] }
 0x30d   :  { %v5678_v14 = vpop.f32.mrf.mxu0  ;;  %1274 = vmatprep.subr.mxu0 %v1229_v16  ;;  %v1491_v16 = vld [vmem:[%s7838_s3 + $0x68] sm:$0xff] }
 0x30e   :  { %5683 = vmatprep.mubr.msk.f32.mxu1 %vm1090_vm8, %v1050_v17  ;;  %v1065_v23 = vadd.f32 %v5678_v14, %v5255_v51  ;;  %v1231_v17 = vld [vmem:[#allocation15 + $0x58] sm:$0xff]  ;;  %v1225_v14 = vld [vmem:[#allocation15 + $0x28] sm:$0xff] }
 0x30f   :  { %v1059_v20 = vpop.f32.mrf.mxu0  ;;  %5684 = vmatmul.mubr.msk.f32.vlgmr.msra.gmra.mxu1 %vm1090_vm8, %v1055_v19  ;;  %v1228_v19 = vld [vmem:[#allocation15 + $0x40] sm:$0xff] }
 0x310   :  { %v1060_v21 = vadd.f32 %v5255_v51, %v1059_v20  ;;  %1362 = vmatpush1.msra.mxu1 %v1234_v13  ;;  %v1230_v51 = vld [vmem:[#allocation15 + $0x50] sm:$0xff]  ;;  %1275 = vmatpush1.msra.mxu0 %v1228_v19  ;;  %v1227_v20 = vld [vmem:[#allocation15 + $0x38] sm:$0xff]  ;;  %v1089_v19 = vrot.slane %v6384_v50, %v6367_v43 }
 0x311   :  { %1363 = vmatprep.subr.mxu1 %v1231_v17  ;;  %1276 = vmatprep.subr.mxu0 %v1225_v14  ;;  %v1222_v13 = vld [vmem:[#allocation15 + $0x10] sm:$0xff]  ;;  %v1493_v17 = vld [vmem:[%s7838_s3 + $0x78] sm:$0xff] }
 0x312   :  { %5686 = vmatprep.mubr.msk.f32.mxu1 %vm1090_vm8, %v1060_v21  ;;  %1364 = vmatpush1.msra.mxu1 %v1230_v51  ;;  %v1224_v21 = vld [vmem:[#allocation15 + $0x20] sm:$0xff]  ;;  %v6708_v51 = vpop.f32.mrf.mxu1 }
 0x313   :  { %5687 = vmatmul.mubr.msk.f32.gmra.mxu1 %vm1090_vm8, %v1065_v23  ;;  %1365 = vmatprep.subr.mxu1 %v1227_v20  ;;  %v1226_v23 = vld [vmem:[#allocation15 + $0x30] sm:$0xff] }
 0x314   :  { %1401 = vmatprep.mubr.f32.mxu1 %v7859_v18  ;;  %1277 = vmatpush1.msra.mxu0 %v1224_v21 }
 0x315   :  { %1366 = vmatpush1.msra.mxu1 %v1226_v23  ;;  %1278 = vmatprep.subr.mxu0 %v1221_v6 }
 0x316   :  { %1367 = vmatprep.subr.mxu1 %v1223_v7  ;;  %1279 = vmatpush1.msra.mxu0 %v1220_v3 }
 0x317   :  { %1368 = vmatpush1.msra.mxu1 %v1222_v13  ;;  %1530 = vmatprep.subr.mxu0 %v1491_v16 }
 0x318   :  { %1619 = vmatprep.subr.mxu1 %v1493_v17 }
 0x3cf   :  { %v5685_v14 = vpop.f32.mrf.mxu1 }
 0x3d0   :  { %v1175_v20 = vadd.f32 %v5685_v14, %v1089_v19 }
 0x3d1   :  { %v1169_v21 = vpop.f32.mrf.mxu1 }
 0x3d2   :  { %v1189_v23 = vmin.f32 %v1175_v20, 20.0  ;;  %v1170_v6 = vadd.f32 %v1169_v21, %v1089_v19  ;;  %vm1201_vm10 = vcmp.gt.f32.partialorder %v1175_v20, 20.0 }
 0x3d3   :  { %v5688_v7 = vpop.f32.mrf.mxu1 }
 0x3d4   :  { %v1194_v3 = vmul.f32 1.442695, %v1189_v23  ;;  %v1188_v13 = vmin.f32 %v1170_v6, 20.0  ;;  %v6710_v49 = vadd.f32 %v5688_v7, %v1089_v19  ;;  %vm1200_vm9 = vcmp.gt.f32.partialorder %v1170_v6, 20.0 }
 0x3d5   :  { %v1179_v60 = vpop.f32.mrf.mxu1 }
 0x3d6   :  { %5830 = vpow2.f32 %v1194_v3  ;;  %v1192_v59 = vmul.f32 1.442695, %v1188_v13  ;;  %v1191_v16 = vmin.f32 %v6710_v49, 20.0  ;;  %v1180_v17 = vadd.f32 %v1179_v60, %v1089_v19 }
 0x3d7   :  { %vm1203_vm12 = vcmp.gt.f32.partialorder %v6710_v49, 20.0 }
 0x3d8   :  { %5832 = vpow2.f32 %v1192_v59  ;;  %v1198_v50 = vmul.f32 1.442695, %v1191_v16  ;;  %v1190_v18 = vmin.f32 %v1180_v17, 20.0  ;;  %v7873_v16 = vmov 0.0  }
 0x3d9   :  { %vm1202_vm11 = vcmp.gt.f32.partialorder %v1180_v17, 20.0 }
 0x3da   :  { %v1196_v52 = vmul.f32 1.442695, %v1190_v18  ;;  %5834 = vpow2.f32 %v1198_v50 }
 0x3dc   :  { %5836 = vpow2.f32 %v1196_v52  ;;  %v1490_v52 = vld [vmem:[%s7838_s3 + $0x60] sm:$0xff] }
 0x3e3   :  { %v5831_v14 = vpop.eup %5830 }
 0x3e4   :  { %v1205_v53 = vadd.f32 1.0, %v5831_v14 }
 0x3e5   :  { %v5833_v21 = vpop.eup %5832 }
 0x3e6   :  { %v1204_v56 = vadd.f32 1.0, %v5833_v21  ;;  %5838 = vlog2.f32 %v1205_v53  ;;  %v1492_v53 = vld [vmem:[%s7838_s3 + $0x70] sm:$0xff]  ;;  %v1486_v21 = vld [vmem:[%s7838_s3 + $0x40] sm:$0xff] }
 0x3e7   :  { %v5835_v23 = vpop.eup %5834 }
 0x3e8   :  { %5840 = vlog2.f32 %v1204_v56  ;;  %v1207_v3 = vadd.f32 1.0, %v5835_v23  ;;  %v1487_v56 = vld [vmem:[%s7838_s3 + $0x48] sm:$0xff]  ;;  %v1488_v23 = vld [vmem:[%s7838_s3 + $0x50] sm:$0xff] }
 0x3e9   :  { %v5837_v7 = vpop.eup %5836 }
 0x3ea   :  { %v1206_v11 = vadd.f32 1.0, %v5837_v7 }
 0x3ec   :  { %5842 = vlog2.f32 %v1206_v11  ;;  %v1489_v11 = vld [vmem:[%s7838_s3 + $0x58] sm:$0xff] }
 0x3ed   :  { %5844 = vlog2.f32 %v1207_v3  ;;  %v1485_v3 = vld [vmem:[%s7838_s3 + $0x38] sm:$0xff] }
 0x3f3   :  { %v5839_v13 = vpop.eup %5838 }
 0x3f4   :  { %v1211_v18 = vmul.f32 0.6931472, %v5839_v13 }
 0x3f5   :  { %v5841_v60 = vpop.eup %5840 }
 0x3f6   :  { %v1209_v59 = vmul.f32 0.6931472, %v5841_v60  ;;  %v1217_v50 = vsel %vm1201_vm10, %v1175_v20, %v1211_v18  ;;  %v1483_v20 = vld [vmem:[%s7838_s3 + $0x28] sm:$0xff]  ;;  %v1484_v18 = vld [vmem:[%s7838_s3 + $0x30] sm:$0xff] }
 0x3f8   :  { %v1216_v19 = vsel %vm1200_vm9, %v1170_v6, %v1209_v59  ;;  %v1482_v59 = vld [vmem:[%s7838_s3 + $0x20] sm:$0xff] }
 0x3f9   :  { %5280 = vmatmul.mubr.msk.f32.vlgmr.msra.gmra.mxu0 %vm316_vm1, %v1216_v19  ;;  %5284 = vmatmul.mubr.msk.f32.vlgmr.msra.gmra.mxu1 %vm316_vm1, %v1216_v19  ;;  %v5843_v6 = vpop.eup %5842 }
 0x3fa   :  { %1318 = vmatprep.mubr.f32.mxu0 %v7873_v16  ;;  %1407 = vmatprep.mubr.f32.mxu1 %v7873_v16  ;;  %v1213_v14 = vmul.f32 0.6931472, %v5843_v6  ;;  %v5845_v7 = vpop.eup %5844  ;;  %v1474_v6 = vmul.f32 %v1216_v19, %v6485_v46  ;;  %v2295_v19 = vld [vmem:[%s7874_s19 + $0xf8] sm:$0xff] }
 0x3fb   :  { %1531 = vmatpush1.msra.mxu0 %v1490_v52  ;;  %1620 = vmatpush1.msra.mxu1 %v1492_v53  ;;  %v1215_v60 = vmul.f32 0.6931472, %v5845_v7  ;;  %v1479_v52 = vld [vmem:[%s7838_s3 + $0x8] sm:$0xff]  ;;  %v1478_v53 = vld [vmem:[%s7838_s3] sm:$0xff]  ;;  %v2310_v7 = vld [vmem:[%s7874_s19 + $0x170] sm:$0xff] }
 0x3fc   :  { %1532 = vmatprep.subr.mxu0 %v1487_v56  ;;  %1621 = vmatprep.subr.mxu1 %v1489_v11  ;;  %v1218_v13 = vsel %vm1202_vm11, %v1180_v17, %v1213_v14  ;;  %v1481_v17 = vld [vmem:[%s7838_s3 + $0x18] sm:$0xff]  ;;  %v1480_v11 = vld [vmem:[%s7838_s3 + $0x10] sm:$0xff] }
 0x3fd   :  { %5281 = vmatmul.mubr.msk.f32.gmra.mxu0 %vm316_vm1, %v1217_v50  ;;  %5285 = vmatmul.mubr.msk.f32.gmra.mxu1 %vm316_vm1, %v1217_v50  ;;  %v1219_v56 = vsel %vm1203_vm12, %v6710_v49, %v1215_v60  ;;  %v1475_v49 = vmul.f32 %v1217_v50, %v6505_v4  ;;  %v1476_v46 = vmul.f32 %v1218_v13, %v6526_v9  ;;  %v2327_v9 = vld [vmem:[%s7874_s19 + $0x1f8] sm:$0xff]  ;;  %v2294_v14 = vld [vmem:[%s7874_s19 + $0xf0] sm:$0xff]  ;;  %v2309_v60 = vld [vmem:[%s7874_s19 + $0x168] sm:$0xff] }
 0x3fe   :  { %1324 = vmatprep.mubr.f32.mxu0 %v7873_v16  ;;  %1413 = vmatprep.mubr.f32.mxu1 %v7873_v16  ;;  %v1477_v4 = vmul.f32 %v1219_v56, %v6547_v15  ;;  %v2279_v50 = vld [vmem:[%s7874_s19 + $0x78] sm:$0xff] }
 0x3ff   :  { %1533 = vmatpush1.msra.mxu0 %v1486_v21  ;;  %1622 = vmatpush1.msra.mxu1 %v1488_v23  ;;  %v2311_v15 = vld [vmem:[%s7874_s19 + $0x178] sm:$0xff]  ;;  %v2326_v21 = vld [vmem:[%s7874_s19 + $0x1f0] sm:$0xff] }
 0x400   :  { %1534 = vmatprep.subr.mxu0 %v1483_v20  ;;  %1623 = vmatprep.subr.mxu1 %v1485_v3  ;;  %v2278_v23 = vld [vmem:[%s7874_s19 + $0x70] sm:$0xff]  ;;  %v2293_v20 = vld [vmem:[%s7874_s19 + $0xe8] sm:$0xff] }
 0x401   :  { %5282 = vmatmul.mubr.msk.f32.gmra.mxu0 %vm316_vm1, %v1218_v13  ;;  %5286 = vmatmul.mubr.msk.f32.gmra.mxu1 %vm316_vm1, %v1218_v13  ;;  %v2325_v3 = vld [vmem:[%s7874_s19 + $0x1e8] sm:$0xff] }
 0x402   :  { %1330 = vmatprep.mubr.f32.mxu0 %v7873_v16  ;;  %1419 = vmatprep.mubr.f32.mxu1 %v7873_v16  ;;  %v2277_v13 = vld [vmem:[%s7874_s19 + $0x68] sm:$0xff] }
 0x403   :  { %1535 = vmatpush1.msra.mxu0 %v1482_v59  ;;  %1624 = vmatpush1.msra.mxu1 %v1484_v18  ;;  %v2292_v59 = vld [vmem:[%s7874_s19 + $0xe0] sm:$0xff] }
 0x404   :  { %1536 = vmatprep.subr.mxu0 %v1479_v52  ;;  %1625 = vmatprep.subr.mxu1 %v1481_v17  ;;  %v2324_v18 = vld [vmem:[%s7874_s19 + $0x1e0] sm:$0xff] }
 0x405   :  { %5283 = vmatmul.mubr.msk.f32.gmra.mxu0 %vm316_vm1, %v1219_v56  ;;  %5287 = vmatmul.mubr.msk.f32.gmra.mxu1 %vm316_vm1, %v1219_v56  ;;  %v2276_v52 = vld [vmem:[%s7874_s19 + $0x60] sm:$0xff]  ;;  %v2323_v56 = vld [vmem:[%s7874_s19 + $0x1d8] sm:$0xff] }
 0x406   :  { %1537 = vmatpush1.msra.mxu0 %v1478_v53  ;;  %1570 = vmatprep.mubr.f32.mxu0 %v7873_v16  ;;  %v2308_v17 = vld [vmem:[%s7874_s19 + $0x160] sm:$0xff]  ;;  %v2291_v53 = vld [vmem:[%s7874_s19 + $0xd8] sm:$0xff] }
 0x407   :  { %1626 = vmatpush1.msra.mxu1 %v1480_v11  ;;  %1659 = vmatprep.mubr.f32.mxu1 %v7873_v16  ;;  %v2275_v11 = vld [vmem:[%s7874_s19 + $0x58] sm:$0xff] }
 0x408   :  { %5419 = vmatprep.subr.mxu0 %v2295_v19  ;;  %5463 = vmatprep.subr.mxu1 %v2327_v9  ;;  %v2306_v19 = vld [vmem:[%s7874_s19 + $0x150] sm:$0xff]  ;;  %v2289_v9 = vld [vmem:[%s7874_s19 + $0xc8] sm:$0xff] }
 0x409   :  { %5288 = vmatmul.mubr.msk.f32.vlgmr.msra.gmra.mxu0 %vm316_vm1, %v1474_v6  ;;  %5292 = vmatmul.mubr.msk.f32.vlgmr.msra.gmra.mxu1 %vm316_vm1, %v1474_v6  ;;  %v2307_v6 = vld [vmem:[%s7874_s19 + $0x158] sm:$0xff] }
 0x40a   :  { %1576 = vmatprep.mubr.f32.mxu0 %v7873_v16  ;;  %1665 = vmatprep.mubr.f32.mxu1 %v7873_v16 }
 0x40b   :  { %5420 = vmatpush3.msra.mxu0 %v2279_v50  ;;  %5464 = vmatpush3.msra.mxu1 %v2311_v15  ;;  %v2321_v50 = vld [vmem:[%s7874_s19 + $0x1c8] sm:$0xff] }
 0x40c   :  { %5421 = vmatprep.subr.mxu0 %v2294_v14  ;;  %5465 = vmatprep.subr.mxu1 %v2326_v21  ;;  %v2273_v15 = vld [vmem:[%s7874_s19 + $0x48] sm:$0xff]  ;;  %v2288_v21 = vld [vmem:[%s7874_s19 + $0xc0] sm:$0xff] }
 0x40d   :  { %5289 = vmatmul.mubr.msk.f32.gmra.mxu0 %vm316_vm1, %v1475_v49  ;;  %5293 = vmatmul.mubr.msk.f32.gmra.mxu1 %vm316_vm1, %v1475_v49  ;;  %v2290_v49 = vld [vmem:[%s7874_s19 + $0xd0] sm:$0xff]  ;;  %v2305_v14 = vld [vmem:[%s7874_s19 + $0x148] sm:$0xff] }
 0x40e   :  { %1582 = vmatprep.mubr.f32.mxu0 %v7873_v16  ;;  %1671 = vmatprep.mubr.f32.mxu1 %v7873_v16 }
 0x40f   :  { %5422 = vmatpush3.msra.mxu0 %v2278_v23  ;;  %5466 = vmatpush3.msra.mxu1 %v2310_v7  ;;  %v2320_v23 = vld [vmem:[%s7874_s19 + $0x1c0] sm:$0xff] }
 0x410   :  { %5423 = vmatprep.subr.mxu0 %v2293_v20  ;;  %5467 = vmatprep.subr.mxu1 %v2325_v3  ;;  %v2272_v7 = vld [vmem:[%s7874_s19 + $0x40] sm:$0xff]  ;;  %v2287_v3 = vld [vmem:[%s7874_s19 + $0xb8] sm:$0xff] }
 0x411   :  { %5290 = vmatmul.mubr.msk.f32.gmra.mxu0 %vm316_vm1, %v1476_v46  ;;  %5294 = vmatmul.mubr.msk.f32.gmra.mxu1 %vm316_vm1, %v1476_v46  ;;  %v2322_v46 = vld [vmem:[%s7874_s19 + $0x1d0] sm:$0xff]  ;;  %v2304_v20 = vld [vmem:[%s7874_s19 + $0x140] sm:$0xff] }
 0x412   :  { %1588 = vmatprep.mubr.f32.mxu0 %v7873_v16  ;;  %1677 = vmatprep.mubr.f32.mxu1 %v7873_v16 }
 0x413   :  { %5424 = vmatpush3.msra.mxu0 %v2277_v13  ;;  %5468 = vmatpush3.msra.mxu1 %v2309_v60  ;;  %v2319_v13 = vld [vmem:[%s7874_s19 + $0x1b8] sm:$0xff] }
 0x414   :  { %5425 = vmatprep.subr.mxu0 %v2292_v59  ;;  %5469 = vmatprep.subr.mxu1 %v2324_v18  ;;  %v2271_v60 = vld [vmem:[%s7874_s19 + $0x38] sm:$0xff]  ;;  %v2286_v18 = vld [vmem:[%s7874_s19 + $0xb0] sm:$0xff] }
 0x415   :  { %5291 = vmatmul.mubr.msk.f32.gmra.mxu0 %vm316_vm1, %v1477_v4  ;;  %5295 = vmatmul.mubr.msk.f32.gmra.mxu1 %vm316_vm1, %v1477_v4  ;;  %v2274_v4 = vld [vmem:[%s7874_s19 + $0x50] sm:$0xff]  ;;  %v2303_v59 = vld [vmem:[%s7874_s19 + $0x138] sm:$0xff] }
 0x416   :  { %5426 = vmatpush3.msra.mxu0 %v2276_v52  ;;  %5470 = vmatpush3.msra.mxu1 %v2308_v17  ;;  %v2318_v52 = vld [vmem:[%s7874_s19 + $0x1b0] sm:$0xff] }
 0x417   :  { %5427 = vmatprep.subr.mxu0 %v2291_v53  ;;  %5471 = vmatprep.subr.mxu1 %v2323_v56  ;;  %v2270_v17 = vld [vmem:[%s7874_s19 + $0x30] sm:$0xff]  ;;  %v2285_v56 = vld [vmem:[%s7874_s19 + $0xa8] sm:$0xff] }
 0x418   :  { %5428 = vmatpush3.msra.mxu0 %v2275_v11  ;;  %5472 = vmatpush3.msra.mxu1 %v2307_v6  ;;  %v2302_v53 = vld [vmem:[%s7874_s19 + $0x130] sm:$0xff]  ;;  %v2317_v11 = vld [vmem:[%s7874_s19 + $0x1a8] sm:$0xff] }
 0x419   :  { %5429 = vmatprep.subr.mxu0 %v2290_v49  ;;  %5473 = vmatprep.subr.mxu1 %v2322_v46  ;;  %v2269_v6 = vld [vmem:[%s7874_s19 + $0x28] sm:$0xff]  ;;  %v2284_v46 = vld [vmem:[%s7874_s19 + $0xa0] sm:$0xff] }
 0x41a   :  { %5430 = vmatpush3.msra.mxu0 %v2274_v4  ;;  %5474 = vmatpush3.msra.mxu1 %v2306_v19  ;;  %v2301_v49 = vld [vmem:[%s7874_s19 + $0x128] sm:$0xff]  ;;  %v2316_v4 = vld [vmem:[%s7874_s19 + $0x1a0] sm:$0xff] }
 0x41b   :  { %5431 = vmatprep.subr.mxu0 %v2289_v9  ;;  %5475 = vmatprep.subr.mxu1 %v2321_v50  ;;  %v2268_v19 = vld [vmem:[%s7874_s19 + $0x20] sm:$0xff]  ;;  %v2283_v50 = vld [vmem:[%s7874_s19 + $0x98] sm:$0xff] }
 0x41c   :  { %5432 = vmatpush3.msra.mxu0 %v2273_v15  ;;  %5476 = vmatpush3.msra.mxu1 %v2305_v14  ;;  %v2300_v9 = vld [vmem:[%s7874_s19 + $0x120] sm:$0xff]  ;;  %v2315_v15 = vld [vmem:[%s7874_s19 + $0x198] sm:$0xff] }
 0x41d   :  { %5433 = vmatprep.subr.mxu0 %v2288_v21  ;;  %5477 = vmatprep.subr.mxu1 %v2320_v23  ;;  %v2267_v14 = vld [vmem:[%s7874_s19 + $0x18] sm:$0xff]  ;;  %v2282_v23 = vld [vmem:[%s7874_s19 + $0x90] sm:$0xff] }
 0x41e   :  { %5434 = vmatpush3.msra.mxu0 %v2272_v7  ;;  %5478 = vmatpush3.msra.mxu1 %v2304_v20  ;;  %v2299_v21 = vld [vmem:[%s7874_s19 + $0x118] sm:$0xff]  ;;  %v2314_v7 = vld [vmem:[%s7874_s19 + $0x190] sm:$0xff] }
 0x41f   :  { %5435 = vmatprep.subr.mxu0 %v2287_v3  ;;  %5479 = vmatprep.subr.mxu1 %v2319_v13  ;;  %v2266_v20 = vld [vmem:[%s7874_s19 + $0x10] sm:$0xff]  ;;  %v2281_v13 = vld [vmem:[%s7874_s19 + $0x88] sm:$0xff] }
 0x420   :  { %5436 = vmatpush3.msra.mxu0 %v2271_v60  ;;  %5480 = vmatpush3.msra.mxu1 %v2303_v59  ;;  %v2298_v3 = vld [vmem:[%s7874_s19 + $0x110] sm:$0xff]  ;;  %v2313_v60 = vld [vmem:[%s7874_s19 + $0x188] sm:$0xff] }
 0x421   :  { %5437 = vmatprep.subr.mxu0 %v2286_v18  ;;  %5481 = vmatprep.subr.mxu1 %v2318_v52  ;;  %v2265_v59 = vld [vmem:[%s7874_s19 + $0x8] sm:$0xff]  ;;  %v2280_v52 = vld [vmem:[%s7874_s19 + $0x80] sm:$0xff] }
 0x422   :  { %5438 = vmatpush3.msra.mxu0 %v2270_v17  ;;  %5482 = vmatpush3.msra.mxu1 %v2302_v53  ;;  %v2297_v18 = vld [vmem:[%s7874_s19 + $0x108] sm:$0xff]  ;;  %v2312_v17 = vld [vmem:[%s7874_s19 + $0x180] sm:$0xff] }
 0x423   :  { %5439 = vmatprep.subr.mxu0 %v2285_v56  ;;  %5483 = vmatprep.subr.mxu1 %v2317_v11  ;;  %v2264_v53 = vld [vmem:[%s7874_s19] sm:$0xff] }
 0x424   :  { %5440 = vmatpush3.msra.mxu0 %v2269_v6  ;;  %5484 = vmatpush3.msra.mxu1 %v2301_v49  ;;  %v2296_v56 = vld [vmem:[%s7874_s19 + $0x100] sm:$0xff] }
 0x425   :  { %5441 = vmatprep.subr.mxu0 %v2284_v46  ;;  %5485 = vmatprep.subr.mxu1 %v2316_v4 }
 0x426   :  { %5442 = vmatpush3.msra.mxu0 %v2268_v19  ;;  %5486 = vmatpush3.msra.mxu1 %v2300_v9 }
 0x427   :  { %5443 = vmatprep.subr.mxu0 %v2283_v50  ;;  %5487 = vmatprep.subr.mxu1 %v2315_v15 }
 0x428   :  { %5444 = vmatpush3.msra.mxu0 %v2267_v14  ;;  %5488 = vmatpush3.msra.mxu1 %v2299_v21 }
 0x429   :  { %5445 = vmatprep.subr.mxu0 %v2282_v23  ;;  %5489 = vmatprep.subr.mxu1 %v2314_v7 }
 0x42a   :  { %5446 = vmatpush3.msra.mxu0 %v2266_v20  ;;  %5490 = vmatpush3.msra.mxu1 %v2298_v3 }
 0x42b   :  { %5447 = vmatprep.subr.mxu0 %v2281_v13  ;;  %5491 = vmatprep.subr.mxu1 %v2313_v60 }
 0x42c   :  { %5448 = vmatpush3.msra.mxu0 %v2265_v59  ;;  %5492 = vmatpush3.msra.mxu1 %v2297_v18 }
 0x42d   :  { %5449 = vmatprep.subr.mxu0 %v2280_v52  ;;  %5493 = vmatprep.subr.mxu1 %v2312_v17  ;;  %v6985_v17 = vrot.slane %v6665_v22, %v6364_v42 }
 0x42e   :  { %5450 = vmatpush3.msra.mxu0 %v2264_v53  ;;  %5494 = vmatpush3.msra.mxu1 %v2296_v56 }
 0x4b9   :  { %v1314_v11 = vpop.f32.mrf.mxu0  ;;  %v1403_v6 = vpop.f32.mrf.mxu1 }
 0x4ba   :  { %v1426_v49 = vmul.f32 1.442695, %v1314_v11  ;;  %v1430_v46 = vmul.f32 1.442695, %v1403_v6  ;;  %v6989_v11 = vrot.slane %v6665_v22, %v6372_v45 }
 0x4bb   :  { %v1316_v4 = vpop.f32.mrf.mxu0  ;;  %v1405_v19 = vpop.f32.mrf.mxu1 }
 0x4bc   :  { %5846 = vpow2.f32 %v1426_v49  ;;  %v1428_v9 = vmul.f32 1.442695, %v1316_v4  ;;  %v1432_v50 = vmul.f32 1.442695, %v1405_v19 }
 0x4bd   :  { %5848 = vpow2.f32 %v1430_v46  ;;  %v1320_v15 = vpop.f32.mrf.mxu0  ;;  %v1409_v14 = vpop.f32.mrf.mxu1  ;;  %v6993_v46 = vrot.slane %v6665_v22, %v6367_v43 }
 0x4be   :  { %5850 = vpow2.f32 %v1428_v9  ;;  %v1434_v21 = vmul.f32 1.442695, %v1320_v15  ;;  %v1438_v23 = vmul.f32 1.442695, %v1409_v14  ;;  %v6997_v9 = vrot.slane %v6665_v22, %v6361_v39 }
 0x4bf   :  { %5852 = vpow2.f32 %v1432_v50  ;;  %v1322_v7 = vpop.f32.mrf.mxu0  ;;  %v1411_v20 = vpop.f32.mrf.mxu1  ;;  %v694_v14 = vadd.f32 %v6610_v24, %v6985_v17  ;;  %v696_v22 = vadd.f32 %v6614_v25, %v6993_v46  ;;  %v700_v25 = vadd.f32 %v6618_v27, %v6985_v17 }
 0x4c0   :  { %5854 = vpow2.f32 %v1434_v21  ;;  %v1436_v3 = vmul.f32 1.442695, %v1322_v7  ;;  %v1440_v13 = vmul.f32 1.442695, %v1411_v20  ;;  %v783_v7 = vadd.f32 %v6612_v58, %v6989_v11 }
 0x4c1   :  { %5856 = vpow2.f32 %v1438_v23  ;;  %v1326_v60 = vpop.f32.mrf.mxu0  ;;  %v1415_v59 = vpop.f32.mrf.mxu1  ;;  %v785_v24 = vadd.f32 %v6616_v26, %v6997_v9 }
 0x4c2   :  { %5858 = vpow2.f32 %v1436_v3  ;;  %v1442_v18 = vmul.f32 1.442695, %v1326_v60  ;;  %v1446_v52 = vmul.f32 1.442695, %v1415_v59 }
 0x4c3   :  { %5860 = vpow2.f32 %v1440_v13  ;;  %v1328_v53 = vpop.f32.mrf.mxu0  ;;  %v1417_v56 = vpop.f32.mrf.mxu1 }
 0x4c4   :  { %5862 = vpow2.f32 %v1442_v18  ;;  %v1444_v6 = vmul.f32 1.442695, %v1328_v53  ;;  %v1448_v49 = vmul.f32 1.442695, %v1417_v56 }
 0x4c5   :  { %5864 = vpow2.f32 %v1446_v52  ;;  %v1332_v4 = vpop.f32.mrf.mxu0  ;;  %v1421_v19 = vpop.f32.mrf.mxu1 }
 0x4c6   :  { %5866 = vpow2.f32 %v1444_v6  ;;  %v1450_v50 = vmul.f32 1.442695, %v1332_v4  ;;  %v1454_v15 = vmul.f32 1.442695, %v1421_v19  ;;  %v789_v4 = vadd.f32 %v6620_v28, %v6989_v11 }
 0x4c7   :  { %5868 = vpow2.f32 %v1448_v49  ;;  %v1334_v21 = vpop.f32.mrf.mxu0  ;;  %v1423_v23 = vpop.f32.mrf.mxu1 }
 0x4c8   :  { %5870 = vpow2.f32 %v1450_v50  ;;  %v1452_v20 = vmul.f32 1.442695, %v1334_v21  ;;  %v1456_v3 = vmul.f32 1.442695, %v1423_v23  ;;  %v702_v23 = vadd.f32 %v6622_v29, %v6993_v46 }
 0x4c9   :  { %v5847_v13 = vpop.eup %5846  ;;  %5872 = vpow2.f32 %v1454_v15  ;;  %v1572_v60 = vpop.f32.mrf.mxu0 }
 0x4ca   :  { %v1661_v59 = vpop.f32.mrf.mxu1  ;;  %v5849_v18 = vpop.eup %5848  ;;  %1458 = vst [vmem:[#allocation2 + $0x30] sm:$0xff] %v5847_v13  ;;  %5874 = vpow2.f32 %v1452_v20  ;;  %v1684_v52 = vmul.f32 %v1572_v60, %v694_v14  ;;  %v706_v60 = vadd.f32 %v6626_v31, %v6985_v17  ;;  %v797_v31 = vadd.f32 %v6632_v33, %v6997_v9 }
 0x4cb   :  { %v1686_v53 = vmul.f32 %v1661_v59, %v783_v7  ;;  %v5851_v56 = vpop.eup %5850  ;;  %1460 = vst [vmem:[#allocation2 + $0x58] sm:$0xff] %v5849_v18  ;;  %5876 = vpow2.f32 %v1456_v3  ;;  %v1574_v58 = vpop.f32.mrf.mxu0  ;;  %v791_v7 = vadd.f32 %v6624_v30, %v6997_v9  ;;  %v795_v59 = vadd.f32 %v6628_v32, %v6989_v11 }
 0x4cc   :  { %v1663_v6 = vpop.f32.mrf.mxu1  ;;  %v5853_v49 = vpop.eup %5852  ;;  %1459 = vst [vmem:[#allocation2] sm:$0xff] %v5851_v56  ;;  %1700 = vst [vmem:[#allocation3 + $0x28] sm:$0xff] %v1684_v52  ;;  %v1685_v26 = vmul.f32 %v1574_v58, %v696_v22 }
 0x4cd   :  { %1702 = vst [vmem:[#allocation3 + $0x10] sm:$0xff] %v1686_v53  ;;  %v1687_v19 = vmul.f32 %v1663_v6, %v785_v24  ;;  %v5855_v50 = vpop.eup %5854  ;;  %1461 = vst [vmem:[#allocation2 + $0x18] sm:$0xff] %v5853_v49  ;;  %v1578_v15 = vpop.f32.mrf.mxu0  ;;  %v708_v24 = vadd.f32 %v6630_v62, %v6993_v46  ;;  %v801_v62 = vadd.f32 %v6636_v35, %v6989_v11 }
 0x4ce   :  { %v1667_v14 = vpop.f32.mrf.mxu1  ;;  %v5857_v21 = vpop.eup %5856  ;;  %1462 = vst [vmem:[#allocation2 + $0x50] sm:$0xff] %v5855_v50  ;;  %1701 = vst [vmem:[#allocation3 + $0x68] sm:$0xff] %v1685_v26  ;;  %v1688_v27 = vmul.f32 %v1578_v15, %v700_v25  ;;  %v712_v26 = vadd.f32 %v6634_v34, %v6985_v17  ;;  %v714_v34 = vadd.f32 %v6638_v36, %v6993_v46 }
 0x4cf   :  { %1703 = vst [vmem:[#allocation3 + $0x40] sm:$0xff] %v1687_v19  ;;  %v1690_v28 = vmul.f32 %v1667_v14, %v789_v4  ;;  %v5859_v20 = vpop.eup %5858  ;;  %1464 = vst [vmem:[#allocation2 + $0x8] sm:$0xff] %v5857_v21  ;;  %v1580_v3 = vpop.f32.mrf.mxu0 }
 0x4d0   :  { %v1669_v13 = vpop.f32.mrf.mxu1  ;;  %v5861_v22 = vpop.eup %5860  ;;  %1463 = vst [vmem:[#allocation2 + $0x68] sm:$0xff] %v5859_v20  ;;  %1704 = vst [vmem:[#allocation3 + $0x48] sm:$0xff] %v1688_v27  ;;  %v1689_v29 = vmul.f32 %v1580_v3, %v702_v23 }
 0x4d1   :  { %1706 = vst [vmem:[#allocation3 + $0x70] sm:$0xff] %v1690_v28  ;;  %v1691_v30 = vmul.f32 %v1669_v13, %v791_v7  ;;  %v5863_v18 = vpop.eup %5862  ;;  %1465 = vst [vmem:[#allocation2 + $0x48] sm:$0xff] %v5861_v22  ;;  %v1716_v52 = vld [vmem:[#allocation2 + $0x30] sm:$0x3]  ;;  %v1584_v53 = vpop.f32.mrf.mxu0 }
 0x4d2   :  { %v1673_v56 = vpop.f32.mrf.mxu1  ;;  %v5865_v58 = vpop.eup %5864  ;;  %1466 = vst [vmem:[#allocation2 + $0x40] sm:$0xff] %v5863_v18  ;;  %v1720_v6 = vmul.f32 0.0, %v1716_v52  ;;  %v1718_v32 = vld [vmem:[#allocation2 + $0x58] sm:$0x3]  ;;  %1705 = vst [vmem:[#allocation3 + $0x30] sm:$0xff] %v1689_v29  ;;  %v1692_v49 = vmul.f32 %v1584_v53, %v706_v60 }
 0x4d3   :  { %1707 = vst [vmem:[#allocation3 + $0x38] sm:$0xff] %v1691_v30  ;;  %v1694_v25 = vmul.f32 %v1673_v56, %v795_v59  ;;  %v5867_v4 = vpop.eup %5866  ;;  %1468 = vst [vmem:[#allocation2 + $0x10] sm:$0xff] %v5865_v58  ;;  %v1724_v19 = vld [vmem:[#allocation3 + $0x28] sm:$0x3]  ;;  %v1586_v50 = vpop.f32.mrf.mxu0  ;;  %v1722_v21 = vmul.f32 0.0, %v1718_v32  ;;  %v803_v59 = vadd.f32 %v6640_v37, %v6997_v9 }
 0x4d4   :  { %v1675_v15 = vpop.f32.mrf.mxu1  ;;  %v5869_v14 = vpop.eup %5868  ;;  %1467 = vst [vmem:[#allocation2 + $0x20] sm:$0xff] %v5867_v4  ;;  %v1728_v33 = vadd.f32 %v1724_v19, %v1720_v6  ;;  %v1726_v23 = vld [vmem:[#allocation3 + $0x10] sm:$0x3]  ;;  %1708 = vst [vmem:[#allocation3 + $0x20] sm:$0xff] %v1692_v49  ;;  %v1693_v7 = vmul.f32 %v1586_v50, %v708_v24  ;;  %v1736_v29 = vld [vmem:[#allocation2 + $0x30] sm:$0xc] }
 0x4d5   :  { %1710 = vst [vmem:[#allocation3 + $0x18] sm:$0xff] %v1694_v25  ;;  %v1695_v27 = vmul.f32 %v1675_v15, %v797_v31  ;;  %v5871_v28 = vpop.eup %5870  ;;  %1469 = vst [vmem:[#allocation2 + $0x38] sm:$0xff] %v5869_v14  ;;  %v1590_v17 = vpop.f32.mrf.mxu0  ;;  %v1730_v3 = vadd.f32 %v1726_v23, %v1722_v21  ;;  %v1717_v30 = vld [vmem:[#allocation2] sm:$0x3]  ;;  %v1725_v36 = vld [vmem:[#allocation3 + $0x68] sm:$0x3] }
 0x4d6   :  { %v1679_v35 = vpop.f32.mrf.mxu1  ;;  %v5873_v11 = vpop.eup %5872  ;;  %1470 = vst [vmem:[#allocation2 + $0x60] sm:$0xff] %v5871_v28  ;;  %1732 = vst [vmem:[#allocation5 + $0x8] sm:$0x3] %v1728_v33  ;;  %v1744_v20 = vrot.slane %v1728_v33, 6  ;;  %v1696_v13 = vmul.f32 %v1590_v17, %v712_v26  ;;  %v1721_v56 = vmul.f32 0.0, %v1717_v30 }
 0x4d7   :  { %1709 = vst [vmem:[#allocation3 + $0x78] sm:$0xff] %v1693_v7  ;;  %1711 = vst [vmem:[#allocation3 + $0x58] sm:$0xff] %v1695_v27  ;;  %v1698_v22 = vmul.f32 %v1679_v35, %v801_v62  ;;  %v5875_v60 = vpop.eup %5874  ;;  %v1592_v46 = vpop.f32.mrf.mxu0  ;;  %v1746_v53 = vrot.slane %v1730_v3, 6  ;;  %v1756_v31 = vld [vmem:[#allocation3 + $0x28] sm:$0xc] }
 0x4d8   :  { %1472 = vst [vmem:[#allocation2 + $0x78] sm:$0xff] %v5873_v11  ;;  %v1681_v18 = vpop.f32.mrf.mxu1  ;;  %v5877_v24 = vpop.eup %5876  ;;  %1471 = vst [vmem:[#allocation2 + $0x70] sm:$0xff] %v5875_v60  ;;  %v1752_v52 = vmul.f32 %v1744_v20, %v1736_v29  ;;  %v1697_v58 = vmul.f32 %v1592_v46, %v714_v34  ;;  %v1738_v6 = vld [vmem:[#allocation2 + $0x58] sm:$0xc]  ;;  %v1729_v49 = vadd.f32 %v1725_v36, %v1721_v56  ;;  %v1719_v25 = vld [vmem:[#allocation2 + $0x18] sm:$0x3] }
 0x4d9   :  { %1734 = vst [vmem:[#allocation5 + $0x48] sm:$0x3] %v1730_v3  ;;  %1712 = vst [vmem:[#allocation3] sm:$0xff] %v1696_v13  ;;  %v1699_v32 = vmul.f32 %v1681_v18, %v803_v59  ;;  %v1754_v9 = vmul.f32 %v1746_v53, %v1738_v6  ;;  %v1727_v4 = vld [vmem:[#allocation3 + $0x40] sm:$0x3]  ;;  %v1723_v62 = vmul.f32 0.0, %v1719_v25 }
 0x4da   :  { %1714 = vst [vmem:[#allocation3 + $0x60] sm:$0xff] %v1698_v22  ;;  %1473 = vst [vmem:[#allocation2 + $0x28] sm:$0xff] %v5877_v24  ;;  %v1760_v37 = vadd.f32 %v1756_v31, %v1752_v52  ;;  %v1758_v26 = vld [vmem:[#allocation3 + $0x10] sm:$0xc]  ;;  %v1745_v15 = vrot.slane %v1729_v49, 6 }
 0x4db   :  { %1713 = vst [vmem:[#allocation3 + $0x8] sm:$0xff] %v1697_v58  ;;  %1715 = vst [vmem:[#allocation3 + $0x50] sm:$0xff] %v1699_v32  ;;  %v1762_v50 = vadd.f32 %v1758_v26, %v1754_v9  ;;  %v1768_v14 = vld [vmem:[#allocation2 + $0x30] sm:$0x30]  ;;  %v1737_v33 = vld [vmem:[#allocation2] sm:$0xc]  ;;  %v1731_v21 = vadd.f32 %v1727_v4, %v1723_v62 }
 0x4dc   :  { %1764 = vst [vmem:[#allocation5 + $0x8] sm:$0xc] %v1760_v37  ;;  %v1776_v19 = vrot.slane %v1760_v37, 6  ;;  %1733 = vst [vmem:[#allocation5] sm:$0x3] %v1729_v49  ;;  %v1753_v28 = vmul.f32 %v1745_v15, %v1737_v33 }
 0x4dd   :  { %v1788_v7 = vld [vmem:[#allocation3 + $0x28] sm:$0x30]  ;;  %1766 = vst [vmem:[#allocation5 + $0x48] sm:$0xc] %v1762_v50  ;;  %v1778_v27 = vrot.slane %v1762_v50, 6  ;;  %v1747_v35 = vrot.slane %v1731_v21, 6 }
 0x4de   :  { %v1784_v23 = vmul.f32 %v1776_v19, %v1768_v14  ;;  %v1770_v34 = vld [vmem:[#allocation2 + $0x58] sm:$0x30]  ;;  %v1757_v17 = vld [vmem:[#allocation3 + $0x68] sm:$0xc]  ;;  %1735 = vst [vmem:[#allocation5 + $0x60] sm:$0x3] %v1731_v21 }
 0x4df   :  { %v1786_v20 = vmul.f32 %v1778_v27, %v1770_v34  ;;  %v1761_v3 = vadd.f32 %v1757_v17, %v1753_v28  ;;  %v1739_v13 = vld [vmem:[#allocation2 + $0x18] sm:$0xc]  ;;  %v1790_v22 = vld [vmem:[#allocation3 + $0x10] sm:$0x30]  ;;  %v1759_v36 = vld [vmem:[#allocation3 + $0x40] sm:$0xc] }
 0x4e0   :  { %v1792_v11 = vadd.f32 %v1788_v7, %v1784_v23  ;;  %v1755_v60 = vmul.f32 %v1747_v35, %v1739_v13  ;;  %v1800_v46 = vld [vmem:[#allocation2 + $0x30] sm:$0xc0]  ;;  %v1769_v18 = vld [vmem:[#allocation2] sm:$0x30]  ;;  %v1820_v53 = vld [vmem:[#allocation3 + $0x28] sm:$0xc0] }
 0x4e1   :  { %v1794_v29 = vadd.f32 %v1790_v22, %v1786_v20  ;;  %1765 = vst [vmem:[#allocation5] sm:$0xc] %v1761_v3  ;;  %v1777_v30 = vrot.slane %v1761_v3, 6  ;;  %v1802_v31 = vld [vmem:[#allocation2 + $0x58] sm:$0xc0] }
 0x4e2   :  { %1796 = vst [vmem:[#allocation5 + $0x8] sm:$0x30] %v1792_v11  ;;  %v1808_v59 = vrot.slane %v1792_v11, 6  ;;  %v1763_v24 = vadd.f32 %v1759_v36, %v1755_v60  ;;  %v1789_v6 = vld [vmem:[#allocation3 + $0x68] sm:$0x30] }
 0x4e3   :  { %1798 = vst [vmem:[#allocation5 + $0x48] sm:$0x30] %v1794_v29  ;;  %v1810_v56 = vrot.slane %v1794_v29, 6  ;;  %v1785_v58 = vmul.f32 %v1777_v30, %v1769_v18  ;;  %v1771_v25 = vld [vmem:[#allocation2 + $0x18] sm:$0x30] }
 0x4e4   :  { %v1816_v52 = vmul.f32 %v1808_v59, %v1800_v46  ;;  %1767 = vst [vmem:[#allocation5 + $0x60] sm:$0xc] %v1763_v24  ;;  %v1779_v32 = vrot.slane %v1763_v24, 6  ;;  %v1822_v4 = vld [vmem:[#allocation3 + $0x10] sm:$0xc0] }
 0x4e5   :  { %v1818_v9 = vmul.f32 %v1810_v56, %v1802_v31  ;;  %v1793_v49 = vadd.f32 %v1789_v6, %v1785_v58  ;;  %v1791_v15 = vld [vmem:[#allocation3 + $0x40] sm:$0x30]  ;;  %v1801_v14 = vld [vmem:[#allocation2] sm:$0xc0]  ;;  %v1832_v21 = vld [vmem:[#allocation2 + $0x50] sm:$0x3] }
 0x4e6   :  { %v1824_v37 = vadd.f32 %v1820_v53, %v1816_v52  ;;  %v1787_v26 = vmul.f32 %v1779_v32, %v1771_v25  ;;  %v1821_v27 = vld [vmem:[#allocation3 + $0x68] sm:$0xc0]  ;;  %v1852_v17 = vld [vmem:[#allocation3 + $0x48] sm:$0x3]  ;;  %v1803_v20 = vld [vmem:[#allocation2 + $0x18] sm:$0xc0] }
 0x4e7   :  { %v1826_v19 = vadd.f32 %v1822_v4, %v1818_v9  ;;  %1797 = vst [vmem:[#allocation5] sm:$0x30] %v1793_v49  ;;  %v1809_v50 = vrot.slane %v1793_v49, 6  ;;  %v1834_v35 = vld [vmem:[#allocation2 + $0x8] sm:$0x3]  ;;  %v7864_v4 = vsub.s32 7, %v6358_v38 }
 0x4e8   :  { %1828 = vst [vmem:[#allocation5 + $0x8] sm:$0xc0] %v1824_v37  ;;  %v1840_v62 = vrot.slane %v1824_v37, 6  ;;  %v1795_v33 = vadd.f32 %v1791_v15, %v1787_v26  ;;  %v1854_v60 = vld [vmem:[#allocation3 + $0x70] sm:$0x3] }
 0x4e9   :  { %1830 = vst [vmem:[#allocation5 + $0x48] sm:$0xc0] %v1826_v19  ;;  %v1842_v23 = vrot.slane %v1826_v19, 6  ;;  %v1817_v7 = vmul.f32 %v1809_v50, %v1801_v14  ;;  %v1823_v29 = vld [vmem:[#allocation3 + $0x40] sm:$0xc0] }
 0x4ea   :  { %v1848_v28 = vmul.f32 %v1840_v62, %v1832_v21  ;;  %1799 = vst [vmem:[#allocation5 + $0x60] sm:$0x30] %v1795_v33  ;;  %v1811_v34 = vrot.slane %v1795_v33, 6  ;;  %v1864_v18 = vld [vmem:[#allocation2 + $0x50] sm:$0xc]  ;;  %v874_v33 = vadd.f32 %v6646_v44, %v6684_v8 }
 0x4eb   :  { %v1825_v11 = vadd.f32 %v1821_v27, %v1817_v7  ;;  %v1850_v13 = vmul.f32 %v1842_v23, %v1834_v35  ;;  %v1833_v24 = vld [vmem:[#allocation2 + $0x68] sm:$0x3]  ;;  %v1884_v53 = vld [vmem:[#allocation3 + $0x48] sm:$0xc]  ;;  %v1853_v32 = vld [vmem:[#allocation3 + $0x30] sm:$0x3] }
 0x4ec   :  { %v1856_v3 = vadd.f32 %v1852_v17, %v1848_v28  ;;  %v1819_v22 = vmul.f32 %v1811_v34, %v1803_v20  ;;  %v1866_v6 = vld [vmem:[#allocation2 + $0x8] sm:$0xc]  ;;  %v1835_v25 = vld [vmem:[#allocation2 + $0x48] sm:$0x3]  ;;  %v1886_v26 = vld [vmem:[#allocation3 + $0x70] sm:$0xc]  ;;  %v872_v28 = vadd.f32 %v6642_v40, %v6674_v5 }
 0x4ed   :  { %1829 = vst [vmem:[#allocation5] sm:$0xc0] %v1825_v11  ;;  %v1841_v59 = vrot.slane %v1825_v11, 6  ;;  %v1858_v36 = vadd.f32 %v1854_v60, %v1850_v13  ;;  %v1855_v14 = vld [vmem:[#allocation3 + $0x38] sm:$0x3] }
 0x4ee   :  { %1860 = vst [vmem:[#allocation5 + $0x68] sm:$0x3] %v1856_v3  ;;  %v1872_v30 = vrot.slane %v1856_v3, 6  ;;  %v1827_v46 = vadd.f32 %v1823_v29, %v1819_v22  ;;  %v1896_v21 = vld [vmem:[#allocation2 + $0x50] sm:$0x30]  ;;  %v5966_v3 = vld [vmem:[#allocation14] sm:$0xff] }
 0x4ef   :  { %1862 = vst [vmem:[#allocation5 + $0x10] sm:$0x3] %v1858_v36  ;;  %v1874_v56 = vrot.slane %v1858_v36, 6  ;;  %v1849_v58 = vmul.f32 %v1841_v59, %v1833_v24  ;;  %v1865_v23 = vld [vmem:[#allocation2 + $0x68] sm:$0xc]  ;;  %v7038_v13 = vrot.slane %v5966_v3, %v7864_v4 }
 0x4f0   :  { %v1880_v52 = vmul.f32 %v1872_v30, %v1864_v18  ;;  %1831 = vst [vmem:[#allocation5 + $0x60] sm:$0xc0] %v1827_v46  ;;  %v1843_v31 = vrot.slane %v1827_v46, 6  ;;  %v2216_v27 = vld [vmem:[#allocation5 + $0x8] sm:$0xff]  ;;  %v1885_v44 = vld [vmem:[#allocation3 + $0x30] sm:$0xc] }
 0x4f1   :  { %v1882_v9 = vmul.f32 %v1874_v56, %v1866_v6  ;;  %v1857_v49 = vadd.f32 %v1853_v32, %v1849_v58  ;;  %v1916_v17 = vld [vmem:[#allocation3 + $0x48] sm:$0x30]  ;;  %v1867_v40 = vld [vmem:[#allocation2 + $0x48] sm:$0xc]  ;;  %v2248_v46 = vmul.f32 %v2216_v27, %v872_v28  ;;  %v1918_v18 = vld [vmem:[#allocation3 + $0x70] sm:$0x30] }
 0x4f2   :  { %v1888_v37 = vadd.f32 %v1884_v53, %v1880_v52  ;;  %v1851_v62 = vmul.f32 %v1843_v31, %v1835_v25  ;;  %v1898_v22 = vld [vmem:[#allocation2 + $0x8] sm:$0x30]  ;;  %v1887_v58 = vld [vmem:[#allocation3 + $0x38] sm:$0xc]  ;;  %v963_v31 = vadd.f32 %v6648_v47, %v7038_v13  ;;  %v1928_v6 = vld [vmem:[#allocation2 + $0x50] sm:$0xc0] }
 0x4f3   :  { %v1890_v50 = vadd.f32 %v1886_v26, %v1882_v9  ;;  %1861 = vst [vmem:[#allocation5 + $0x18] sm:$0x3] %v1857_v49  ;;  %v1873_v15 = vrot.slane %v1857_v49, 6  ;;  %v1897_v32 = vld [vmem:[#allocation2 + $0x68] sm:$0x30]  ;;  %v961_v49 = vadd.f32 %v6644_v41, %v6679_v63 }
 0x4f4   :  { %1892 = vst [vmem:[#allocation5 + $0x68] sm:$0xc] %v1888_v37  ;;  %v1904_v19 = vrot.slane %v1888_v37, 6  ;;  %v1859_v7 = vadd.f32 %v1855_v14, %v1851_v62  ;;  %v2217_v20 = vld [vmem:[#allocation5] sm:$0xff]  ;;  %v2218_v9 = vld [vmem:[#allocation5 + $0x48] sm:$0xff] }
 0x4f5   :  { %1894 = vst [vmem:[#allocation5 + $0x10] sm:$0xc] %v1890_v50  ;;  %v1906_v35 = vrot.slane %v1890_v50, 6  ;;  %v1881_v11 = vmul.f32 %v1873_v15, %v1865_v23  ;;  %v2249_v59 = vmul.f32 %v2217_v20, %v874_v33  ;;  %v1948_v26 = vld [vmem:[#allocation3 + $0x48] sm:$0xc0]  ;;  %v2250_v28 = vmul.f32 %v2218_v9, %v961_v49 }
 0x4f6   :  { %v1912_v34 = vmul.f32 %v1904_v19, %v1896_v21  ;;  %1863 = vst [vmem:[#allocation5 + $0x38] sm:$0x3] %v1859_v7  ;;  %v1875_v60 = vrot.slane %v1859_v7, 6  ;;  %v1930_v15 = vld [vmem:[#allocation2 + $0x8] sm:$0xc0] }
 0x4f7   :  { %v1914_v30 = vmul.f32 %v1906_v35, %v1898_v22  ;;  %v1889_v36 = vadd.f32 %v1885_v44, %v1881_v11  ;;  %2392 = vmatprep.mubr.f32.mxu0 %v2249_v59  ;;  %v2219_v50 = vld [vmem:[#allocation5 + $0x60] sm:$0xff]  ;;  %v1917_v14 = vld [vmem:[#allocation3 + $0x30] sm:$0x30]  ;;  %v1899_v27 = vld [vmem:[#allocation2 + $0x48] sm:$0x30] }
 0x4f8   :  { %v1920_v29 = vadd.f32 %v1916_v17, %v1912_v34  ;;  %v1883_v24 = vmul.f32 %v1875_v60, %v1867_v40  ;;  %2393 = vmatmul.mubr.f32.vlgmr.msra.gmra.mxu0 %v2248_v46  ;;  %v2251_v21 = vmul.f32 %v2219_v50, %v963_v31  ;;  %v1950_v34 = vld [vmem:[#allocation3 + $0x70] sm:$0xc0]  ;;  %v1919_v20 = vld [vmem:[#allocation3 + $0x38] sm:$0x30]  ;;  %v1929_v3 = vld [vmem:[#allocation2 + $0x68] sm:$0xc0] }
 0x4f9   :  { %v1922_v53 = vadd.f32 %v1918_v18, %v1914_v30  ;;  %1893 = vst [vmem:[#allocation5 + $0x18] sm:$0xc] %v1889_v36  ;;  %v1905_v56 = vrot.slane %v1889_v36, 6  ;;  %v1960_v44 = vld [vmem:[#allocation2 + $0x40] sm:$0x3] }
 0x4fa   :  { %1924 = vst [vmem:[#allocation5 + $0x68] sm:$0x30] %v1920_v29  ;;  %v1936_v52 = vrot.slane %v1920_v29, 6  ;;  %v1891_v37 = vadd.f32 %v1887_v58, %v1883_v24  ;;  %2477 = vmatprep.mubr.f32.mxu1 %v2251_v21  ;;  %v1949_v29 = vld [vmem:[#allocation3 + $0x30] sm:$0xc0] }
 0x4fb   :  { %1926 = vst [vmem:[#allocation5 + $0x10] sm:$0x30] %v1922_v53  ;;  %v1938_v62 = vrot.slane %v1922_v53, 6  ;;  %v1913_v19 = vmul.f32 %v1905_v56, %v1897_v32  ;;  %2478 = vmatmul.mubr.f32.vlgmr.msra.gmra.mxu1 %v2250_v28  ;;  %v1980_v40 = vld [vmem:[#allocation3 + $0x20] sm:$0x3] }
 0x4fc   :  { %v1944_v25 = vmul.f32 %v1936_v52, %v1928_v6  ;;  %1895 = vst [vmem:[#allocation5 + $0x38] sm:$0xc] %v1891_v37  ;;  %v1907_v33 = vrot.slane %v1891_v37, 6  ;;  %v1962_v46 = vld [vmem:[#allocation2 + $0x10] sm:$0x3] }
 0x4fd   :  { %v1946_v47 = vmul.f32 %v1938_v62, %v1930_v15  ;;  %v1921_v7 = vadd.f32 %v1917_v14, %v1913_v19  ;;  %v1931_v24 = vld [vmem:[#allocation2 + $0x48] sm:$0xc0]  ;;  %v1982_v58 = vld [vmem:[#allocation3 + $0x18] sm:$0x3]  ;;  %v1951_v6 = vld [vmem:[#allocation3 + $0x38] sm:$0xc0] }
 0x4fe   :  { %v1952_v23 = vadd.f32 %v1948_v26, %v1944_v25  ;;  %v1915_v17 = vmul.f32 %v1907_v33, %v1899_v27  ;;  %v1992_v49 = vld [vmem:[#allocation2 + $0x40] sm:$0xc]  ;;  %v1961_v25 = vld [vmem:[#allocation2 + $0x20] sm:$0x3]  ;;  %v1994_v14 = vld [vmem:[#allocation2 + $0x10] sm:$0xc] }
 0x4ff   :  { %v1954_v35 = vadd.f32 %v1950_v34, %v1946_v47  ;;  %1925 = vst [vmem:[#allocation5 + $0x18] sm:$0x30] %v1921_v7  ;;  %v1937_v11 = vrot.slane %v1921_v7, 6  ;;  %v2012_v62 = vld [vmem:[#allocation3 + $0x20] sm:$0xc]  ;;  %v880_v34 = vadd.f32 %v6654_v57, %v6684_v8 }
 0x500   :  { %1956 = vst [vmem:[#allocation5 + $0x68] sm:$0xc0] %v1952_v23  ;;  %v1968_v41 = vrot.slane %v1952_v23, 6  ;;  %v1923_v22 = vadd.f32 %v1919_v20, %v1915_v17  ;;  %v1981_v33 = vld [vmem:[#allocation3 + $0x78] sm:$0x3] }
 0x501   :  { %1958 = vst [vmem:[#allocation5 + $0x10] sm:$0xc0] %v1954_v35  ;;  %v1970_v60 = vrot.slane %v1954_v35, 6  ;;  %v1945_v59 = vmul.f32 %v1937_v11, %v1929_v3  ;;  %v1963_v7 = vld [vmem:[#allocation2 + $0x38] sm:$0x3]  ;;  %v878_v3 = vadd.f32 %v6650_v48, %v6674_v5  ;;  %v967_v48 = vadd.f32 %v6652_v54, %v6679_v63 }
 0x502   :  { %v1976_v30 = vmul.f32 %v1968_v41, %v1960_v44  ;;  %1927 = vst [vmem:[#allocation5 + $0x38] sm:$0x30] %v1923_v22  ;;  %v1939_v36 = vrot.slane %v1923_v22, 6  ;;  %v2014_v27 = vld [vmem:[#allocation3 + $0x18] sm:$0xc] }
 0x503   :  { %v1953_v18 = vadd.f32 %v1949_v29, %v1945_v59  ;;  %v1978_v53 = vmul.f32 %v1970_v60, %v1962_v46  ;;  %v1983_v11 = vld [vmem:[#allocation3 + $0x58] sm:$0x3]  ;;  %v2024_v22 = vld [vmem:[#allocation2 + $0x40] sm:$0x30]  ;;  %v1993_v44 = vld [vmem:[#allocation2 + $0x20] sm:$0xc]  ;;  %v969_v46 = vadd.f32 %v6656_v55, %v7038_v13 }
 0x504   :  { %v1984_v52 = vadd.f32 %v1980_v40, %v1976_v30  ;;  %v1947_v56 = vmul.f32 %v1939_v36, %v1931_v24  ;;  %v2044_v30 = vld [vmem:[#allocation3 + $0x20] sm:$0x30]  ;;  %v2013_v24 = vld [vmem:[#allocation3 + $0x78] sm:$0xc] }
 0x505   :  { %1957 = vst [vmem:[#allocation5 + $0x18] sm:$0xc0] %v1953_v18  ;;  %v1969_v31 = vrot.slane %v1953_v18, 6  ;;  %v1986_v37 = vadd.f32 %v1982_v58, %v1978_v53  ;;  %v2026_v18 = vld [vmem:[#allocation2 + $0x10] sm:$0x30] }
 0x506   :  { %1988 = vst [vmem:[#allocation5 + $0x40] sm:$0x3] %v1984_v52  ;;  %v2000_v32 = vrot.slane %v1984_v52, 6  ;;  %v1955_v9 = vadd.f32 %v1951_v6, %v1947_v56 }
 0x507   :  { %1990 = vst [vmem:[#allocation5 + $0x70] sm:$0x3] %v1986_v37  ;;  %v2002_v19 = vrot.slane %v1986_v37, 6  ;;  %v1977_v50 = vmul.f32 %v1969_v31, %v1961_v25  ;;  %v2220_v20 = vld [vmem:[#allocation5 + $0x68] sm:$0xff] }
 0x508   :  { %v2008_v26 = vmul.f32 %v2000_v32, %v1992_v49  ;;  %1959 = vst [vmem:[#allocation5 + $0x38] sm:$0xc0] %v1955_v9  ;;  %v1971_v15 = vrot.slane %v1955_v9, 6  ;;  %v2252_v53 = vmul.f32 %v2220_v20, %v878_v3  ;;  %v2222_v56 = vld [vmem:[#allocation5 + $0x10] sm:$0xff]  ;;  %v1995_v32 = vld [vmem:[#allocation2 + $0x38] sm:$0xc] }
 0x509   :  { %v2010_v23 = vmul.f32 %v2002_v19, %v1994_v14  ;;  %v1985_v47 = vadd.f32 %v1981_v33, %v1977_v50  ;;  %v2046_v9 = vld [vmem:[#allocation3 + $0x18] sm:$0x30]  ;;  %v2015_v19 = vld [vmem:[#allocation3 + $0x58] sm:$0xc]  ;;  %v2254_v50 = vmul.f32 %v2222_v56, %v967_v48  ;;  %v2025_v14 = vld [vmem:[#allocation2 + $0x20] sm:$0x30] }
 0x50a   :  { %v2016_v21 = vadd.f32 %v2012_v62, %v2008_v26  ;;  %v1979_v28 = vmul.f32 %v1971_v15, %v1963_v7  ;;  %v2056_v15 = vld [vmem:[#allocation2 + $0x40] sm:$0xc0]  ;;  %v2058_v7 = vld [vmem:[#allocation2 + $0x10] sm:$0xc0]  ;;  %v2059_v56 = vld [vmem:[#allocation2 + $0x38] sm:$0xc0] }
 0x50b   :  { %v2018_v41 = vadd.f32 %v2014_v27, %v2010_v23  ;;  %1989 = vst [vmem:[#allocation5 + $0x28] sm:$0x3] %v1985_v47  ;;  %v2001_v35 = vrot.slane %v1985_v47, 6  ;;  %v2045_v27 = vld [vmem:[#allocation3 + $0x78] sm:$0x30] }
 0x50c   :  { %2020 = vst [vmem:[#allocation5 + $0x40] sm:$0xc] %v2016_v21  ;;  %v2032_v17 = vrot.slane %v2016_v21, 6  ;;  %v1987_v60 = vadd.f32 %v1983_v11, %v1979_v28  ;;  %v2221_v59 = vld [vmem:[#allocation5 + $0x18] sm:$0xff]  ;;  %v2076_v21 = vld [vmem:[#allocation3 + $0x20] sm:$0xc0] }
 0x50d   :  { %2022 = vst [vmem:[#allocation5 + $0x70] sm:$0xc] %v2018_v41  ;;  %v2034_v36 = vrot.slane %v2018_v41, 6  ;;  %v2009_v40 = vmul.f32 %v2001_v35, %v1993_v44  ;;  %v2253_v57 = vmul.f32 %v2221_v59, %v880_v34  ;;  %v2027_v35 = vld [vmem:[#allocation2 + $0x38] sm:$0x30] }
 0x50e   :  { %v2040_v29 = vmul.f32 %v2032_v17, %v2024_v22  ;;  %1991 = vst [vmem:[#allocation5 + $0x20] sm:$0x3] %v1987_v60  ;;  %v2003_v52 = vrot.slane %v1987_v60, 6  ;;  %v2078_v11 = vld [vmem:[#allocation3 + $0x18] sm:$0xc0] }
 0x50f   :  { %v2042_v31 = vmul.f32 %v2034_v36, %v2026_v18  ;;  %v2017_v6 = vadd.f32 %v2013_v24, %v2009_v40  ;;  %2397 = vmatprep.mubr.f32.mxu0 %v2253_v57  ;;  %v2223_v37 = vld [vmem:[#allocation5 + $0x38] sm:$0xff]  ;;  %v2057_v59 = vld [vmem:[#allocation2 + $0x20] sm:$0xc0]  ;;  %v2108_v24 = vld [vmem:[#allocation3] sm:$0x3] }
 0x510   :  { %v2048_v58 = vadd.f32 %v2044_v30, %v2040_v29  ;;  %v2011_v49 = vmul.f32 %v2003_v52, %v1995_v32  ;;  %v2255_v25 = vmul.f32 %v2223_v37, %v969_v46  ;;  %2398 = vmatmul.mubr.f32.gmra.mxu0 %v2252_v53  ;;  %v2047_v60 = vld [vmem:[#allocation3 + $0x58] sm:$0x30]  ;;  %v2088_v30 = vld [vmem:[#allocation2 + $0x60] sm:$0x3]  ;;  %v2077_v57 = vld [vmem:[#allocation3 + $0x78] sm:$0xc0] }
 0x511   :  { %v2050_v26 = vadd.f32 %v2046_v9, %v2042_v31  ;;  %2021 = vst [vmem:[#allocation5 + $0x28] sm:$0xc] %v2017_v6  ;;  %v2033_v62 = vrot.slane %v2017_v6, 6  ;;  %v2090_v52 = vld [vmem:[#allocation2 + $0x78] sm:$0x3] }
 0x512   :  { %2052 = vst [vmem:[#allocation5 + $0x40] sm:$0x30] %v2048_v58  ;;  %v2064_v55 = vrot.slane %v2048_v58, 6  ;;  %v2019_v54 = vadd.f32 %v2015_v19, %v2011_v49  ;;  %2482 = vmatprep.mubr.f32.mxu1 %v2255_v25  ;;  %v2110_v6 = vld [vmem:[#allocation3 + $0x60] sm:$0x3] }
 0x513   :  { %2054 = vst [vmem:[#allocation5 + $0x70] sm:$0x30] %v2050_v26  ;;  %v2066_v23 = vrot.slane %v2050_v26, 6  ;;  %v2041_v47 = vmul.f32 %v2033_v62, %v2025_v14  ;;  %2483 = vmatmul.mubr.f32.gmra.mxu1 %v2254_v50  ;;  %v2079_v37 = vld [vmem:[#allocation3 + $0x58] sm:$0xc0] }
 0x514   :  { %v2072_v33 = vmul.f32 %v2064_v55, %v2056_v15  ;;  %2023 = vst [vmem:[#allocation5 + $0x20] sm:$0xc] %v2019_v54  ;;  %v2035_v28 = vrot.slane %v2019_v54, 6  ;;  %v2120_v55 = vld [vmem:[#allocation2 + $0x60] sm:$0xc] }
 0x515   :  { %v2074_v17 = vmul.f32 %v2066_v23, %v2058_v7  ;;  %v2049_v41 = vadd.f32 %v2045_v27, %v2041_v47  ;;  %v2089_v26 = vld [vmem:[#allocation2 + $0x70] sm:$0x3]  ;;  %v2140_v19 = vld [vmem:[#allocation3] sm:$0xc]  ;;  %v2122_v54 = vld [vmem:[#allocation2 + $0x78] sm:$0xc] }
 0x516   :  { %v2080_v34 = vadd.f32 %v2076_v21, %v2072_v33  ;;  %v2043_v20 = vmul.f32 %v2035_v28, %v2027_v35  ;;  %v2109_v33 = vld [vmem:[#allocation3 + $0x8] sm:$0x3]  ;;  %v2142_v27 = vld [vmem:[#allocation3 + $0x60] sm:$0xc] }
 0x517   :  { %v2082_v22 = vadd.f32 %v2078_v11, %v2074_v17  ;;  %2053 = vst [vmem:[#allocation5 + $0x28] sm:$0x30] %v2049_v41  ;;  %v2065_v44 = vrot.slane %v2049_v41, 6  ;;  %v2091_v7 = vld [vmem:[#allocation2 + $0x28] sm:$0x3] }
 0x518   :  { %2084 = vst [vmem:[#allocation5 + $0x40] sm:$0xc0] %v2080_v34  ;;  %v2096_v3 = vrot.slane %v2080_v34, 6  ;;  %v2051_v29 = vadd.f32 %v2047_v60, %v2043_v20  ;;  %v886_v34 = vadd.f32 %v6667_v61, %v6684_v8  ;;  %v2111_v11 = vld [vmem:[#allocation3 + $0x50] sm:$0x3]  ;;  %v975_v8 = vadd.f32 %v6669_v2, %v7038_v13 }
 0x519   :  { %2086 = vst [vmem:[#allocation5 + $0x70] sm:$0xc0] %v2082_v22  ;;  %v2098_v36 = vrot.slane %v2082_v22, 6  ;;  %v2073_v40 = vmul.f32 %v2065_v44, %v2057_v59  ;;  %v2152_v22 = vld [vmem:[#allocation2 + $0x60] sm:$0x30] }
 0x51a   :  { %v2104_v46 = vmul.f32 %v2096_v3, %v2088_v30  ;;  %2055 = vst [vmem:[#allocation5 + $0x20] sm:$0x30] %v2051_v29  ;;  %v2067_v18 = vrot.slane %v2051_v29, 6  ;;  %v884_v3 = vadd.f32 %v6660_v0, %v6674_v5  ;;  %v2121_v44 = vld [vmem:[#allocation2 + $0x70] sm:$0xc]  ;;  %v973_v0 = vadd.f32 %v6662_v1, %v6679_v63 }
 0x51b   :  { %v2081_v53 = vadd.f32 %v2077_v57, %v2073_v40  ;;  %v2106_v58 = vmul.f32 %v2098_v36, %v2090_v52  ;;  %v2172_v30 = vld [vmem:[#allocation3] sm:$0x30]  ;;  %v2154_v57 = vld [vmem:[#allocation2 + $0x78] sm:$0x30] }
 0x51c   :  { %v2112_v48 = vadd.f32 %v2108_v24, %v2104_v46  ;;  %v2075_v31 = vmul.f32 %v2067_v18, %v2059_v56  ;;  %v2141_v46 = vld [vmem:[#allocation3 + $0x8] sm:$0xc] }
 0x51d   :  { %2085 = vst [vmem:[#allocation5 + $0x28] sm:$0xc0] %v2081_v53  ;;  %v2097_v32 = vrot.slane %v2081_v53, 6  ;;  %v2114_v49 = vadd.f32 %v2110_v6, %v2106_v58 }
 0x51e   :  { %2116 = vst [vmem:[#allocation5 + $0x58] sm:$0x3] %v2112_v48  ;;  %v2128_v9 = vrot.slane %v2112_v48, 6  ;;  %v2083_v25 = vadd.f32 %v2079_v37, %v2075_v31  ;;  %v2123_v48 = vld [vmem:[#allocation2 + $0x28] sm:$0xc] }
 0x51f   :  { %2118 = vst [vmem:[#allocation5 + $0x50] sm:$0x3] %v2114_v49  ;;  %v2130_v50 = vrot.slane %v2114_v49, 6  ;;  %v2105_v15 = vmul.f32 %v2097_v32, %v2089_v26  ;;  %v2224_v20 = vld [vmem:[#allocation5 + $0x40] sm:$0xff]  ;;  %v2143_v49 = vld [vmem:[#allocation3 + $0x50] sm:$0xc] }
 0x520   :  { %v2136_v62 = vmul.f32 %v2128_v9, %v2120_v55  ;;  %2087 = vst [vmem:[#allocation5 + $0x20] sm:$0xc0] %v2083_v25  ;;  %v2099_v14 = vrot.slane %v2083_v25, 6  ;;  %v2256_v24 = vmul.f32 %v2224_v20, %v884_v3  ;;  %v2226_v52 = vld [vmem:[#allocation5 + $0x70] sm:$0xff]  ;;  %v2174_v31 = vld [vmem:[#allocation3 + $0x60] sm:$0x30] }
 0x521   :  { %v2138_v23 = vmul.f32 %v2130_v50, %v2122_v54  ;;  %v2113_v47 = vadd.f32 %v2109_v33, %v2105_v15  ;;  %v2258_v25 = vmul.f32 %v2226_v52, %v973_v0  ;;  %v2184_v55 = vld [vmem:[#allocation2 + $0x60] sm:$0xc0]  ;;  %v2153_v26 = vld [vmem:[#allocation2 + $0x70] sm:$0x30]  ;;  %v2186_v15 = vld [vmem:[#allocation2 + $0x78] sm:$0xc0] }
 0x522   :  { %v2144_v21 = vadd.f32 %v2140_v19, %v2136_v62  ;;  %v2107_v28 = vmul.f32 %v2099_v14, %v2091_v7  ;;  %v2204_v62 = vld [vmem:[#allocation3] sm:$0xc0]  ;;  %v2173_v14 = vld [vmem:[#allocation3 + $0x8] sm:$0x30]  ;;  %v2205_v20 = vld [vmem:[#allocation3 + $0x8] sm:$0xc0] }
 0x523   :  { %v2146_v41 = vadd.f32 %v2142_v27, %v2138_v23  ;;  %2117 = vst [vmem:[#allocation5 + $0x30] sm:$0x3] %v2113_v47  ;;  %v2129_v35 = vrot.slane %v2113_v47, 6  ;;  %v2155_v47 = vld [vmem:[#allocation2 + $0x28] sm:$0x30]  ;;  %v2545_v0 = vld [vmem:[#allocation17 + $0x18] sm:$0xff] }
 0x524   :  { %2148 = vst [vmem:[#allocation5 + $0x58] sm:$0xc] %v2144_v21  ;;  %v2160_v17 = vrot.slane %v2144_v21, 6  ;;  %v2115_v60 = vadd.f32 %v2111_v11, %v2107_v28  ;;  %v2225_v59 = vld [vmem:[#allocation5 + $0x28] sm:$0xff]  ;;  %v2206_v7 = vld [vmem:[#allocation3 + $0x60] sm:$0xc0]  ;;  %5689 = vmatprep.subr.mxu0 %v2545_v0 }
 0x525   :  { %2150 = vst [vmem:[#allocation5 + $0x50] sm:$0xc] %v2146_v41  ;;  %v2162_v36 = vrot.slane %v2146_v41, 6  ;;  %v2137_v40 = vmul.f32 %v2129_v35, %v2121_v44  ;;  %v2257_v61 = vmul.f32 %v2225_v59, %v886_v34  ;;  %v2185_v41 = vld [vmem:[#allocation2 + $0x70] sm:$0xc0]  ;;  %5690 = vmatpush3.msra.mxu0 %v2545_v0  ;;  %v5335_v0 = vld [vmem:[%s7845_s10 + $0x208] sm:$0xff] }
 0x526   :  { %v2168_v29 = vmul.f32 %v2160_v17, %v2152_v22  ;;  %2119 = vst [vmem:[#allocation5 + $0x78] sm:$0x3] %v2115_v60  ;;  %v2131_v18 = vrot.slane %v2115_v60, 6  ;;  %v2175_v17 = vld [vmem:[#allocation3 + $0x50] sm:$0x30] }
 0x527   :  { %v2170_v53 = vmul.f32 %v2162_v36, %v2154_v57  ;;  %v2145_v56 = vadd.f32 %v2141_v46, %v2137_v40  ;;  %2402 = vmatprep.mubr.f32.mxu0 %v2257_v61  ;;  %v2227_v58 = vld [vmem:[#allocation5 + $0x20] sm:$0xff]  ;;  %v2187_v44 = vld [vmem:[#allocation2 + $0x28] sm:$0xc0]  ;;  %v2207_v59 = vld [vmem:[#allocation3 + $0x50] sm:$0xc0]  ;;  %v981_v61 = vadd.f32 %v6708_v51, %v7038_v13 }
 0x528   :  { %v2176_v5 = vadd.f32 %v2172_v30, %v2168_v29  ;;  %v2139_v6 = vmul.f32 %v2131_v18, %v2123_v48  ;;  %v2259_v32 = vmul.f32 %v2227_v58, %v975_v8  ;;  %2403 = vmatmul.mubr.f32.gmra.mxu0 %v2256_v24  ;;  %v7875_v24 = vld [vmem:[#allocation27_spill] sm:$0xff] }
 0x529   :  { %v2178_v37 = vadd.f32 %v2174_v31, %v2170_v53  ;;  %2149 = vst [vmem:[#allocation5 + $0x30] sm:$0xc] %v2145_v56  ;;  %v2161_v9 = vrot.slane %v2145_v56, 6  ;;  %v2543_v53 = vld [vmem:[#allocation17 + $0x8] sm:$0xff] }
 0x52a   :  { %2180 = vst [vmem:[#allocation5 + $0x58] sm:$0x30] %v2176_v5  ;;  %v2192_v2 = vrot.slane %v2176_v5, 6  ;;  %v2147_v1 = vadd.f32 %v2143_v49, %v2139_v6  ;;  %2487 = vmatprep.mubr.f32.mxu1 %v2259_v32  ;;  %v2544_v5 = vld [vmem:[#allocation17 + $0x10] sm:$0xff]  ;;  %v2527_v32 = vpop.permute.xlu0 %2526 }
 0x52b   :  { %2182 = vst [vmem:[#allocation5 + $0x50] sm:$0x30] %v2178_v37  ;;  %v2194_v19 = vrot.slane %v2178_v37, 6  ;;  %v2169_v50 = vmul.f32 %v2161_v9, %v2153_v26  ;;  %2488 = vmatmul.mubr.f32.gmra.mxu1 %v2258_v25  ;;  %5691 = vmatprep.subr.mxu0 %v2544_v5 }
 0x52c   :  { %v2200_v63 = vmul.f32 %v2192_v2, %v2184_v55  ;;  %2151 = vst [vmem:[#allocation5 + $0x78] sm:$0xc] %v2147_v1  ;;  %v2163_v54 = vrot.slane %v2147_v1, 6  ;;  %5692 = vmatpush3.msra.mxu0 %v2544_v5  ;;  %v5325_v5 = vld [vmem:[%s7845_s10 + $0x1b8] sm:$0xff] }
 0x52d   :  { %v2202_v21 = vmul.f32 %v2194_v19, %v2186_v15  ;;  %v2177_v23 = vadd.f32 %v2173_v14, %v2169_v50  ;;  %5693 = vmatprep.subr.mxu0 %v2543_v53 }
 0x52e   :  { %v2208_v33 = vadd.f32 %v2204_v62, %v2200_v63  ;;  %v2171_v27 = vmul.f32 %v2163_v54, %v2155_v47  ;;  %5694 = vmatpush3.msra.mxu0 %v2543_v53  ;;  %v2529_v63 = vpop.permute.xlu0 %2528  ;;  %v5327_v53 = vld [vmem:[%s7845_s10 + $0x1c8] sm:$0xff] }
 0x52f   :  { %v2210_v28 = vadd.f32 %v2206_v7, %v2202_v21  ;;  %2181 = vst [vmem:[#allocation5 + $0x30] sm:$0x30] %v2177_v23  ;;  %v2193_v34 = vrot.slane %v2177_v23, 6  ;;  %v2531_v23 = vpop.permute.xlu1 %2530 }
 0x530   :  { %2212 = vst [vmem:[#allocation5 + $0x58] sm:$0xc0] %v2208_v33  ;;  %v2179_v35 = vadd.f32 %v2175_v17, %v2171_v27 }
 0x531   :  { %2214 = vst [vmem:[#allocation5 + $0x50] sm:$0xc0] %v2210_v28  ;;  %v2201_v11 = vmul.f32 %v2193_v34, %v2185_v41 }
 0x532   :  { %2183 = vst [vmem:[#allocation5 + $0x78] sm:$0x30] %v2179_v35  ;;  %v2195_v3 = vrot.slane %v2179_v35, 6 }
 0x533   :  { %v2209_v22 = vadd.f32 %v2205_v20, %v2201_v11  ;;  %v2533_v11 = vpop.permute.xlu1 %2532 }
 0x534   :  { %v2203_v60 = vmul.f32 %v2195_v3, %v2187_v44  ;;  %v2652_v3 = vld [vmem:[#allocation9 + $0x30] sm:$0xff]  ;;  %v2650_v44 = vld [vmem:[#allocation9 + $0x20] sm:$0xff] }
 0x535   :  { %2213 = vst [vmem:[#allocation5 + $0x30] sm:$0xc0] %v2209_v22  ;;  %v2651_v22 = vld [vmem:[#allocation9 + $0x28] sm:$0xff] }
 0x536   :  { %v2211_v29 = vadd.f32 %v2207_v59, %v2203_v60  ;;  %v5967_v60 = vld [vmem:[%s7844_s9] sm:$0x7] }
 0x537   :  { %v2228_v30 = vld [vmem:[#allocation5 + $0x58] sm:$0xff]  ;;  %v2549_v59 = vrot.slane %v5967_v60, %v6372_v45 }
 0x538   :  { %2215 = vst [vmem:[#allocation5 + $0x78] sm:$0xc0] %v2211_v29  ;;  %v2260_v8 = vmul.f32 %v2228_v30, %v6687_v10  ;;  %v2230_v57 = vld [vmem:[#allocation5 + $0x50] sm:$0xff]  ;;  %v2653_v10 = vld [vmem:[#allocation9 + $0x38] sm:$0xff] }
 0x539   :  { %v2262_v52 = vmul.f32 %v2230_v57, %v7875_v24  ;;  %5703 = vmatprep.subr.mxu1 %v2653_v10  ;;  %v5336_v24 = vld [vmem:[%s7845_s10 + $0x210] sm:$0xff] }
 0x53a   :  { %5704 = vmatpush3.msra.mxu1 %v2653_v10  ;;  %v5326_v10 = vld [vmem:[%s7845_s10 + $0x1c0] sm:$0xff] }
 0x53b   :  { %5705 = vmatprep.subr.mxu1 %v2652_v3 }
 0x53c   :  { %v2229_v36 = vld [vmem:[#allocation5 + $0x30] sm:$0xff]  ;;  %5706 = vmatpush3.msra.mxu1 %v2652_v3 }
 0x53d   :  { %v2261_v40 = vmul.f32 %v2229_v36, %v6693_v12  ;;  %v2542_v12 = vld [vmem:[#allocation17] sm:$0xff]  ;;  %5707 = vmatprep.subr.mxu1 %v2651_v22 }
 0x53e   :  { %5695 = vmatprep.subr.mxu0 %v2542_v12  ;;  %5708 = vmatpush3.msra.mxu1 %v2651_v22 }
 0x53f   :  { %2407 = vmatprep.mubr.f32.mxu0 %v2261_v40  ;;  %v2231_v46 = vld [vmem:[#allocation5 + $0x78] sm:$0xff]  ;;  %5696 = vmatpush3.msra.mxu0 %v2542_v12  ;;  %v5324_v12 = vld [vmem:[%s7845_s10 + $0x1b0] sm:$0xff] }
 0x540   :  { %v2263_v18 = vmul.f32 %v2231_v46, %v981_v61  ;;  %2408 = vmatmul.mubr.f32.gmra.mxu0 %v2260_v8  ;;  %5709 = vmatprep.subr.mxu1 %v2650_v44 }
 0x541   :  { %5710 = vmatpush3.msra.mxu1 %v2650_v44 }
 0x542   :  { %2492 = vmatprep.mubr.f32.mxu1 %v2263_v18  ;;  %v5334_v18 = vld [vmem:[%s7845_s10 + $0x200] sm:$0xff]  ;;  %3085 = vmatprep.subr.mxu1 %v5336_v24 }
 0x543   :  { %2493 = vmatmul.mubr.f32.gmra.mxu1 %v2262_v52  ;;  %v5333_v52 = vld [vmem:[%s7845_s10 + $0x1f8] sm:$0xff]  ;;  %2996 = vmatprep.subr.mxu0 %v5334_v18 }
 0x5b8   :  { %v5451_v51 = vpop.f32.mrf.mxu0 }
 0x5ba   :  { %v5452_v13 = vpop.f32.mrf.mxu0 }
 0x5bb   :  { %v5495_v56 = vpop.f32.mrf.mxu1  ;;  %v5453_v48 = vadd.f32 %v5452_v13, %v5451_v51  ;;  %v5316_v51 = vld [vmem:[%s7845_s10 + $0x170] sm:$0xff]  ;;  %v5318_v13 = vld [vmem:[%s7845_s10 + $0x180] sm:$0xff] }
 0x5bd   :  { %v5496_v58 = vpop.f32.mrf.mxu1 }
 0x5be   :  { %v5497_v31 = vadd.f32 %v5496_v58, %v5495_v56  ;;  %v5315_v56 = vld [vmem:[%s7845_s10 + $0x168] sm:$0xff] }
 0x5bf   :  { %v5307_v58 = vld [vmem:[%s7845_s10 + $0x128] sm:$0xff] }
 0x5c0   :  { %v2480_v6 = vadd.f32 %v5497_v31, %v5453_v48  ;;  %v5317_v48 = vld [vmem:[%s7845_s10 + $0x178] sm:$0xff] }
 0x5c1   :  { %v5309_v31 = vld [vmem:[%s7845_s10 + $0x138] sm:$0xff] }
 0x5c2   :  { %v2538_v2 = vmul.f32 %v2527_v32, %v2480_v6  ;;  %v5306_v6 = vld [vmem:[%s7845_s10 + $0x120] sm:$0xff]  ;;  %v5308_v32 = vld [vmem:[%s7845_s10 + $0x130] sm:$0xff] }
 0x5c4   :  { %5697 = vmatprep.mubr.msk.f32.mxu0 %vm316_vm1, %v2538_v2  ;;  %v5338_v2 = vld [vmem:[%s7845_s10 + $0x220] sm:$0xff] }
 0x5d0   :  { %v5454_v37 = vpop.f32.mrf.mxu0 }
 0x5d2   :  { %v5455_v9 = vpop.f32.mrf.mxu0 }
 0x5d3   :  { %v5498_v49 = vpop.f32.mrf.mxu1  ;;  %v5456_v25 = vadd.f32 %v5455_v9, %v5454_v37  ;;  %v5340_v37 = vld [vmem:[%s7845_s10 + $0x230] sm:$0xff]  ;;  %v5301_v9 = vld [vmem:[#allocation11 + $0x1] ss:$0 sm:$0xff] }
 0x5d5   :  { %v5499_v55 = vpop.f32.mrf.mxu1 }
 0x5d6   :  { %v5500_v26 = vadd.f32 %v5499_v55, %v5498_v49 }
 0x5d8   :  { %v2485_v1 = vadd.f32 %v5500_v26, %v5456_v25 }
 0x5da   :  { %v2539_v62 = vmul.f32 %v2529_v63, %v2485_v1 }
 0x5dc   :  { %5698 = vmatmul.mubr.msk.f32.vlgmr.msra.gmra.mxu0 %vm316_vm1, %v2539_v62 }
 0x5dd   :  { %2997 = vmatpush1.msra.mxu0 %v5333_v52 }
 0x5de   :  { %2998 = vmatprep.subr.mxu0 %v5325_v5 }
 0x5df   :  { %2999 = vmatpush1.msra.mxu0 %v5324_v12 }
 0x5e0   :  { %3000 = vmatprep.subr.mxu0 %v5316_v51 }
 0x5e1   :  { %3001 = vmatpush1.msra.mxu0 %v5315_v56 }
 0x5e2   :  { %3002 = vmatprep.subr.mxu0 %v5307_v58 }
 0x5e3   :  { %3003 = vmatpush1.msra.mxu0 %v5306_v6 }
 0x5e4   :  { %3174 = vmatprep.subr.mxu0 %v5338_v2 }
 0x5e8   :  { %v5457_v19 = vpop.f32.mrf.mxu0 }
 0x5ea   :  { %v5458_v50 = vpop.f32.mrf.mxu0 }
 0x5eb   :  { %v5501_v15 = vpop.f32.mrf.mxu1  ;;  %v5459_v14 = vadd.f32 %v5458_v50, %v5457_v19 }
 0x5ed   :  { %v5502_v54 = vpop.f32.mrf.mxu1 }
 0x5ee   :  { %v5503_v33 = vadd.f32 %v5502_v54, %v5501_v15 }
 0x5f0   :  { %v2490_v21 = vadd.f32 %v5503_v33, %v5459_v14 }
 0x5f2   :  { %v2540_v47 = vmul.f32 %v2531_v23, %v2490_v21  ;;  %v2760_v21 = vld [vmem:[#allocation12 + $0x4] sm:$0xf] }
 0x5f3   :  { %v2808_v3 = vrot.slane %v2760_v21, %v6367_v43 }
 0x5f4   :  { %5700 = vmatprep.mubr.msk.f32.mxu0 %vm316_vm1, %v2540_v47  ;;  %v2784_v47 = vrot.slane %v2760_v21, %v6364_v42 }
 0x600   :  { %v5460_v7 = vpop.f32.mrf.mxu0 }
 0x602   :  { %v5461_v27 = vpop.f32.mrf.mxu0 }
 0x603   :  { %v5504_v28 = vpop.f32.mrf.mxu1  ;;  %v5462_v34 = vadd.f32 %v5461_v27, %v5460_v7  ;;  %v2764_v27 = vrot.slane %v2760_v21, %v6361_v39 }
 0x605   :  { %v5505_v17 = vpop.f32.mrf.mxu1 }
 0x606   :  { %v5506_v41 = vadd.f32 %v5505_v17, %v5504_v28 }
 0x608   :  { %v2495_v35 = vadd.f32 %v5506_v41, %v5462_v34 }
 0x60a   :  { %v2541_v20 = vmul.f32 %v2533_v11, %v2495_v35 }
 0x60c   :  { %5701 = vmatmul.mubr.msk.f32.gmra.mxu0 %vm316_vm1, %v2541_v20 }
 0x60d   :  { %3036 = vmatprep.mubr.f32.mxu0 %v7873_v16 }
 0x69c   :  { %v5699_v29 = vpop.f32.mrf.mxu0 }
 0x69d   :  { %v2634_v40 = vadd.f32 %v5699_v29, %v2549_v59 }
 0x69e   :  { %v2628_v30 = vpop.f32.mrf.mxu0 }
 0x69f   :  { %v2629_v36 = vadd.f32 %v2628_v30, %v2549_v59 }
 0x6a1   :  { %5711 = vmatprep.mubr.msk.f32.mxu1 %vm316_vm1, %v2629_v36  ;;  %v2832_v36 = vrot.slane %v2760_v21, %v6372_v45 }
 0x6a2   :  { %5712 = vmatmul.mubr.msk.f32.vlgmr.msra.gmra.mxu1 %vm316_vm1, %v2634_v40 }
 0x6a3   :  { %3086 = vmatpush1.msra.mxu1 %v5335_v0 }
 0x6a4   :  { %3087 = vmatprep.subr.mxu1 %v5327_v53 }
 0x6a5   :  { %3088 = vmatpush1.msra.mxu1 %v5326_v10 }
 0x6a6   :  { %3089 = vmatprep.subr.mxu1 %v5318_v13 }
 0x6a7   :  { %3090 = vmatpush1.msra.mxu1 %v5317_v48 }
 0x6a8   :  { %3091 = vmatprep.subr.mxu1 %v5309_v31  ;;  %v7876_v31 = vld [vmem:[#allocation26_spill] sm:$0xff] }
 0x6a9   :  { %3092 = vmatpush1.msra.mxu1 %v5308_v32  ;;  %v7877_v32 = vld [vmem:[#allocation25_spill] sm:$0xff] }
 0x6aa   :  { %3263 = vmatprep.subr.mxu1 %v5340_v37 }
 0x6cc   :  { %v5702_v61 = vpop.f32.mrf.mxu0 }
 0x6cd   :  { %v2644_v46 = vadd.f32 %v5702_v61, %v2549_v59 }
 0x6ce   :  { %v2638_v8 = vpop.f32.mrf.mxu0 }
 0x6cf   :  { %v2639_v57 = vadd.f32 %v2638_v8, %v2549_v59  ;;  %v7156_v8 = vld [vmem:[%s7844_s9 + $0x4] sm:$0x7] }
 0x6d0   :  { %v2844_v52 = vrot.slane %v7156_v8, %v6364_v42 }
 0x6d1   :  { %5714 = vmatprep.mubr.msk.f32.mxu1 %vm316_vm1, %v2639_v57 }
 0x6d2   :  { %5715 = vmatmul.mubr.msk.f32.gmra.mxu1 %vm316_vm1, %v2644_v46 }
 0x6d3   :  { %3125 = vmatprep.mubr.f32.mxu1 %v7873_v16 }
 0x762   :  { %v5713_v49 = vpop.f32.mrf.mxu1 }
 0x763   :  { %v7133_v25 = vadd.f32 %v5713_v49, %v5301_v9 }
 0x764   :  { %v2740_v55 = vpop.f32.mrf.mxu1 }
 0x765   :  { %v4845_v26 = vsub.f32 0.0, %v7133_v25  ;;  %v2741_v1 = vadd.f32 %v5301_v9, %v2740_v55  ;;  %v2770_v23 = vrot.slane %v7133_v25, 2  ;;  %v2794_v35 = vrot.slane %v7133_v25, 4 }
 0x766   :  { %v2766_v20 = vmul.f32 %v2764_v27, %v7133_v25  ;;  %v2818_v29 = vrot.slane %v7133_v25, 6 }
 0x767   :  { %v4850_v63 = vmul.f32 1.442695, %v4845_v26  ;;  %v4844_v62 = vsub.f32 0.0, %v2741_v1  ;;  %v2769_v33 = vrot.slane %v2741_v1, 2  ;;  %v2793_v34 = vrot.slane %v2741_v1, 4 }
 0x768   :  { %v2817_v44 = vrot.slane %v2741_v1, 6  ;;  %v2765_v13 = vmul.f32 %v2764_v27, %v2741_v1 }
 0x769   :  { %5878 = vpow2.f32 %v4850_v63  ;;  %v4848_v19 = vmul.f32 1.442695, %v4844_v62  ;;  %v2775_v7 = vsel %vm427_vm5, %v2769_v33, %v2770_v23  ;;  %v2799_v22 = vsel %vm452_vm6, %v2793_v34, %v2794_v35  ;;  %v7878_v63 = vld [vmem:[#allocation24_spill] sm:$0xff] }
 0x76a   :  { %v2786_v17 = vmul.f32 %v2784_v47, %v2775_v7  ;;  %v2810_v30 = vmul.f32 %v2808_v3, %v2799_v22  ;;  %v2823_v40 = vsel %vm477_vm7, %v2817_v44, %v2818_v29 }
 0x76b   :  { %5880 = vpow2.f32 %v4848_v19  ;;  %v2834_v46 = vmul.f32 %v2832_v36, %v2823_v40 }
 0x76c   :  { %v2790_v59 = vadd.f32 %v2786_v17, %v2766_v20 }
 0x76e   :  { %v2814_v61 = vadd.f32 %v2810_v30, %v2790_v59 }
 0x770   :  { %v2838_v0 = vadd.f32 %v2834_v46, %v2814_v61 }
 0x772   :  { %v7176_v49 = vadd.f32 %v2844_v52, %v2838_v0 }
 0x776   :  { %v5879_v50 = vpop.eup %5878 }
 0x777   :  { %v4857_v15 = vadd.f32 1.0, %v5879_v50 }
 0x778   :  { %v5881_v14 = vpop.eup %5880 }
 0x779   :  { %5882 = vrcp.f32 %v4857_v15  ;;  %v4856_v54 = vadd.f32 1.0, %v5881_v14 }
 0x77b   :  { %5884 = vrcp.f32 %v4856_v54 }
 0x786   :  { %v5883_v28 = vpop.eup %5882 }
 0x787   :  { %v4865_v41 = vmul.f32 %v5883_v28, %v7133_v25 }
 0x788   :  { %v5885_v11 = vpop.eup %5884 }
 0x789   :  { %4874 = vrot.lane.b32.xlu1 %v4865_v41, %s6158_s13  ;;  %v4864_v60 = vmul.f32 %v5885_v11, %v2741_v1 }
 0x78b   :  { %4872 = vrot.lane.b32.xlu0 %v4864_v60, %s6158_s13 }
 0x792   :  { %v5716_v57 = vpop.f32.mrf.mxu1 }
 0x793   :  { %v7158_v18 = vadd.f32 %v5716_v57, %v5301_v9 }
 0x794   :  { %v2750_v24 = vpop.f32.mrf.mxu1 }
 0x795   :  { %v2772_v5 = vrot.slane %v7158_v18, 2  ;;  %v2796_v53 = vrot.slane %v7158_v18, 4  ;;  %v2820_v12 = vrot.slane %v7158_v18, 6  ;;  %v4847_v10 = vsub.f32 0.0, %v7158_v18 }
 0x796   :  { %v7166_v51 = vadd.f32 %v5301_v9, %v2750_v24  ;;  %v2768_v9 = vmul.f32 %v2764_v27, %v7158_v18 }
 0x797   :  { %v2776_v56 = vsel %vm427_vm5, %v2772_v5, %v2769_v33  ;;  %v2800_v48 = vsel %vm452_vm6, %v2796_v53, %v2793_v34  ;;  %v2824_v58 = vsel %vm477_vm7, %v2820_v12, %v2817_v44  ;;  %v4854_v37 = vmul.f32 1.442695, %v4847_v10 }
 0x798   :  { %v2777_v6 = vmul.f32 %v7876_v31, %v2776_v56  ;;  %v2801_v2 = vmul.f32 %v7877_v32, %v2800_v48  ;;  %v2771_v25 = vrot.slane %v7166_v51, 2  ;;  %v2795_v55 = vrot.slane %v7166_v51, 4 }
 0x799   :  { %v2819_v26 = vrot.slane %v7166_v51, 6  ;;  %v2825_v62 = vmul.f32 %v7878_v63, %v2824_v58  ;;  %5886 = vpow2.f32 %v4854_v37  ;;  %v4846_v19 = vsub.f32 0.0, %v7166_v51 }
 0x79a   :  { %v2785_v1 = vmul.f32 %v2784_v47, %v2777_v6  ;;  %v2773_v50 = vsel %vm427_vm5, %v2771_v25, %v2772_v5  ;;  %v2774_v15 = vsel %vm427_vm5, %v2770_v23, %v2771_v25  ;;  %v2797_v14 = vsel %vm452_vm6, %v2795_v55, %v2796_v53 }
 0x79b   :  { %v2798_v54 = vsel %vm452_vm6, %v2794_v35, %v2795_v55  ;;  %v2767_v33 = vmul.f32 %v2764_v27, %v7166_v51  ;;  %v2787_v21 = vmul.f32 %v2784_v47, %v2774_v15  ;;  %v2788_v7 = vmul.f32 %v2784_v47, %v2773_v50 }
 0x79c   :  { %v2809_v28 = vmul.f32 %v2808_v3, %v2801_v2  ;;  %v2821_v34 = vsel %vm477_vm7, %v2819_v26, %v2820_v12  ;;  %v2822_v17 = vsel %vm477_vm7, %v2818_v29, %v2819_v26  ;;  %v4852_v41 = vmul.f32 1.442695, %v4846_v19 }
 0x79d   :  { %v2789_v11 = vadd.f32 %v2785_v1, %v2765_v13  ;;  %v2791_v23 = vadd.f32 %v2787_v21, %v2767_v33  ;;  %v2811_v20 = vmul.f32 %v2808_v3, %v2798_v54  ;;  %v2812_v22 = vmul.f32 %v2808_v3, %v2797_v14  ;;  %v5339_v14 = vld [vmem:[%s7845_s10 + $0x228] sm:$0xff] }
 0x79e   :  { %v2792_v44 = vadd.f32 %v2788_v7, %v2768_v9  ;;  %5888 = vpow2.f32 %v4852_v41  ;;  %v2833_v35 = vmul.f32 %v2832_v36, %v2825_v62  ;;  %v2850_v27 = vsub.f32 0.0, %v7176_v49  ;;  %v5331_v54 = vld [vmem:[%s7845_s10 + $0x1e8] sm:$0xff]  ;;  %v5328_v7 = vld [vmem:[%s7845_s10 + $0x1d0] sm:$0xff] }
 0x79f   :  { %v2813_v60 = vadd.f32 %v2809_v28, %v2789_v11  ;;  %v2815_v59 = vadd.f32 %v2811_v20, %v2791_v23  ;;  %v2835_v47 = vmul.f32 %v2832_v36, %v2822_v17  ;;  %v2836_v40 = vmul.f32 %v2832_v36, %v2821_v34  ;;  %v5330_v28 = vld [vmem:[%s7845_s10 + $0x1e0] sm:$0xff]  ;;  %v5319_v11 = vld [vmem:[%s7845_s10 + $0x188] sm:$0xff]  ;;  %v5321_v23 = vld [vmem:[%s7845_s10 + $0x198] sm:$0xff] }
 0x7a0   :  { %v2816_v30 = vadd.f32 %v2812_v22, %v2792_v44  ;;  %v2855_v29 = vmul.f32 1.442695, %v2850_v27  ;;  %v5322_v34 = vld [vmem:[%s7845_s10 + $0x1a0] sm:$0xff]  ;;  %v5311_v20 = vld [vmem:[%s7845_s10 + $0x148] sm:$0xff]  ;;  %v5313_v22 = vld [vmem:[%s7845_s10 + $0x158] sm:$0xff] }
 0x7a1   :  { %v2837_v61 = vadd.f32 %v2833_v35, %v2813_v60  ;;  %v2839_v57 = vadd.f32 %v2835_v47, %v2815_v59  ;;  %v5310_v60 = vld [vmem:[%s7845_s10 + $0x140] sm:$0xff]  ;;  %v5312_v35 = vld [vmem:[%s7845_s10 + $0x150] sm:$0xff]  ;;  %v5341_v27 = vld [vmem:[%s7845_s10 + $0x238] sm:$0xff] }
 0x7a2   :  { %v2840_v46 = vadd.f32 %v2836_v40, %v2816_v30  ;;  %5890 = vpow2.f32 %v2855_v29  ;;  %v5332_v59 = vld [vmem:[%s7845_s10 + $0x1f0] sm:$0xff]  ;;  %v5323_v47 = vld [vmem:[%s7845_s10 + $0x1a8] sm:$0xff]  ;;  %v5314_v30 = vld [vmem:[%s7845_s10 + $0x160] sm:$0xff] }
 0x7a3   :  { %v2845_v24 = vadd.f32 %v2844_v52, %v2837_v61  ;;  %v2847_v0 = vadd.f32 %v2844_v52, %v2839_v57  ;;  %v5364_v40 = vld [vmem:[%s7847_s12 + $0x18] sm:$0xff]  ;;  %v5363_v61 = vld [vmem:[%s7847_s12 + $0x10] sm:$0xff]  ;;  %s6160_s12 = smov [#allocation18]  }
 0x7a4   :  { %v7198_v5 = vadd.f32 %v2844_v52, %v2840_v46  ;;  %s5230_s6 = sshll.u32 %s6160_s12, 4  ;;  %s5231_s6 = int_to_ptr.vmem [resolvable:$true] %s5230_s6 }
 0x7a5   :  { %v2849_v53 = vsub.f32 0.0, %v2845_v24  ;;  %v2851_v3 = vsub.f32 0.0, %v2847_v0  ;;  %s6110_s28 = scalar_lea.vmem %s5231_s6, 32  ;;  %p6115_p8 = scmp.lt.s32.totalorder %s5231_s6, %s5231_s6 }
 0x7a6   :  { %v2852_v12 = vsub.f32 0.0, %v7198_v5  ;;  %v5887_v10 = vpop.eup %5886  ;;  %p6111_p7 = scmp.ne.s32.totalorder %s5231_s6, %s6110_s28  ;;  %p6116_p9 = scmp.lt.s32.totalorder %s6110_s28, %s6110_s28 }
 0x7a7   :  { %v2853_v13 = vmul.f32 1.442695, %v2849_v53  ;;  %v4859_v56 = vadd.f32 1.0, %v5887_v10  ;;  %v2857_v48 = vmul.f32 1.442695, %v2851_v3 }
 0x7a8   :  { %v2859_v36 = vmul.f32 1.442695, %v2852_v12  ;;  %p6117_p10 = por %p6116_p9, %p6115_p8 }
 0x7a9   :  { %5892 = vpow2.f32 %v2853_v13 }
 0x7aa   :  { %5894 = vrcp.f32 %v4859_v56  ;;  %p6118_p11 = pnand %p6117_p10, %p6111_p7 }
 0x7ab   :  { %5896 = vpow2.f32 %v2857_v48  ;;  %v5889_v58 = vpop.eup %5888 }
 0x7ac   :  { %v4858_v31 = vadd.f32 1.0, %v5889_v58  ;;  %5898 = vpow2.f32 %v2859_v36 }
 0x7ae   :  { %5900 = vrcp.f32 %v4858_v31 }
 0x7af   :  { %v5891_v6 = vpop.eup %5890 }
 0x7b0   :  { %v2862_v37 = vadd.f32 1.0, %v5891_v6 }
 0x7b6   :  { %v5893_v52 = vpop.eup %5892 }
 0x7b7   :  { %v5895_v32 = vpop.eup %5894  ;;  %v2861_v2 = vadd.f32 1.0, %v5893_v52 }
 0x7b8   :  { %v5897_v9 = vpop.eup %5896  ;;  %v4867_v25 = vmul.f32 %v5895_v32, %v7158_v18  ;;  %v5337_v18 = vld [vmem:[%s7845_s10 + $0x218] sm:$0xff] }
 0x7b9   :  { %5902 = vrcp.f32 %v2861_v2  ;;  %v5899_v55 = vpop.eup %5898  ;;  %v2863_v26 = vadd.f32 1.0, %v5897_v9 }
 0x7ba   :  { %4878 = vrot.lane.b32.xlu1 %v4867_v25, %s6158_s13  ;;  %5904 = vrcp.f32 %v2862_v37  ;;  %v2864_v62 = vadd.f32 1.0, %v5899_v55 }
 0x7bb   :  { %v5901_v1 = vpop.eup %5900  ;;  %5906 = vrcp.f32 %v2863_v26 }
 0x7bc   :  { %v4866_v63 = vmul.f32 %v5901_v1, %v7166_v51  ;;  %5908 = vrcp.f32 %v2864_v62  ;;  %v5329_v51 = vld [vmem:[%s7845_s10 + $0x1d8] sm:$0xff] }
 0x7be   :  { %4876 = vrot.lane.b32.xlu0 %v4866_v63, %s6158_s13  ;;  %v7382_v63 = vld [vmem:[#allocation14 + $0x9] sm:$0xff] }
 0x7c6   :  { %v5903_v19 = vpop.eup %5902 }
 0x7c7   :  { %v7205_v50 = vmul.f32 %v5903_v19, %v2845_v24  ;;  %v5905_v15 = vpop.eup %5904 }
 0x7c8   :  { %v7226_v33 = vmul.f32 %v5905_v15, %v7176_v49  ;;  %v5907_v21 = vpop.eup %5906  ;;  %v5320_v49 = vld [vmem:[%s7845_s10 + $0x190] sm:$0xff]  ;;  %v7879_v15 = vsub.s32 4, %v6358_v38 }
 0x7c9   :  { %5343 = vmatmul.mubr.msk.f32.vlgmr.msra.gmra.mxu0 %vm316_vm1, %v7205_v50  ;;  %5347 = vmatmul.mubr.msk.f32.vlgmr.msra.gmra.mxu1 %vm316_vm1, %v7205_v50  ;;  %v7246_v17 = vmul.f32 %v5907_v21, %v2847_v0  ;;  %v5909_v41 = vpop.eup %5908 }
 0x7ca   :  { %3042 = vmatprep.mubr.f32.mxu0 %v7873_v16  ;;  %3131 = vmatprep.mubr.f32.mxu1 %v7873_v16  ;;  %v7267_v44 = vmul.f32 %v5909_v41, %v7198_v5 }
 0x7cb   :  { %3175 = vmatpush1.msra.mxu0 %v5337_v18  ;;  %3264 = vmatpush1.msra.mxu1 %v5339_v14  ;;  %v7391_v18 = vrot.slane %v7382_v63, %v7879_v15  ;;  %v7880_v14 = vsub.s32 6, %v6358_v38  ;;  %v3578_v15 = vld [vmem:[#allocation15 + $0xe0] sm:$0xff] }
 0x7cc   :  { %3176 = vmatprep.subr.mxu0 %v5329_v51  ;;  %3265 = vmatprep.subr.mxu1 %v5331_v54 }
 0x7cd   :  { %5344 = vmatmul.mubr.msk.f32.gmra.mxu0 %vm316_vm1, %v7226_v33  ;;  %5348 = vmatmul.mubr.msk.f32.gmra.mxu1 %vm316_vm1, %v7226_v33  ;;  %v7396_v51 = vrot.slane %v7382_v63, %v7880_v14  ;;  %v3580_v14 = vld [vmem:[#allocation15 + $0xf0] sm:$0xff] }
 0x7ce   :  { %3048 = vmatprep.mubr.f32.mxu0 %v7873_v16  ;;  %3137 = vmatprep.mubr.f32.mxu1 %v7873_v16 }
 0x7cf   :  { %3177 = vmatpush1.msra.mxu0 %v5328_v7  ;;  %3266 = vmatpush1.msra.mxu1 %v5330_v28  ;;  %v7881_v7 = vsub.s32 5, %v6358_v38 }
 0x7d0   :  { %3178 = vmatprep.subr.mxu0 %v5320_v49  ;;  %3267 = vmatprep.subr.mxu1 %v5322_v34 }
 0x7d1   :  { %5345 = vmatmul.mubr.msk.f32.gmra.mxu0 %vm316_vm1, %v7246_v17  ;;  %5349 = vmatmul.mubr.msk.f32.gmra.mxu1 %vm316_vm1, %v7246_v17  ;;  %v7401_v28 = vrot.slane %v7382_v63, %v7881_v7  ;;  %v3574_v7 = vld [vmem:[#allocation15 + $0xc0] sm:$0xff] }
 0x7d2   :  { %3054 = vmatprep.mubr.f32.mxu0 %v7873_v16  ;;  %3143 = vmatprep.mubr.f32.mxu1 %v7873_v16 }
 0x7d3   :  { %3179 = vmatpush1.msra.mxu0 %v5319_v11  ;;  %3268 = vmatpush1.msra.mxu1 %v5321_v23 }
 0x7d4   :  { %3180 = vmatprep.subr.mxu0 %v5311_v20  ;;  %3269 = vmatprep.subr.mxu1 %v5313_v22  ;;  %v5342_v20 = vld [vmem:[#allocation14 + $0x11] ss:$0 sm:$0xff] }
 0x7d5   :  { %5346 = vmatmul.mubr.msk.f32.gmra.mxu0 %vm316_vm1, %v7267_v44  ;;  %5350 = vmatmul.mubr.msk.f32.gmra.mxu1 %vm316_vm1, %v7267_v44 }
 0x7d6   :  { %3181 = vmatpush1.msra.mxu0 %v5310_v60  ;;  %3214 = vmatprep.mubr.f32.mxu0 %v7873_v16 }
 0x7d7   :  { %3270 = vmatpush1.msra.mxu1 %v5312_v35  ;;  %3303 = vmatprep.mubr.f32.mxu1 %v7873_v16 }
 0x7d8   :  { %5717 = vmatprep.subr.mxu0 %v5341_v27  ;;  %5731 = vmatprep.subr.mxu1 %v5364_v40 }
 0x7d9   :  { %5351 = vmatmul.mubr.msk.f32.vlgmr.msra.gmra.mxu0 %vm316_vm1, %v7205_v50  ;;  %5355 = vmatmul.mubr.msk.f32.vlgmr.msra.gmra.mxu1 %vm316_vm1, %v7205_v50 }
 0x7da   :  { %3220 = vmatprep.mubr.f32.mxu0 %v7873_v16  ;;  %3309 = vmatprep.mubr.f32.mxu1 %v7873_v16 }
 0x7db   :  { %5718 = vmatpush3.msra.mxu0 %v5341_v27  ;;  %5732 = vmatpush3.msra.mxu1 %v5364_v40  ;;  %v3579_v40 = vld [vmem:[#allocation15 + $0xe8] sm:$0xff] }
 0x7dc   :  { %5719 = vmatprep.subr.mxu0 %v5332_v59  ;;  %5733 = vmatprep.subr.mxu1 %v5363_v61 }
 0x7dd   :  { %5352 = vmatmul.mubr.msk.f32.gmra.mxu0 %vm316_vm1, %v7226_v33  ;;  %5356 = vmatmul.mubr.msk.f32.gmra.mxu1 %vm316_vm1, %v7226_v33 }
 0x7de   :  { %3226 = vmatprep.mubr.f32.mxu0 %v7873_v16  ;;  %3315 = vmatprep.mubr.f32.mxu1 %v7873_v16 }
 0x7df   :  { %5720 = vmatpush3.msra.mxu0 %v5332_v59  ;;  %5734 = vmatpush3.msra.mxu1 %v5363_v61  ;;  %v3581_v61 = vld [vmem:[#allocation15 + $0xf8] sm:$0xff] }
 0x7e0   :  { %5721 = vmatprep.subr.mxu0 %v5323_v47  ;;  %3707 = vmatprep.subr.mxu1 %v3581_v61  ;;  %v3435_v61 = vrot.slane %v7156_v8, %v6367_v43 }
 0x7e1   :  { %5353 = vmatmul.mubr.msk.f32.gmra.mxu0 %vm316_vm1, %v7246_v17  ;;  %5357 = vmatmul.mubr.msk.f32.gmra.mxu1 %vm316_vm1, %v7246_v17 }
 0x7e2   :  { %3232 = vmatprep.mubr.f32.mxu0 %v7873_v16  ;;  %3321 = vmatprep.mubr.f32.mxu1 %v7873_v16 }
 0x7e3   :  { %5722 = vmatpush3.msra.mxu0 %v5323_v47 }
 0x7e4   :  { %5723 = vmatprep.subr.mxu0 %v5314_v30 }
 0x7e5   :  { %5354 = vmatmul.mubr.msk.f32.gmra.mxu0 %vm316_vm1, %v7267_v44  ;;  %5358 = vmatmul.mubr.msk.f32.gmra.mxu1 %vm316_vm1, %v7267_v44 }
 0x7e6   :  { %5725 = vmatprep.mubr.msk.f32.mxu0 %vm316_vm1, %v7205_v50  ;;  %5724 = vmatpush3.msra.mxu0 %v5314_v30 }
 0x7e7   :  { %3618 = vmatprep.subr.mxu0 %v3579_v40  ;;  %v3839_v40 = vld [vmem:[%s7838_s3 + $0x78] sm:$0xff] }
 0x7e9   :  { %5726 = vmatmul.mubr.msk.f32.vlgmr.msra.gmra.mxu0 %vm316_vm1, %v7226_v33 }
 0x7ea   :  { %5728 = vmatprep.mubr.msk.f32.mxu0 %vm316_vm1, %v7246_v17  ;;  %3619 = vmatpush1.msra.mxu0 %v3578_v15 }
 0x7ed   :  { %5729 = vmatmul.mubr.msk.f32.gmra.mxu0 %vm316_vm1, %v7267_v44 }
 0x7ee   :  { %3658 = vmatprep.mubr.f32.mxu0 %v7873_v16 }
 0x889   :  { %v7330_v57 = vpop.f32.mrf.mxu0  ;;  %v7332_v46 = vpop.f32.mrf.mxu1 }
 0x88b   :  { %v7334_v24 = vpop.f32.mrf.mxu0  ;;  %v7336_v29 = vpop.f32.mrf.mxu1 }
 0x88d   :  { %v7338_v0 = vpop.f32.mrf.mxu0  ;;  %v7340_v5 = vpop.f32.mrf.mxu1 }
 0x88f   :  { %v7342_v53 = vpop.f32.mrf.mxu0  ;;  %v7344_v3 = vpop.f32.mrf.mxu1 }
 0x891   :  { %v7346_v12 = vpop.f32.mrf.mxu0  ;;  %v7348_v10 = vpop.f32.mrf.mxu1 }
 0x893   :  { %v7350_v13 = vpop.f32.mrf.mxu0  ;;  %v7352_v56 = vpop.f32.mrf.mxu1 }
 0x895   :  { %v7354_v48 = vpop.f32.mrf.mxu0  ;;  %v7356_v36 = vpop.f32.mrf.mxu1 }
 0x897   :  { %v7358_v58 = vpop.f32.mrf.mxu0  ;;  %v7360_v31 = vpop.f32.mrf.mxu1 }
 0x899   :  { %v7362_v6 = vpop.f32.mrf.mxu0  ;;  %v7364_v52 = vpop.f32.mrf.mxu1 }
 0x89b   :  { %v7366_v32 = vpop.f32.mrf.mxu0  ;;  %v7368_v2 = vpop.f32.mrf.mxu1 }
 0x89d   :  { %v7370_v37 = vpop.f32.mrf.mxu0  ;;  %v7372_v9 = vpop.f32.mrf.mxu1 }
 0x89f   :  { %v7374_v25 = vpop.f32.mrf.mxu0  ;;  %v7376_v55 = vpop.f32.mrf.mxu1 }
 0x8a1   :  { %v7378_v26 = vpop.f32.mrf.mxu0  ;;  %v7380_v1 = vpop.f32.mrf.mxu1 }
 0x8a3   :  { %v7384_v62 = vpop.f32.mrf.mxu0  ;;  %v7386_v19 = vpop.f32.mrf.mxu1 }
 0x8a5   :  { %v3234_v54 = vpop.f32.mrf.mxu0  ;;  %v3323_v21 = vpop.f32.mrf.mxu1 }
 0x8a6   :  { %v7404_v49 = vadd.f32 %v3234_v54, %v7391_v18  ;;  %v7407_v34 = vadd.f32 %v3323_v21, %v7396_v51  ;;  %v3575_v54 = vld [vmem:[#allocation15 + $0xc8] sm:$0xff]  ;;  %v3577_v21 = vld [vmem:[#allocation15 + $0xd8] sm:$0xff] }
 0x8a7   :  { %v3236_v41 = vpop.f32.mrf.mxu0  ;;  %3620 = vmatprep.subr.mxu0 %v3575_v54  ;;  %v7425_v15 = vpop.f32.mrf.mxu1 }
 0x8a8   :  { %7882 = vst [vmem:[#allocation27_spill] sm:$0xff] %v7404_v49  ;;  %7883 = vst [vmem:[#allocation26_spill] sm:$0xff] %v7407_v34  ;;  %v7410_v11 = vadd.f32 %v3236_v41, %v7401_v28  ;;  %v3576_v41 = vld [vmem:[#allocation15 + $0xd0] sm:$0xff]  ;;  %3621 = vmatpush1.msra.mxu0 %v3574_v7 }
 0x8a9   :  { %v5727_v23 = vpop.f32.mrf.mxu0 }
 0x8aa   :  { %v3400_v35 = vadd.f32 %v5727_v23, %v5342_v20  ;;  %v3571_v23 = vld [vmem:[#allocation15 + $0xa8] sm:$0xff] }
 0x8ab   :  { %v3394_v22 = vpop.f32.mrf.mxu0  ;;  %3622 = vmatprep.subr.mxu0 %v3571_v23 }
 0x8ac   :  { %v3395_v60 = vadd.f32 %v5342_v20, %v3394_v22  ;;  %v3570_v22 = vld [vmem:[#allocation15 + $0xa0] sm:$0xff] }
 0x8ad   :  { %v5730_v27 = vpop.f32.mrf.mxu0  ;;  %3623 = vmatpush1.msra.mxu0 %v3570_v22 }
 0x8ae   :  { %5735 = vmatprep.mubr.msk.f32.mxu1 %vm1090_vm8, %v3395_v60  ;;  %v3410_v30 = vadd.f32 %v5730_v27, %v5342_v20  ;;  %v3572_v60 = vld [vmem:[#allocation15 + $0xb0] sm:$0xff]  ;;  %v3569_v27 = vld [vmem:[#allocation15 + $0x98] sm:$0xff] }
 0x8af   :  { %v3404_v59 = vpop.f32.mrf.mxu0  ;;  %5736 = vmatmul.mubr.msk.f32.vlgmr.msra.gmra.mxu1 %vm1090_vm8, %v3400_v35  ;;  %v3567_v35 = vld [vmem:[#allocation15 + $0x88] sm:$0xff] }
 0x8b0   :  { %v3405_v47 = vadd.f32 %v5342_v20, %v3404_v59  ;;  %3708 = vmatpush1.msra.mxu1 %v3580_v14  ;;  %v3573_v20 = vld [vmem:[#allocation15 + $0xb8] sm:$0xff]  ;;  %v3566_v59 = vld [vmem:[#allocation15 + $0x80] sm:$0xff]  ;;  %3624 = vmatprep.subr.mxu0 %v3567_v35 }
 0x8b1   :  { %3709 = vmatprep.subr.mxu1 %v3577_v21  ;;  %3625 = vmatpush1.msra.mxu0 %v3566_v59 }
 0x8b2   :  { %5738 = vmatprep.mubr.msk.f32.mxu1 %vm1090_vm8, %v3405_v47  ;;  %3710 = vmatpush1.msra.mxu1 %v3576_v41  ;;  %v3568_v47 = vld [vmem:[#allocation15 + $0x90] sm:$0xff] }
 0x8b3   :  { %5739 = vmatmul.mubr.msk.f32.gmra.mxu1 %vm1090_vm8, %v3410_v30  ;;  %3711 = vmatprep.subr.mxu1 %v3573_v20  ;;  %v3837_v30 = vld [vmem:[%s7838_s3 + $0x68] sm:$0xff] }
 0x8b4   :  { %3747 = vmatprep.mubr.f32.mxu1 %v7873_v16  ;;  %3712 = vmatpush1.msra.mxu1 %v3572_v60 }
 0x8b5   :  { %3713 = vmatprep.subr.mxu1 %v3569_v27  ;;  %3876 = vmatprep.subr.mxu0 %v3837_v30 }
 0x8b6   :  { %3714 = vmatpush1.msra.mxu1 %v3568_v47 }
 0x8b7   :  { %3965 = vmatprep.subr.mxu1 %v3839_v40 }
 0x96f   :  { %v5737_v14 = vpop.f32.mrf.mxu1 }
 0x970   :  { %v3520_v54 = vadd.f32 %v5737_v14, %v3435_v61 }
 0x971   :  { %v3514_v21 = vpop.f32.mrf.mxu1 }
 0x972   :  { %v3534_v7 = vmin.f32 %v3520_v54, 20.0  ;;  %v3515_v41 = vadd.f32 %v3514_v21, %v3435_v61  ;;  %vm3546_vm14 = vcmp.gt.f32.partialorder %v3520_v54, 20.0 }
 0x973   :  { %v5740_v23 = vpop.f32.mrf.mxu1 }
 0x974   :  { %v3539_v20 = vmul.f32 1.442695, %v3534_v7  ;;  %v3533_v22 = vmin.f32 %v3515_v41, 20.0  ;;  %v7427_v60 = vadd.f32 %v5740_v23, %v3435_v61  ;;  %vm3545_vm13 = vcmp.gt.f32.partialorder %v3515_v41, 20.0 }
 0x975   :  { %v3524_v35 = vpop.f32.mrf.mxu1 }
 0x976   :  { %5910 = vpow2.f32 %v3539_v20  ;;  %v3537_v27 = vmul.f32 1.442695, %v3533_v22  ;;  %v3536_v59 = vmin.f32 %v7427_v60, 20.0  ;;  %v3525_v47 = vadd.f32 %v3524_v35, %v3435_v61 }
 0x977   :  { %vm3548_vm0 = vcmp.gt.f32.partialorder %v7427_v60, 20.0 }
 0x978   :  { %5912 = vpow2.f32 %v3537_v27  ;;  %v3543_v8 = vmul.f32 1.442695, %v3536_v59  ;;  %v3535_v30 = vmin.f32 %v3525_v47, 20.0  ;;  %vm3547_vm15 = vcmp.gt.f32.partialorder %v3525_v47, 20.0 }
 0x97a   :  { %v3541_v40 = vmul.f32 1.442695, %v3535_v30  ;;  %5914 = vpow2.f32 %v3543_v8  ;;  %v3836_v8 = vld [vmem:[%s7838_s3 + $0x60] sm:$0xff] }
 0x97c   :  { %5916 = vpow2.f32 %v3541_v40 }
 0x983   :  { %v5911_v14 = vpop.eup %5910 }
 0x984   :  { %v3550_v4 = vadd.f32 1.0, %v5911_v14  ;;  %v3832_v14 = vld [vmem:[%s7838_s3 + $0x40] sm:$0xff] }
 0x985   :  { %v5913_v21 = vpop.eup %5912 }
 0x986   :  { %v3549_v34 = vadd.f32 1.0, %v5913_v21  ;;  %5918 = vlog2.f32 %v3550_v4  ;;  %v3838_v4 = vld [vmem:[%s7838_s3 + $0x70] sm:$0xff] }
 0x987   :  { %v5915_v7 = vpop.eup %5914  ;;  %v3834_v21 = vld [vmem:[%s7838_s3 + $0x50] sm:$0xff] }
 0x988   :  { %5920 = vlog2.f32 %v3549_v34  ;;  %v3552_v20 = vadd.f32 1.0, %v5915_v7  ;;  %v3835_v34 = vld [vmem:[%s7838_s3 + $0x58] sm:$0xff] }
 0x989   :  { %v5917_v23 = vpop.eup %5916 }
 0x98a   :  { %v3551_v49 = vadd.f32 1.0, %v5917_v23  ;;  %v3831_v23 = vld [vmem:[%s7838_s3 + $0x38] sm:$0xff] }
 0x98c   :  { %5922 = vlog2.f32 %v3551_v49  ;;  %v3833_v49 = vld [vmem:[%s7838_s3 + $0x48] sm:$0xff] }
 0x98d   :  { %5924 = vlog2.f32 %v3552_v20 }
 0x993   :  { %v5919_v22 = vpop.eup %5918 }
 0x994   :  { %v3556_v59 = vmul.f32 0.6931472, %v5919_v22 }
 0x995   :  { %v5921_v61 = vpop.eup %5920 }
 0x996   :  { %v3554_v35 = vmul.f32 0.6931472, %v5921_v61  ;;  %v3562_v30 = vsel %vm3546_vm14, %v3520_v54, %v3556_v59  ;;  %v3829_v54 = vld [vmem:[%s7838_s3 + $0x28] sm:$0xff]  ;;  %v3828_v61 = vld [vmem:[%s7838_s3 + $0x20] sm:$0xff] }
 0x997   :  { %v3825_v59 = vld [vmem:[%s7838_s3 + $0x8] sm:$0xff] }
 0x998   :  { %v3561_v27 = vsel %vm3545_vm13, %v3515_v41, %v3554_v35  ;;  %v3830_v35 = vld [vmem:[%s7838_s3 + $0x30] sm:$0xff] }
 0x999   :  { %5369 = vmatmul.mubr.msk.f32.vlgmr.msra.gmra.mxu0 %vm316_vm1, %v3561_v27  ;;  %5373 = vmatmul.mubr.msk.f32.vlgmr.msra.gmra.mxu1 %vm316_vm1, %v3561_v27  ;;  %v5923_v41 = vpop.eup %5922 }
 0x99a   :  { %3664 = vmatprep.mubr.f32.mxu0 %v7873_v16  ;;  %3753 = vmatprep.mubr.f32.mxu1 %v7873_v16  ;;  %v3558_v40 = vmul.f32 0.6931472, %v5923_v41  ;;  %v5925_v7 = vpop.eup %5924  ;;  %v4625_v41 = vld [vmem:[%s7874_s19 + $0x78] sm:$0xff] }
 0x99b   :  { %3877 = vmatpush1.msra.mxu0 %v3836_v8  ;;  %3966 = vmatpush1.msra.mxu1 %v3838_v4  ;;  %v3560_v22 = vmul.f32 0.6931472, %v5925_v7  ;;  %v3824_v8 = vld [vmem:[%s7838_s3] sm:$0xff]  ;;  %v4639_v7 = vld [vmem:[%s7874_s19 + $0xe8] sm:$0xff] }
 0x99c   :  { %3878 = vmatprep.subr.mxu0 %v3833_v49  ;;  %3967 = vmatprep.subr.mxu1 %v3835_v34  ;;  %v3563_v20 = vsel %vm3547_vm15, %v3525_v47, %v3558_v40  ;;  %v3827_v47 = vld [vmem:[%s7838_s3 + $0x18] sm:$0xff]  ;;  %v3826_v49 = vld [vmem:[%s7838_s3 + $0x10] sm:$0xff]  ;;  %v3820_v34 = vmul.f32 %v3561_v27, %v7205_v50 }
 0x99d   :  { %5370 = vmatmul.mubr.msk.f32.gmra.mxu0 %vm316_vm1, %v3562_v30  ;;  %5374 = vmatmul.mubr.msk.f32.gmra.mxu1 %vm316_vm1, %v3562_v30  ;;  %v3564_v4 = vsel %vm3548_vm0, %v7427_v60, %v3560_v22  ;;  %v3821_v60 = vmul.f32 %v3562_v30, %v7226_v33  ;;  %v3822_v50 = vmul.f32 %v3563_v20, %v7246_v17  ;;  %v4641_v27 = vld [vmem:[%s7874_s19 + $0xf8] sm:$0xff]  ;;  %v4640_v30 = vld [vmem:[%s7874_s19 + $0xf0] sm:$0xff]  ;;  %v4638_v22 = vld [vmem:[%s7874_s19 + $0xe0] sm:$0xff] }
 0x99e   :  { %3670 = vmatprep.mubr.f32.mxu0 %v7873_v16  ;;  %3759 = vmatprep.mubr.f32.mxu1 %v7873_v16  ;;  %v3823_v33 = vmul.f32 %v3564_v4, %v7267_v44  ;;  %v4673_v17 = vld [vmem:[%s7874_s19 + $0x1f8] sm:$0xff]  ;;  %v4672_v40 = vld [vmem:[%s7874_s19 + $0x1f0] sm:$0xff] }
 0x99f   :  { %3879 = vmatpush1.msra.mxu0 %v3832_v14  ;;  %3968 = vmatpush1.msra.mxu1 %v3834_v21  ;;  %v4657_v44 = vld [vmem:[%s7874_s19 + $0x178] sm:$0xff]  ;;  %v4624_v14 = vld [vmem:[%s7874_s19 + $0x70] sm:$0xff] }
 0x9a0   :  { %3880 = vmatprep.subr.mxu0 %v3829_v54  ;;  %3969 = vmatprep.subr.mxu1 %v3831_v23  ;;  %v4656_v21 = vld [vmem:[%s7874_s19 + $0x170] sm:$0xff]  ;;  %v4671_v54 = vld [vmem:[%s7874_s19 + $0x1e8] sm:$0xff] }
 0x9a1   :  { %5371 = vmatmul.mubr.msk.f32.gmra.mxu0 %vm316_vm1, %v3563_v20  ;;  %5375 = vmatmul.mubr.msk.f32.gmra.mxu1 %vm316_vm1, %v3563_v20  ;;  %v4623_v23 = vld [vmem:[%s7874_s19 + $0x68] sm:$0xff] }
 0x9a2   :  { %3676 = vmatprep.mubr.f32.mxu0 %v7873_v16  ;;  %3765 = vmatprep.mubr.f32.mxu1 %v7873_v16  ;;  %v4655_v20 = vld [vmem:[%s7874_s19 + $0x168] sm:$0xff] }
 0x9a3   :  { %3881 = vmatpush1.msra.mxu0 %v3828_v61  ;;  %3970 = vmatpush1.msra.mxu1 %v3830_v35  ;;  %v4670_v61 = vld [vmem:[%s7874_s19 + $0x1e0] sm:$0xff] }
 0x9a4   :  { %3882 = vmatprep.subr.mxu0 %v3825_v59  ;;  %3971 = vmatprep.subr.mxu1 %v3827_v47  ;;  %v4622_v35 = vld [vmem:[%s7874_s19 + $0x60] sm:$0xff]  ;;  %v4637_v47 = vld [vmem:[%s7874_s19 + $0xd8] sm:$0xff] }
 0x9a5   :  { %5372 = vmatmul.mubr.msk.f32.gmra.mxu0 %vm316_vm1, %v3564_v4  ;;  %5376 = vmatmul.mubr.msk.f32.gmra.mxu1 %vm316_vm1, %v3564_v4  ;;  %v4654_v59 = vld [vmem:[%s7874_s19 + $0x160] sm:$0xff]  ;;  %v4621_v4 = vld [vmem:[%s7874_s19 + $0x58] sm:$0xff] }
 0x9a6   :  { %3883 = vmatpush1.msra.mxu0 %v3824_v8  ;;  %3916 = vmatprep.mubr.f32.mxu0 %v7873_v16  ;;  %v4669_v8 = vld [vmem:[%s7874_s19 + $0x1d8] sm:$0xff] }
 0x9a7   :  { %3972 = vmatpush1.msra.mxu1 %v3826_v49  ;;  %4005 = vmatprep.mubr.f32.mxu1 %v7873_v16  ;;  %v4653_v49 = vld [vmem:[%s7874_s19 + $0x158] sm:$0xff] }
 0x9a8   :  { %5537 = vmatprep.subr.mxu0 %v4641_v27  ;;  %5581 = vmatprep.subr.mxu1 %v4673_v17  ;;  %v4635_v27 = vld [vmem:[%s7874_s19 + $0xc8] sm:$0xff] }
 0x9a9   :  { %5377 = vmatmul.mubr.msk.f32.vlgmr.msra.gmra.mxu0 %vm316_vm1, %v3820_v34  ;;  %5381 = vmatmul.mubr.msk.f32.vlgmr.msra.gmra.mxu1 %vm316_vm1, %v3820_v34  ;;  %v4636_v34 = vld [vmem:[%s7874_s19 + $0xd0] sm:$0xff]  ;;  %v4667_v17 = vld [vmem:[%s7874_s19 + $0x1c8] sm:$0xff] }
 0x9aa   :  { %3922 = vmatprep.mubr.f32.mxu0 %v7873_v16  ;;  %4011 = vmatprep.mubr.f32.mxu1 %v7873_v16 }
 0x9ab   :  { %5538 = vmatpush3.msra.mxu0 %v4625_v41  ;;  %5582 = vmatpush3.msra.mxu1 %v4657_v44  ;;  %v4619_v41 = vld [vmem:[%s7874_s19 + $0x48] sm:$0xff] }
 0x9ac   :  { %5539 = vmatprep.subr.mxu0 %v4640_v30  ;;  %5583 = vmatprep.subr.mxu1 %v4672_v40  ;;  %v4651_v44 = vld [vmem:[%s7874_s19 + $0x148] sm:$0xff]  ;;  %v4634_v30 = vld [vmem:[%s7874_s19 + $0xc0] sm:$0xff] }
 0x9ad   :  { %5378 = vmatmul.mubr.msk.f32.gmra.mxu0 %vm316_vm1, %v3821_v60  ;;  %5382 = vmatmul.mubr.msk.f32.gmra.mxu1 %vm316_vm1, %v3821_v60  ;;  %v4668_v60 = vld [vmem:[%s7874_s19 + $0x1d0] sm:$0xff]  ;;  %v4666_v40 = vld [vmem:[%s7874_s19 + $0x1c0] sm:$0xff] }
 0x9ae   :  { %3928 = vmatprep.mubr.f32.mxu0 %v7873_v16  ;;  %4017 = vmatprep.mubr.f32.mxu1 %v7873_v16 }
 0x9af   :  { %5540 = vmatpush3.msra.mxu0 %v4624_v14  ;;  %5584 = vmatpush3.msra.mxu1 %v4656_v21  ;;  %v4618_v14 = vld [vmem:[%s7874_s19 + $0x40] sm:$0xff] }
 0x9b0   :  { %5541 = vmatprep.subr.mxu0 %v4639_v7  ;;  %5585 = vmatprep.subr.mxu1 %v4671_v54  ;;  %v4650_v21 = vld [vmem:[%s7874_s19 + $0x140] sm:$0xff]  ;;  %v4633_v7 = vld [vmem:[%s7874_s19 + $0xb8] sm:$0xff] }
 0x9b1   :  { %5379 = vmatmul.mubr.msk.f32.gmra.mxu0 %vm316_vm1, %v3822_v50  ;;  %5383 = vmatmul.mubr.msk.f32.gmra.mxu1 %vm316_vm1, %v3822_v50  ;;  %v4620_v50 = vld [vmem:[%s7874_s19 + $0x50] sm:$0xff]  ;;  %v4665_v54 = vld [vmem:[%s7874_s19 + $0x1b8] sm:$0xff] }
 0x9b2   :  { %3934 = vmatprep.mubr.f32.mxu0 %v7873_v16  ;;  %4023 = vmatprep.mubr.f32.mxu1 %v7873_v16 }
 0x9b3   :  { %5542 = vmatpush3.msra.mxu0 %v4623_v23  ;;  %5586 = vmatpush3.msra.mxu1 %v4655_v20  ;;  %v4617_v23 = vld [vmem:[%s7874_s19 + $0x38] sm:$0xff] }
 0x9b4   :  { %5543 = vmatprep.subr.mxu0 %v4638_v22  ;;  %5587 = vmatprep.subr.mxu1 %v4670_v61  ;;  %v4649_v20 = vld [vmem:[%s7874_s19 + $0x138] sm:$0xff]  ;;  %v4632_v22 = vld [vmem:[%s7874_s19 + $0xb0] sm:$0xff] }
 0x9b5   :  { %5380 = vmatmul.mubr.msk.f32.gmra.mxu0 %vm316_vm1, %v3823_v33  ;;  %5384 = vmatmul.mubr.msk.f32.gmra.mxu1 %vm316_vm1, %v3823_v33  ;;  %v4652_v33 = vld [vmem:[%s7874_s19 + $0x150] sm:$0xff] }
 0x9b6   :  { %5544 = vmatpush3.msra.mxu0 %v4622_v35  ;;  %5588 = vmatpush3.msra.mxu1 %v4654_v59  ;;  %v4664_v61 = vld [vmem:[%s7874_s19 + $0x1b0] sm:$0xff] }
 0x9b7   :  { %5545 = vmatprep.subr.mxu0 %v4637_v47  ;;  %5589 = vmatprep.subr.mxu1 %v4669_v8  ;;  %v4616_v35 = vld [vmem:[%s7874_s19 + $0x30] sm:$0xff]  ;;  %v4631_v47 = vld [vmem:[%s7874_s19 + $0xa8] sm:$0xff] }
 0x9b8   :  { %5546 = vmatpush3.msra.mxu0 %v4621_v4  ;;  %5590 = vmatpush3.msra.mxu1 %v4653_v49  ;;  %v4648_v59 = vld [vmem:[%s7874_s19 + $0x130] sm:$0xff]  ;;  %v4663_v8 = vld [vmem:[%s7874_s19 + $0x1a8] sm:$0xff] }
 0x9b9   :  { %5547 = vmatprep.subr.mxu0 %v4636_v34  ;;  %5591 = vmatprep.subr.mxu1 %v4668_v60  ;;  %v4615_v4 = vld [vmem:[%s7874_s19 + $0x28] sm:$0xff]  ;;  %v4630_v34 = vld [vmem:[%s7874_s19 + $0xa0] sm:$0xff] }
 0x9ba   :  { %5548 = vmatpush3.msra.mxu0 %v4620_v50  ;;  %5592 = vmatpush3.msra.mxu1 %v4652_v33  ;;  %v4647_v49 = vld [vmem:[%s7874_s19 + $0x128] sm:$0xff]  ;;  %v4662_v60 = vld [vmem:[%s7874_s19 + $0x1a0] sm:$0xff] }
 0x9bb   :  { %5549 = vmatprep.subr.mxu0 %v4635_v27  ;;  %5593 = vmatprep.subr.mxu1 %v4667_v17  ;;  %v4614_v50 = vld [vmem:[%s7874_s19 + $0x20] sm:$0xff]  ;;  %v4629_v27 = vld [vmem:[%s7874_s19 + $0x98] sm:$0xff] }
 0x9bc   :  { %5550 = vmatpush3.msra.mxu0 %v4619_v41  ;;  %5594 = vmatpush3.msra.mxu1 %v4651_v44  ;;  %v4646_v33 = vld [vmem:[%s7874_s19 + $0x120] sm:$0xff]  ;;  %v4661_v17 = vld [vmem:[%s7874_s19 + $0x198] sm:$0xff] }
 0x9bd   :  { %5551 = vmatprep.subr.mxu0 %v4634_v30  ;;  %5595 = vmatprep.subr.mxu1 %v4666_v40  ;;  %v4613_v41 = vld [vmem:[%s7874_s19 + $0x18] sm:$0xff]  ;;  %v4628_v30 = vld [vmem:[%s7874_s19 + $0x90] sm:$0xff] }
 0x9be   :  { %5552 = vmatpush3.msra.mxu0 %v4618_v14  ;;  %5596 = vmatpush3.msra.mxu1 %v4650_v21  ;;  %v4645_v44 = vld [vmem:[%s7874_s19 + $0x118] sm:$0xff]  ;;  %v4660_v40 = vld [vmem:[%s7874_s19 + $0x190] sm:$0xff] }
 0x9bf   :  { %5553 = vmatprep.subr.mxu0 %v4633_v7  ;;  %5597 = vmatprep.subr.mxu1 %v4665_v54  ;;  %v4612_v14 = vld [vmem:[%s7874_s19 + $0x10] sm:$0xff]  ;;  %v4627_v7 = vld [vmem:[%s7874_s19 + $0x88] sm:$0xff] }
 0x9c0   :  { %5554 = vmatpush3.msra.mxu0 %v4617_v23  ;;  %5598 = vmatpush3.msra.mxu1 %v4649_v20  ;;  %v4644_v21 = vld [vmem:[%s7874_s19 + $0x110] sm:$0xff]  ;;  %v4659_v54 = vld [vmem:[%s7874_s19 + $0x188] sm:$0xff] }
 0x9c1   :  { %5555 = vmatprep.subr.mxu0 %v4632_v22  ;;  %5599 = vmatprep.subr.mxu1 %v4664_v61  ;;  %v4611_v23 = vld [vmem:[%s7874_s19 + $0x8] sm:$0xff]  ;;  %v4626_v22 = vld [vmem:[%s7874_s19 + $0x80] sm:$0xff] }
 0x9c2   :  { %5556 = vmatpush3.msra.mxu0 %v4616_v35  ;;  %5600 = vmatpush3.msra.mxu1 %v4648_v59  ;;  %v4643_v20 = vld [vmem:[%s7874_s19 + $0x108] sm:$0xff]  ;;  %v4658_v61 = vld [vmem:[%s7874_s19 + $0x180] sm:$0xff] }
 0x9c3   :  { %5557 = vmatprep.subr.mxu0 %v4631_v47  ;;  %5601 = vmatprep.subr.mxu1 %v4663_v8  ;;  %v4610_v35 = vld [vmem:[%s7874_s19] sm:$0xff] }
 0x9c4   :  { %5558 = vmatpush3.msra.mxu0 %v4615_v4  ;;  %5602 = vmatpush3.msra.mxu1 %v4647_v49  ;;  %v4642_v59 = vld [vmem:[%s7874_s19 + $0x100] sm:$0xff] }
 0x9c5   :  { %5559 = vmatprep.subr.mxu0 %v4630_v34  ;;  %5603 = vmatprep.subr.mxu1 %v4662_v60 }
 0x9c6   :  { %5560 = vmatpush3.msra.mxu0 %v4614_v50  ;;  %5604 = vmatpush3.msra.mxu1 %v4646_v33 }
 0x9c7   :  { %5561 = vmatprep.subr.mxu0 %v4629_v27  ;;  %5605 = vmatprep.subr.mxu1 %v4661_v17 }
 0x9c8   :  { %5562 = vmatpush3.msra.mxu0 %v4613_v41  ;;  %5606 = vmatpush3.msra.mxu1 %v4645_v44 }
 0x9c9   :  { %5563 = vmatprep.subr.mxu0 %v4628_v30  ;;  %5607 = vmatprep.subr.mxu1 %v4660_v40 }
 0x9ca   :  { %5564 = vmatpush3.msra.mxu0 %v4612_v14  ;;  %5608 = vmatpush3.msra.mxu1 %v4644_v21 }
 0x9cb   :  { %5565 = vmatprep.subr.mxu0 %v4627_v7  ;;  %5609 = vmatprep.subr.mxu1 %v4659_v54 }
 0x9cc   :  { %5566 = vmatpush3.msra.mxu0 %v4611_v23  ;;  %5610 = vmatpush3.msra.mxu1 %v4643_v20 }
 0x9cd   :  { %5567 = vmatprep.subr.mxu0 %v4626_v22  ;;  %5611 = vmatprep.subr.mxu1 %v4658_v61  ;;  %v7703_v22 = vrot.slane %v7382_v63, %v6364_v42 }
 0x9ce   :  { %5568 = vmatpush3.msra.mxu0 %v4610_v35  ;;  %5612 = vmatpush3.msra.mxu1 %v4642_v59  ;;  %v7707_v59 = vrot.slane %v7382_v63, %v6372_v45 }
 0x9cf   :  { %5755 = vmatprep.subr.mxu1 %v7873_v16 }
 0xa59   :  { %v3660_v47 = vpop.f32.mrf.mxu0  ;;  %v3749_v8 = vpop.f32.mrf.mxu1 }
 0xa5a   :  { %v3772_v4 = vmul.f32 1.442695, %v3660_v47  ;;  %v3776_v49 = vmul.f32 1.442695, %v3749_v8 }
 0xa5b   :  { %v3662_v34 = vpop.f32.mrf.mxu0  ;;  %v3751_v60 = vpop.f32.mrf.mxu1 }
 0xa5c   :  { %5926 = vpow2.f32 %v3772_v4  ;;  %v3774_v50 = vmul.f32 1.442695, %v3662_v34  ;;  %v3778_v33 = vmul.f32 1.442695, %v3751_v60  ;;  %v7711_v4 = vrot.slane %v7382_v63, %v6367_v43 }
 0xa5d   :  { %5928 = vpow2.f32 %v3776_v49  ;;  %v3666_v27 = vpop.f32.mrf.mxu0  ;;  %v3755_v17 = vpop.f32.mrf.mxu1  ;;  %v7715_v60 = vrot.slane %v7382_v63, %v6361_v39 }
 0xa5e   :  { %5930 = vpow2.f32 %v3774_v50  ;;  %v3780_v41 = vmul.f32 1.442695, %v3666_v27  ;;  %v3784_v44 = vmul.f32 1.442695, %v3755_v17  ;;  %v3039_v27 = vadd.f32 %v7330_v57, %v7703_v22 }
 0xa5f   :  { %5932 = vpow2.f32 %v3778_v33  ;;  %v3668_v30 = vpop.f32.mrf.mxu0  ;;  %v3757_v40 = vpop.f32.mrf.mxu1  ;;  %v3041_v39 = vadd.f32 %v7334_v24, %v7711_v4  ;;  %v3130_v57 = vadd.f32 %v7336_v29, %v7715_v60  ;;  %v3045_v24 = vadd.f32 %v7338_v0, %v7703_v22 }
 0xa60   :  { %5934 = vpow2.f32 %v3780_v41  ;;  %v3782_v14 = vmul.f32 1.442695, %v3668_v30  ;;  %v3786_v21 = vmul.f32 1.442695, %v3757_v40 }
 0xa61   :  { %5936 = vpow2.f32 %v3784_v44  ;;  %v3672_v7 = vpop.f32.mrf.mxu0  ;;  %v3761_v54 = vpop.f32.mrf.mxu1  ;;  %v3128_v44 = vadd.f32 %v7332_v46, %v7707_v59 }
 0xa62   :  { %5938 = vpow2.f32 %v3782_v14  ;;  %v3788_v23 = vmul.f32 1.442695, %v3672_v7  ;;  %v3792_v20 = vmul.f32 1.442695, %v3761_v54 }
 0xa63   :  { %5940 = vpow2.f32 %v3786_v21  ;;  %v3674_v61 = vpop.f32.mrf.mxu0  ;;  %v3763_v35 = vpop.f32.mrf.mxu1 }
 0xa64   :  { %5942 = vpow2.f32 %v3788_v23  ;;  %v3790_v47 = vmul.f32 1.442695, %v3674_v61  ;;  %v3794_v8 = vmul.f32 1.442695, %v3763_v35 }
 0xa65   :  { %5944 = vpow2.f32 %v3792_v20  ;;  %v3678_v49 = vpop.f32.mrf.mxu0  ;;  %v3767_v34 = vpop.f32.mrf.mxu1 }
 0xa66   :  { %5946 = vpow2.f32 %v3790_v47  ;;  %v3796_v50 = vmul.f32 1.442695, %v3678_v49  ;;  %v3800_v33 = vmul.f32 1.442695, %v3767_v34  ;;  %v3134_v47 = vadd.f32 %v7340_v5, %v7707_v59 }
 0xa67   :  { %5948 = vpow2.f32 %v3794_v8  ;;  %v3680_v17 = vpop.f32.mrf.mxu0  ;;  %v3769_v41 = vpop.f32.mrf.mxu1 }
 0xa68   :  { %5950 = vpow2.f32 %v3796_v50  ;;  %v3798_v30 = vmul.f32 1.442695, %v3680_v17  ;;  %v3802_v40 = vmul.f32 1.442695, %v3769_v41  ;;  %v3136_v17 = vadd.f32 %v7344_v3, %v7715_v60 }
 0xa69   :  { %v5927_v14 = vpop.eup %5926  ;;  %5952 = vpow2.f32 %v3800_v33  ;;  %v3918_v63 = vpop.f32.mrf.mxu0 }
 0xa6a   :  { %v4007_v21 = vpop.f32.mrf.mxu1  ;;  %v5929_v7 = vpop.eup %5928  ;;  %3804 = vst [vmem:[#allocation2 + $0x30] sm:$0xff] %v5927_v14  ;;  %5954 = vpow2.f32 %v3798_v30  ;;  %v4030_v54 = vmul.f32 %v3918_v63, %v3039_v27  ;;  %v3047_v27 = vadd.f32 %v7342_v53, %v7711_v4  ;;  %v3051_v14 = vadd.f32 %v7346_v12, %v7703_v22 }
 0xa6b   :  { %v4032_v23 = vmul.f32 %v4007_v21, %v3128_v44  ;;  %v5931_v20 = vpop.eup %5930  ;;  %3806 = vst [vmem:[#allocation2 + $0x58] sm:$0xff] %v5929_v7  ;;  %5956 = vpow2.f32 %v3802_v40  ;;  %v3920_v46 = vpop.f32.mrf.mxu0 }
 0xa6c   :  { %v4009_v61 = vpop.f32.mrf.mxu1  ;;  %v5933_v35 = vpop.eup %5932  ;;  %3805 = vst [vmem:[#allocation2] sm:$0xff] %v5931_v20  ;;  %4046 = vst [vmem:[#allocation3 + $0x28] sm:$0xff] %v4030_v54  ;;  %v4031_v29 = vmul.f32 %v3920_v46, %v3041_v39  ;;  %v3140_v39 = vadd.f32 %v7348_v10, %v7707_v59  ;;  %v3053_v54 = vadd.f32 %v7350_v13, %v7711_v4 }
 0xa6d   :  { %4048 = vst [vmem:[#allocation3 + $0x10] sm:$0xff] %v4032_v23  ;;  %v4033_v8 = vmul.f32 %v4009_v61, %v3130_v57  ;;  %v5935_v49 = vpop.eup %5934  ;;  %3807 = vst [vmem:[#allocation2 + $0x18] sm:$0xff] %v5933_v35  ;;  %v3924_v34 = vpop.f32.mrf.mxu0  ;;  %v3142_v23 = vadd.f32 %v7352_v56, %v7715_v60  ;;  %v3057_v61 = vadd.f32 %v7354_v48, %v7703_v22 }
 0xa6e   :  { %v4013_v50 = vpop.f32.mrf.mxu1  ;;  %v5937_v33 = vpop.eup %5936  ;;  %3808 = vst [vmem:[#allocation2 + $0x50] sm:$0xff] %v5935_v49  ;;  %4047 = vst [vmem:[#allocation3 + $0x68] sm:$0xff] %v4031_v29  ;;  %v4034_v0 = vmul.f32 %v3924_v34, %v3045_v24  ;;  %v3146_v13 = vadd.f32 %v7356_v36, %v7707_v59  ;;  %v3059_v48 = vadd.f32 %v7358_v58, %v7711_v4 }
 0xa6f   :  { %4049 = vst [vmem:[#allocation3 + $0x40] sm:$0xff] %v4033_v8  ;;  %v4036_v5 = vmul.f32 %v4013_v50, %v3134_v47  ;;  %v5939_v41 = vpop.eup %5938  ;;  %3810 = vst [vmem:[#allocation2 + $0x8] sm:$0xff] %v5937_v33  ;;  %v3926_v44 = vpop.f32.mrf.mxu0  ;;  %v3148_v22 = vadd.f32 %v7360_v31, %v7715_v60 }
 0xa70   :  { %v4015_v30 = vpop.f32.mrf.mxu1  ;;  %v5941_v40 = vpop.eup %5940  ;;  %3809 = vst [vmem:[#allocation2 + $0x68] sm:$0xff] %v5939_v41  ;;  %4050 = vst [vmem:[#allocation3 + $0x48] sm:$0xff] %v4034_v0  ;;  %v4035_v53 = vmul.f32 %v3926_v44, %v3047_v27 }
 0xa71   :  { %4052 = vst [vmem:[#allocation3 + $0x70] sm:$0xff] %v4036_v5  ;;  %v4037_v3 = vmul.f32 %v4015_v30, %v3136_v17  ;;  %v5943_v63 = vpop.eup %5942  ;;  %3811 = vst [vmem:[#allocation2 + $0x48] sm:$0xff] %v5941_v40  ;;  %v3930_v21 = vpop.f32.mrf.mxu0  ;;  %v4062_v20 = vld [vmem:[#allocation2 + $0x30] sm:$0x3] }
 0xa72   :  { %v4019_v7 = vpop.f32.mrf.mxu1  ;;  %v5945_v57 = vpop.eup %5944  ;;  %3812 = vst [vmem:[#allocation2 + $0x40] sm:$0xff] %v5943_v63  ;;  %4051 = vst [vmem:[#allocation3 + $0x30] sm:$0xff] %v4035_v53  ;;  %v4038_v12 = vmul.f32 %v3930_v21, %v3051_v14  ;;  %v4064_v50 = vld [vmem:[#allocation2 + $0x58] sm:$0x3]  ;;  %v4066_v36 = vmul.f32 0.0, %v4062_v20 }
 0xa73   :  { %4053 = vst [vmem:[#allocation3 + $0x38] sm:$0xff] %v4037_v3  ;;  %v4040_v10 = vmul.f32 %v4019_v7, %v3140_v39  ;;  %v5947_v46 = vpop.eup %5946  ;;  %3814 = vst [vmem:[#allocation2 + $0x10] sm:$0xff] %v5945_v57  ;;  %v3932_v35 = vpop.f32.mrf.mxu0  ;;  %v4063_v47 = vld [vmem:[#allocation2] sm:$0x3]  ;;  %v4068_v39 = vmul.f32 0.0, %v4064_v50 }
 0xa74   :  { %v4021_v24 = vpop.f32.mrf.mxu1  ;;  %v5949_v29 = vpop.eup %5948  ;;  %3813 = vst [vmem:[#allocation2 + $0x20] sm:$0xff] %v5947_v46  ;;  %4054 = vst [vmem:[#allocation3 + $0x20] sm:$0xff] %v4038_v12  ;;  %v4039_v56 = vmul.f32 %v3932_v35, %v3053_v54  ;;  %v4067_v49 = vmul.f32 0.0, %v4063_v47  ;;  %v4065_v34 = vld [vmem:[#allocation2 + $0x18] sm:$0x3] }
 0xa75   :  { %4056 = vst [vmem:[#allocation3 + $0x18] sm:$0xff] %v4040_v10  ;;  %v4041_v8 = vmul.f32 %v4021_v24, %v3142_v23  ;;  %v5951_v33 = vpop.eup %5950  ;;  %3815 = vst [vmem:[#allocation2 + $0x38] sm:$0xff] %v5949_v29  ;;  %v3936_v27 = vpop.f32.mrf.mxu0  ;;  %v4071_v0 = vld [vmem:[#allocation3 + $0x68] sm:$0x3]  ;;  %v4069_v30 = vmul.f32 0.0, %v4065_v34 }
 0xa76   :  { %v4025_v17 = vpop.f32.mrf.mxu1  ;;  %v5953_v59 = vpop.eup %5952  ;;  %3816 = vst [vmem:[#allocation2 + $0x60] sm:$0xff] %v5951_v33  ;;  %4055 = vst [vmem:[#allocation3 + $0x78] sm:$0xff] %v4039_v56  ;;  %v4042_v5 = vmul.f32 %v3936_v27, %v3057_v61  ;;  %v4075_v44 = vadd.f32 %v4071_v0, %v4067_v49  ;;  %v4073_v40 = vld [vmem:[#allocation3 + $0x40] sm:$0x3]  ;;  %v4083_v21 = vld [vmem:[#allocation2] sm:$0xc] }
 0xa77   :  { %4057 = vst [vmem:[#allocation3 + $0x58] sm:$0xff] %v4041_v8  ;;  %v4044_v41 = vmul.f32 %v4025_v17, %v3146_v13  ;;  %v5955_v14 = vpop.eup %5954  ;;  %3818 = vst [vmem:[#allocation2 + $0x78] sm:$0xff] %v5953_v59  ;;  %v3938_v58 = vpop.f32.mrf.mxu0  ;;  %v4077_v63 = vadd.f32 %v4073_v40, %v4069_v30  ;;  %v4070_v7 = vld [vmem:[#allocation3 + $0x28] sm:$0x3]  ;;  %v4103_v12 = vld [vmem:[#allocation3 + $0x68] sm:$0xc] }
 0xa78   :  { %v4027_v4 = vpop.f32.mrf.mxu1  ;;  %v5957_v31 = vpop.eup %5956  ;;  %3817 = vst [vmem:[#allocation2 + $0x70] sm:$0xff] %v5955_v14  ;;  %4058 = vst [vmem:[#allocation3] sm:$0xff] %v4042_v5  ;;  %v4043_v60 = vmul.f32 %v3938_v58, %v3059_v48  ;;  %v4091_v3 = vrot.slane %v4075_v44, 6  ;;  %v4074_v23 = vadd.f32 %v4070_v7, %v4066_v36  ;;  %v4085_v10 = vld [vmem:[#allocation2 + $0x18] sm:$0xc] }
 0xa79   :  { %4060 = vst [vmem:[#allocation3 + $0x60] sm:$0xff] %v4044_v41  ;;  %v4045_v53 = vmul.f32 %v4027_v4, %v3148_v22  ;;  %4079 = vst [vmem:[#allocation5] sm:$0x3] %v4075_v44  ;;  %v4093_v54 = vrot.slane %v4077_v63, 6  ;;  %v4072_v20 = vld [vmem:[#allocation3 + $0x10] sm:$0x3] }
 0xa7a   :  { %3819 = vst [vmem:[#allocation2 + $0x28] sm:$0xff] %v5957_v31  ;;  %4059 = vst [vmem:[#allocation3 + $0x8] sm:$0xff] %v4043_v60  ;;  %v4099_v57 = vmul.f32 %v4091_v3, %v4083_v21  ;;  %v4090_v35 = vrot.slane %v4074_v23, 6  ;;  %v4076_v24 = vadd.f32 %v4072_v20, %v4068_v39  ;;  %v4105_v47 = vld [vmem:[#allocation3 + $0x40] sm:$0xc] }
 0xa7b   :  { %4061 = vst [vmem:[#allocation3 + $0x50] sm:$0xff] %v4045_v53  ;;  %4081 = vst [vmem:[#allocation5 + $0x60] sm:$0x3] %v4077_v63  ;;  %v4101_v61 = vmul.f32 %v4093_v54, %v4085_v10  ;;  %v4082_v29 = vld [vmem:[#allocation2 + $0x30] sm:$0xc] }
 0xa7c   :  { %v4107_v46 = vadd.f32 %v4103_v12, %v4099_v57  ;;  %4078 = vst [vmem:[#allocation5 + $0x8] sm:$0x3] %v4074_v23  ;;  %v4098_v8 = vmul.f32 %v4090_v35, %v4082_v29  ;;  %4080 = vst [vmem:[#allocation5 + $0x48] sm:$0x3] %v4076_v24  ;;  %v4092_v49 = vrot.slane %v4076_v24, 6 }
 0xa7d   :  { %v4109_v56 = vadd.f32 %v4105_v47, %v4101_v61  ;;  %v4115_v34 = vld [vmem:[#allocation2] sm:$0x30]  ;;  %v4102_v50 = vld [vmem:[#allocation3 + $0x28] sm:$0xc]  ;;  %v4084_v33 = vld [vmem:[#allocation2 + $0x58] sm:$0xc] }
 0xa7e   :  { %4111 = vst [vmem:[#allocation5] sm:$0xc] %v4107_v46  ;;  %v4123_v13 = vrot.slane %v4107_v46, 6  ;;  %v4106_v27 = vadd.f32 %v4102_v50, %v4098_v8  ;;  %v4100_v17 = vmul.f32 %v4092_v49, %v4084_v33  ;;  %v4135_v0 = vld [vmem:[#allocation3 + $0x68] sm:$0x30] }
 0xa7f   :  { %4113 = vst [vmem:[#allocation5 + $0x60] sm:$0xc] %v4109_v56  ;;  %v4125_v22 = vrot.slane %v4109_v56, 6  ;;  %v4117_v36 = vld [vmem:[#allocation2 + $0x18] sm:$0x30] }
 0xa80   :  { %v4131_v48 = vmul.f32 %v4123_v13, %v4115_v34  ;;  %v4104_v59 = vld [vmem:[#allocation3 + $0x10] sm:$0xc]  ;;  %4110 = vst [vmem:[#allocation5 + $0x8] sm:$0xc] %v4106_v27  ;;  %v4122_v44 = vrot.slane %v4106_v27, 6  ;;  %v5968_v27 = vld [vmem:[#allocation14 + $0x9] sm:$0xff] }
 0xa81   :  { %v4133_v41 = vmul.f32 %v4125_v22, %v4117_v36  ;;  %v4108_v30 = vadd.f32 %v4104_v59, %v4100_v17  ;;  %v4137_v40 = vld [vmem:[#allocation3 + $0x40] sm:$0x30]  ;;  %v4114_v14 = vld [vmem:[#allocation2 + $0x30] sm:$0x30]  ;;  %v4147_v60 = vld [vmem:[#allocation2] sm:$0xc0] }
 0xa82   :  { %v4139_v5 = vadd.f32 %v4135_v0, %v4131_v48  ;;  %v4130_v39 = vmul.f32 %v4122_v44, %v4114_v14  ;;  %v4134_v53 = vld [vmem:[#allocation3 + $0x28] sm:$0x30]  ;;  %v4116_v3 = vld [vmem:[#allocation2 + $0x58] sm:$0x30]  ;;  %v4167_v54 = vld [vmem:[#allocation3 + $0x68] sm:$0xc0]  ;;  %v3219_v14 = vadd.f32 %v7366_v32, %v7401_v28 }
 0xa83   :  { %v4141_v4 = vadd.f32 %v4137_v40, %v4133_v41  ;;  %4112 = vst [vmem:[#allocation5 + $0x48] sm:$0xc] %v4108_v30  ;;  %v4124_v31 = vrot.slane %v4108_v30, 6  ;;  %v4149_v23 = vld [vmem:[#allocation2 + $0x18] sm:$0xc0]  ;;  %v7884_v17 = vsub.s32 7, %v6358_v38 }
 0xa84   :  { %4143 = vst [vmem:[#allocation5] sm:$0x30] %v4139_v5  ;;  %v4155_v58 = vrot.slane %v4139_v5, 6  ;;  %v4138_v7 = vadd.f32 %v4134_v53, %v4130_v39  ;;  %v4136_v12 = vld [vmem:[#allocation3 + $0x10] sm:$0x30] }
 0xa85   :  { %4145 = vst [vmem:[#allocation5 + $0x60] sm:$0x30] %v4141_v4  ;;  %v4157_v21 = vrot.slane %v4141_v4, 6  ;;  %v4132_v57 = vmul.f32 %v4124_v31, %v4116_v3  ;;  %v4169_v35 = vld [vmem:[#allocation3 + $0x40] sm:$0xc0]  ;;  %v7751_v0 = vrot.slane %v5968_v27, %v7884_v17 }
 0xa86   :  { %v4163_v63 = vmul.f32 %v4155_v58, %v4147_v60  ;;  %4142 = vst [vmem:[#allocation5 + $0x8] sm:$0x30] %v4138_v7  ;;  %v4154_v46 = vrot.slane %v4138_v7, 6  ;;  %v4146_v24 = vld [vmem:[#allocation2 + $0x30] sm:$0xc0] }
 0xa87   :  { %v4165_v20 = vmul.f32 %v4157_v21, %v4149_v23  ;;  %v4140_v61 = vadd.f32 %v4136_v12, %v4132_v57  ;;  %v4166_v8 = vld [vmem:[#allocation3 + $0x28] sm:$0xc0]  ;;  %v4148_v49 = vld [vmem:[#allocation2 + $0x58] sm:$0xc0]  ;;  %v4179_v34 = vld [vmem:[#allocation2 + $0x68] sm:$0x3]  ;;  %v3308_v53 = vadd.f32 %v7368_v2, %v7751_v0  ;;  %v3217_v12 = vadd.f32 %v7362_v6, %v7391_v18 }
 0xa88   :  { %v4171_v10 = vadd.f32 %v4167_v54, %v4163_v63  ;;  %v4162_v13 = vmul.f32 %v4154_v46, %v4146_v24  ;;  %v4168_v36 = vld [vmem:[#allocation3 + $0x10] sm:$0xc0]  ;;  %v4199_v59 = vld [vmem:[#allocation3 + $0x30] sm:$0x3]  ;;  %v4181_v5 = vld [vmem:[#allocation2 + $0x48] sm:$0x3] }
 0xa89   :  { %v4173_v29 = vadd.f32 %v4169_v35, %v4165_v20  ;;  %4144 = vst [vmem:[#allocation5 + $0x48] sm:$0x30] %v4140_v61  ;;  %v4156_v56 = vrot.slane %v4140_v61, 6  ;;  %v4201_v58 = vld [vmem:[#allocation3 + $0x38] sm:$0x3] }
 0xa8a   :  { %4175 = vst [vmem:[#allocation5] sm:$0xc0] %v4171_v10  ;;  %v4187_v47 = vrot.slane %v4171_v10, 6  ;;  %v4170_v33 = vadd.f32 %v4166_v8, %v4162_v13  ;;  %v4178_v4 = vld [vmem:[#allocation2 + $0x50] sm:$0x3]  ;;  %v3306_v13 = vadd.f32 %v7364_v52, %v7396_v51 }
 0xa8b   :  { %4177 = vst [vmem:[#allocation5 + $0x60] sm:$0xc0] %v4173_v29  ;;  %v4189_v50 = vrot.slane %v4173_v29, 6  ;;  %v4164_v48 = vmul.f32 %v4156_v56, %v4148_v49  ;;  %v4211_v63 = vld [vmem:[#allocation2 + $0x68] sm:$0xc] }
 0xa8c   :  { %v4195_v22 = vmul.f32 %v4187_v47, %v4179_v34  ;;  %4174 = vst [vmem:[#allocation5 + $0x8] sm:$0xc0] %v4170_v33  ;;  %v4186_v40 = vrot.slane %v4170_v33, 6  ;;  %v4198_v21 = vld [vmem:[#allocation3 + $0x48] sm:$0x3] }
 0xa8d   :  { %v4172_v41 = vadd.f32 %v4168_v36, %v4164_v48  ;;  %v4197_v30 = vmul.f32 %v4189_v50, %v4181_v5  ;;  %v4180_v32 = vld [vmem:[#allocation2 + $0x8] sm:$0x3]  ;;  %v4231_v20 = vld [vmem:[#allocation3 + $0x30] sm:$0xc]  ;;  %v4213_v46 = vld [vmem:[#allocation2 + $0x48] sm:$0xc] }
 0xa8e   :  { %v4203_v44 = vadd.f32 %v4199_v59, %v4195_v22  ;;  %v4194_v38 = vmul.f32 %v4186_v40, %v4178_v4  ;;  %v4200_v29 = vld [vmem:[#allocation3 + $0x70] sm:$0x3]  ;;  %v4233_v8 = vld [vmem:[#allocation3 + $0x38] sm:$0xc]  ;;  %v4210_v49 = vld [vmem:[#allocation2 + $0x50] sm:$0xc] }
 0xa8f   :  { %4176 = vst [vmem:[#allocation5 + $0x48] sm:$0xc0] %v4172_v41  ;;  %v4205_v31 = vadd.f32 %v4201_v58, %v4197_v30  ;;  %v4188_v60 = vrot.slane %v4172_v41, 6  ;;  %v4243_v27 = vld [vmem:[#allocation2 + $0x68] sm:$0x30] }
 0xa90   :  { %4207 = vst [vmem:[#allocation5 + $0x18] sm:$0x3] %v4203_v44  ;;  %v4219_v39 = vrot.slane %v4203_v44, 6  ;;  %v4202_v23 = vadd.f32 %v4198_v21, %v4194_v38  ;;  %v4230_v17 = vld [vmem:[#allocation3 + $0x48] sm:$0xc] }
 0xa91   :  { %v4563_v3 = vld [vmem:[#allocation5] sm:$0xff]  ;;  %4209 = vst [vmem:[#allocation5 + $0x38] sm:$0x3] %v4205_v31  ;;  %v4221_v54 = vrot.slane %v4205_v31, 6  ;;  %v4196_v61 = vmul.f32 %v4188_v60, %v4180_v32  ;;  %v4212_v44 = vld [vmem:[#allocation2 + $0x8] sm:$0xc] }
 0xa92   :  { %v4595_v7 = vmul.f32 %v4563_v3, %v3219_v14  ;;  %v4227_v57 = vmul.f32 %v4219_v39, %v4211_v63  ;;  %v4565_v10 = vld [vmem:[#allocation5 + $0x60] sm:$0xff]  ;;  %4206 = vst [vmem:[#allocation5 + $0x68] sm:$0x3] %v4202_v23  ;;  %v4218_v47 = vrot.slane %v4202_v23, 6  ;;  %v4263_v30 = vld [vmem:[#allocation3 + $0x30] sm:$0x30] }
 0xa93   :  { %v4597_v35 = vmul.f32 %v4565_v10, %v3308_v53  ;;  %v4229_v2 = vmul.f32 %v4221_v54, %v4213_v46  ;;  %v4562_v56 = vld [vmem:[#allocation5 + $0x8] sm:$0xff]  ;;  %v4204_v34 = vadd.f32 %v4200_v29, %v4196_v61  ;;  %v4232_v31 = vld [vmem:[#allocation3 + $0x70] sm:$0xc]  ;;  %v4265_v38 = vld [vmem:[#allocation3 + $0x38] sm:$0x30] }
 0xa94   :  { %4738 = vmatprep.mubr.f32.mxu0 %v4595_v7  ;;  %v4235_v24 = vadd.f32 %v4231_v20, %v4227_v57  ;;  %v4594_v6 = vmul.f32 %v4562_v56, %v3217_v12  ;;  %v4226_v48 = vmul.f32 %v4218_v47, %v4210_v49  ;;  %v4245_v40 = vld [vmem:[#allocation2 + $0x48] sm:$0x30]  ;;  %v4242_v60 = vld [vmem:[#allocation2 + $0x50] sm:$0x30]  ;;  %v4275_v7 = vld [vmem:[#allocation2 + $0x68] sm:$0xc0] }
 0xa95   :  { %4823 = vmatprep.mubr.f32.mxu1 %v4597_v35  ;;  %v4237_v33 = vadd.f32 %v4233_v8, %v4229_v2  ;;  %4208 = vst [vmem:[#allocation5 + $0x10] sm:$0x3] %v4204_v34  ;;  %v4220_v36 = vrot.slane %v4204_v34, 6  ;;  %v4262_v57 = vld [vmem:[#allocation3 + $0x48] sm:$0x30] }
 0xa96   :  { %4239 = vst [vmem:[#allocation5 + $0x18] sm:$0xc] %v4235_v24  ;;  %v4251_v50 = vrot.slane %v4235_v24, 6  ;;  %v4564_v22 = vld [vmem:[#allocation5 + $0x48] sm:$0xff]  ;;  %4739 = vmatmul.mubr.f32.vlgmr.msra.gmra.mxu0 %v4594_v6  ;;  %v4234_v41 = vadd.f32 %v4230_v17, %v4226_v48  ;;  %v4295_v20 = vld [vmem:[#allocation3 + $0x30] sm:$0xc0] }
 0xa97   :  { %v4596_v59 = vmul.f32 %v4564_v22, %v3306_v13  ;;  %4241 = vst [vmem:[#allocation5 + $0x38] sm:$0xc] %v4237_v33  ;;  %v4253_v52 = vrot.slane %v4237_v33, 6  ;;  %v4228_v14 = vmul.f32 %v4220_v36, %v4212_v44  ;;  %v4244_v10 = vld [vmem:[#allocation2 + $0x8] sm:$0x30] }
 0xa98   :  { %v4259_v5 = vmul.f32 %v4251_v50, %v4243_v27  ;;  %4238 = vst [vmem:[#allocation5 + $0x68] sm:$0xc] %v4234_v41  ;;  %v4250_v39 = vrot.slane %v4234_v41, 6  ;;  %v4277_v46 = vld [vmem:[#allocation2 + $0x48] sm:$0xc0] }
 0xa99   :  { %4824 = vmatmul.mubr.f32.vlgmr.msra.gmra.mxu1 %v4596_v59  ;;  %v4261_v4 = vmul.f32 %v4253_v52, %v4245_v40  ;;  %v4236_v53 = vadd.f32 %v4232_v31, %v4228_v14  ;;  %v4264_v47 = vld [vmem:[#allocation3 + $0x70] sm:$0x30]  ;;  %v4297_v29 = vld [vmem:[#allocation3 + $0x38] sm:$0xc0]  ;;  %v4274_v13 = vld [vmem:[#allocation2 + $0x50] sm:$0xc0] }
 0xa9a   :  { %v4267_v58 = vadd.f32 %v4263_v30, %v4259_v5  ;;  %v4258_v21 = vmul.f32 %v4250_v39, %v4242_v60  ;;  %v4294_v6 = vld [vmem:[#allocation3 + $0x48] sm:$0xc0]  ;;  %v4307_v33 = vld [vmem:[#allocation2 + $0x20] sm:$0x3]  ;;  %v4327_v59 = vld [vmem:[#allocation3 + $0x78] sm:$0x3]  ;;  %v3314_v60 = vadd.f32 %v7376_v55, %v7751_v0 }
 0xa9b   :  { %v4269_v63 = vadd.f32 %v4265_v38, %v4261_v4  ;;  %4240 = vst [vmem:[#allocation5 + $0x10] sm:$0xc] %v4236_v53  ;;  %v4252_v54 = vrot.slane %v4236_v53, 6  ;;  %v4276_v27 = vld [vmem:[#allocation2 + $0x8] sm:$0xc0]  ;;  %v3225_v4 = vadd.f32 %v7374_v25, %v7401_v28  ;;  %v3223_v25 = vadd.f32 %v7370_v37, %v7391_v18 }
 0xa9c   :  { %4271 = vst [vmem:[#allocation5 + $0x18] sm:$0x30] %v4267_v58  ;;  %v4283_v3 = vrot.slane %v4267_v58, 6  ;;  %v4266_v12 = vadd.f32 %v4262_v57, %v4258_v21  ;;  %v4309_v5 = vld [vmem:[#allocation2 + $0x38] sm:$0x3] }
 0xa9d   :  { %4273 = vst [vmem:[#allocation5 + $0x38] sm:$0x30] %v4269_v63  ;;  %v4285_v32 = vrot.slane %v4269_v63, 6  ;;  %v4260_v61 = vmul.f32 %v4252_v54, %v4244_v10  ;;  %v4296_v41 = vld [vmem:[#allocation3 + $0x70] sm:$0xc0] }
 0xa9e   :  { %v4291_v23 = vmul.f32 %v4283_v3, %v4275_v7  ;;  %4270 = vst [vmem:[#allocation5 + $0x68] sm:$0x30] %v4266_v12  ;;  %v4282_v2 = vrot.slane %v4266_v12, 6  ;;  %v4329_v14 = vld [vmem:[#allocation3 + $0x58] sm:$0x3] }
 0xa9f   :  { %v4293_v24 = vmul.f32 %v4285_v32, %v4277_v46  ;;  %v4268_v56 = vadd.f32 %v4264_v47, %v4260_v61  ;;  %v4306_v58 = vld [vmem:[#allocation2 + $0x40] sm:$0x3]  ;;  %v4339_v63 = vld [vmem:[#allocation2 + $0x20] sm:$0xc]  ;;  %v4308_v32 = vld [vmem:[#allocation2 + $0x10] sm:$0x3] }
 0xaa0   :  { %v4299_v35 = vadd.f32 %v4295_v20, %v4291_v23  ;;  %v4290_v34 = vmul.f32 %v4282_v2, %v4274_v13  ;;  %v4326_v21 = vld [vmem:[#allocation3 + $0x20] sm:$0x3]  ;;  %v4359_v10 = vld [vmem:[#allocation3 + $0x78] sm:$0xc]  ;;  %v4328_v2 = vld [vmem:[#allocation3 + $0x18] sm:$0x3] }
 0xaa1   :  { %v4301_v49 = vadd.f32 %v4297_v29, %v4293_v24  ;;  %4272 = vst [vmem:[#allocation5 + $0x10] sm:$0x30] %v4268_v56  ;;  %v4284_v50 = vrot.slane %v4268_v56, 6  ;;  %v4341_v20 = vld [vmem:[#allocation2 + $0x38] sm:$0xc] }
 0xaa2   :  { %4303 = vst [vmem:[#allocation5 + $0x18] sm:$0xc0] %v4299_v35  ;;  %v4315_v8 = vrot.slane %v4299_v35, 6  ;;  %v4298_v22 = vadd.f32 %v4294_v6, %v4290_v34  ;;  %v4361_v29 = vld [vmem:[#allocation3 + $0x58] sm:$0xc]  ;;  %v3312_v6 = vadd.f32 %v7372_v9, %v7396_v51 }
 0xaa3   :  { %4305 = vst [vmem:[#allocation5 + $0x38] sm:$0xc0] %v4301_v49  ;;  %v4317_v48 = vrot.slane %v4301_v49, 6  ;;  %v4292_v36 = vmul.f32 %v4284_v50, %v4276_v27  ;;  %v4338_v13 = vld [vmem:[#allocation2 + $0x40] sm:$0xc] }
 0xaa4   :  { %v4323_v17 = vmul.f32 %v4315_v8, %v4307_v33  ;;  %4302 = vst [vmem:[#allocation5 + $0x68] sm:$0xc0] %v4298_v22  ;;  %v4314_v52 = vrot.slane %v4298_v22, 6  ;;  %v4371_v50 = vld [vmem:[#allocation2 + $0x20] sm:$0x30] }
 0xaa5   :  { %v4325_v30 = vmul.f32 %v4317_v48, %v4309_v5  ;;  %v4300_v40 = vadd.f32 %v4296_v41, %v4292_v36  ;;  %v4358_v33 = vld [vmem:[#allocation3 + $0x20] sm:$0xc]  ;;  %v4373_v41 = vld [vmem:[#allocation2 + $0x38] sm:$0x30]  ;;  %v4360_v9 = vld [vmem:[#allocation3 + $0x18] sm:$0xc] }
 0xaa6   :  { %v4331_v44 = vadd.f32 %v4327_v59, %v4323_v17  ;;  %v4322_v38 = vmul.f32 %v4314_v52, %v4306_v58  ;;  %v4340_v59 = vld [vmem:[#allocation2 + $0x10] sm:$0xc]  ;;  %v4391_v52 = vld [vmem:[#allocation3 + $0x78] sm:$0x30] }
 0xaa7   :  { %v4333_v31 = vadd.f32 %v4329_v14, %v4325_v30  ;;  %4304 = vst [vmem:[#allocation5 + $0x10] sm:$0xc0] %v4300_v40  ;;  %v4316_v3 = vrot.slane %v4300_v40, 6  ;;  %v4393_v58 = vld [vmem:[#allocation3 + $0x58] sm:$0x30] }
 0xaa8   :  { %4335 = vst [vmem:[#allocation5 + $0x28] sm:$0x3] %v4331_v44  ;;  %v4347_v39 = vrot.slane %v4331_v44, 6  ;;  %v4330_v23 = vadd.f32 %v4326_v21, %v4322_v38 }
 0xaa9   :  { %v4567_v53 = vld [vmem:[#allocation5 + $0x18] sm:$0xff]  ;;  %4337 = vst [vmem:[#allocation5 + $0x20] sm:$0x3] %v4333_v31  ;;  %v4349_v54 = vrot.slane %v4333_v31, 6  ;;  %v4324_v46 = vmul.f32 %v4316_v3, %v4308_v32  ;;  %v4390_v3 = vld [vmem:[#allocation3 + $0x20] sm:$0x30] }
 0xaaa   :  { %v4599_v7 = vmul.f32 %v4567_v53, %v3225_v4  ;;  %v4355_v57 = vmul.f32 %v4347_v39, %v4339_v63  ;;  %v4569_v12 = vld [vmem:[#allocation5 + $0x38] sm:$0xff]  ;;  %4334 = vst [vmem:[#allocation5 + $0x40] sm:$0x3] %v4330_v23  ;;  %v4346_v24 = vrot.slane %v4330_v23, 6  ;;  %v4370_v4 = vld [vmem:[#allocation2 + $0x40] sm:$0x30] }
 0xaab   :  { %v4601_v55 = vmul.f32 %v4569_v12, %v3314_v60  ;;  %v4357_v35 = vmul.f32 %v4349_v54, %v4341_v20  ;;  %v4566_v47 = vld [vmem:[#allocation5 + $0x68] sm:$0xff]  ;;  %v4332_v56 = vadd.f32 %v4328_v2, %v4324_v46  ;;  %v4403_v53 = vld [vmem:[#allocation2 + $0x20] sm:$0xc0]  ;;  %v4372_v54 = vld [vmem:[#allocation2 + $0x10] sm:$0x30] }
 0xaac   :  { %4743 = vmatprep.mubr.f32.mxu0 %v4599_v7  ;;  %v4363_v61 = vadd.f32 %v4359_v10, %v4355_v57  ;;  %v4598_v8 = vmul.f32 %v4566_v47, %v3223_v25  ;;  %v4354_v34 = vmul.f32 %v4346_v24, %v4338_v13  ;;  %v4423_v23 = vld [vmem:[#allocation3 + $0x78] sm:$0xc0]  ;;  %v4392_v46 = vld [vmem:[#allocation3 + $0x18] sm:$0x30] }
 0xaad   :  { %4828 = vmatprep.mubr.f32.mxu1 %v4601_v55  ;;  %v4365_v37 = vadd.f32 %v4361_v29, %v4357_v35  ;;  %4336 = vst [vmem:[#allocation5 + $0x70] sm:$0x3] %v4332_v56  ;;  %v4348_v48 = vrot.slane %v4332_v56, 6  ;;  %v4405_v32 = vld [vmem:[#allocation2 + $0x38] sm:$0xc0] }
 0xaae   :  { %4367 = vst [vmem:[#allocation5 + $0x28] sm:$0xc] %v4363_v61  ;;  %v4379_v49 = vrot.slane %v4363_v61, 6  ;;  %4744 = vmatmul.mubr.f32.gmra.mxu0 %v4598_v8  ;;  %v4568_v22 = vld [vmem:[#allocation5 + $0x10] sm:$0xff]  ;;  %v4362_v36 = vadd.f32 %v4358_v33, %v4354_v34  ;;  %v4425_v55 = vld [vmem:[#allocation3 + $0x58] sm:$0xc0] }
 0xaaf   :  { %4369 = vst [vmem:[#allocation5 + $0x20] sm:$0xc] %v4365_v37  ;;  %v4381_v17 = vrot.slane %v4365_v37, 6  ;;  %v4600_v5 = vmul.f32 %v4568_v22, %v3312_v6  ;;  %v4356_v44 = vmul.f32 %v4348_v48, %v4340_v59  ;;  %v4402_v61 = vld [vmem:[#allocation2 + $0x40] sm:$0xc0] }
 0xab0   :  { %v4387_v27 = vmul.f32 %v4379_v49, %v4371_v50  ;;  %4366 = vst [vmem:[#allocation5 + $0x40] sm:$0xc] %v4362_v36  ;;  %v4378_v14 = vrot.slane %v4362_v36, 6  ;;  %v4422_v29 = vld [vmem:[#allocation3 + $0x20] sm:$0xc0] }
 0xab1   :  { %v4389_v40 = vmul.f32 %v4381_v17, %v4373_v41  ;;  %4829 = vmatmul.mubr.f32.gmra.mxu1 %v4600_v5  ;;  %v4364_v39 = vadd.f32 %v4360_v9, %v4356_v44  ;;  %v4435_v56 = vld [vmem:[#allocation2 + $0x70] sm:$0x3]  ;;  %v4404_v37 = vld [vmem:[#allocation2 + $0x10] sm:$0xc0]  ;;  %v4455_v50 = vld [vmem:[#allocation3 + $0x8] sm:$0x3] }
 0xab2   :  { %v4395_v30 = vadd.f32 %v4391_v52, %v4387_v27  ;;  %v4386_v60 = vmul.f32 %v4378_v14, %v4370_v4  ;;  %v4437_v33 = vld [vmem:[#allocation2 + $0x28] sm:$0x3]  ;;  %v4424_v22 = vld [vmem:[#allocation3 + $0x18] sm:$0xc0]  ;;  %v4457_v59 = vld [vmem:[#allocation3 + $0x50] sm:$0x3]  ;;  %v3231_v52 = vadd.f32 %v7384_v62, %v7401_v28  ;;  %v3229_v62 = vadd.f32 %v7378_v26, %v7391_v18 }
 0xab3   :  { %v4397_v38 = vadd.f32 %v4393_v58, %v4389_v40  ;;  %4368 = vst [vmem:[#allocation5 + $0x70] sm:$0xc] %v4364_v39  ;;  %v4380_v63 = vrot.slane %v4364_v39, 6  ;;  %v4434_v5 = vld [vmem:[#allocation2 + $0x60] sm:$0x3]  ;;  %v3320_v40 = vadd.f32 %v7386_v19, %v7751_v0 }
 0xab4   :  { %4399 = vst [vmem:[#allocation5 + $0x28] sm:$0x30] %v4395_v30  ;;  %v4411_v31 = vrot.slane %v4395_v30, 6  ;;  %v4394_v57 = vadd.f32 %v4390_v3, %v4386_v60  ;;  %v4467_v58 = vld [vmem:[#allocation2 + $0x70] sm:$0xc] }
 0xab5   :  { %4401 = vst [vmem:[#allocation5 + $0x20] sm:$0x30] %v4397_v38  ;;  %v4413_v7 = vrot.slane %v4397_v38, 6  ;;  %v4388_v25 = vmul.f32 %v4380_v63, %v4372_v54  ;;  %v4454_v4 = vld [vmem:[#allocation3] sm:$0x3] }
 0xab6   :  { %v4419_v21 = vmul.f32 %v4411_v31, %v4403_v53  ;;  %4398 = vst [vmem:[#allocation5 + $0x40] sm:$0x30] %v4394_v57  ;;  %v4410_v20 = vrot.slane %v4394_v57, 6  ;;  %v4436_v53 = vld [vmem:[#allocation2 + $0x78] sm:$0x3] }
 0xab7   :  { %v4421_v10 = vmul.f32 %v4413_v7, %v4405_v32  ;;  %v4396_v35 = vadd.f32 %v4392_v46, %v4388_v25  ;;  %v4487_v3 = vld [vmem:[#allocation3 + $0x8] sm:$0xc]  ;;  %v4489_v25 = vld [vmem:[#allocation3 + $0x50] sm:$0xc] }
 0xab8   :  { %v4427_v12 = vadd.f32 %v4423_v23, %v4419_v21  ;;  %v4418_v47 = vmul.f32 %v4410_v20, %v4402_v61  ;;  %v4469_v63 = vld [vmem:[#allocation2 + $0x28] sm:$0xc]  ;;  %v4456_v23 = vld [vmem:[#allocation3 + $0x60] sm:$0x3]  ;;  %v4499_v61 = vld [vmem:[#allocation2 + $0x70] sm:$0x30] }
 0xab9   :  { %v4429_v2 = vadd.f32 %v4425_v55, %v4421_v10  ;;  %4400 = vst [vmem:[#allocation5 + $0x70] sm:$0x30] %v4396_v35  ;;  %v4412_v13 = vrot.slane %v4396_v35, 6  ;;  %v3318_v55 = vadd.f32 %v7380_v1, %v7396_v51  ;;  %v4486_v35 = vld [vmem:[#allocation3] sm:$0xc] }
 0xaba   :  { %4431 = vst [vmem:[#allocation5 + $0x28] sm:$0xc0] %v4427_v12  ;;  %v4443_v24 = vrot.slane %v4427_v12, 6  ;;  %v4426_v49 = vadd.f32 %v4422_v29, %v4418_v47  ;;  %v4466_v12 = vld [vmem:[#allocation2 + $0x60] sm:$0xc] }
 0xabb   :  { %4433 = vst [vmem:[#allocation5 + $0x20] sm:$0xc0] %v4429_v2  ;;  %v4445_v8 = vrot.slane %v4429_v2, 6  ;;  %v4420_v6 = vmul.f32 %v4412_v13, %v4404_v37  ;;  %v4501_v37 = vld [vmem:[#allocation2 + $0x28] sm:$0x30] }
 0xabc   :  { %v4451_v34 = vmul.f32 %v4443_v24, %v4435_v56  ;;  %4430 = vst [vmem:[#allocation5 + $0x40] sm:$0xc0] %v4426_v49  ;;  %v4442_v48 = vrot.slane %v4426_v49, 6  ;;  %v4468_v56 = vld [vmem:[#allocation2 + $0x78] sm:$0xc] }
 0xabd   :  { %v4453_v17 = vmul.f32 %v4445_v8, %v4437_v33  ;;  %v4428_v36 = vadd.f32 %v4424_v22, %v4420_v6  ;;  %v4519_v49 = vld [vmem:[#allocation3 + $0x8] sm:$0x30]  ;;  %v4488_v1 = vld [vmem:[#allocation3 + $0x60] sm:$0xc]  ;;  %v4521_v51 = vld [vmem:[#allocation3 + $0x50] sm:$0x30] }
 0xabe   :  { %v4459_v27 = vadd.f32 %v4455_v50, %v4451_v34  ;;  %v4450_v30 = vmul.f32 %v4442_v48, %v4434_v5  ;;  %v4498_v48 = vld [vmem:[#allocation2 + $0x60] sm:$0x30] }
 0xabf   :  { %v4461_v44 = vadd.f32 %v4457_v59, %v4453_v17  ;;  %4432 = vst [vmem:[#allocation5 + $0x70] sm:$0xc0] %v4428_v36  ;;  %v4444_v9 = vrot.slane %v4428_v36, 6  ;;  %v4531_v59 = vld [vmem:[#allocation2 + $0x70] sm:$0xc0] }
 0xac0   :  { %4463 = vst [vmem:[#allocation5 + $0x30] sm:$0x3] %v4459_v27  ;;  %v4475_v41 = vrot.slane %v4459_v27, 6  ;;  %v4458_v60 = vadd.f32 %v4454_v4, %v4450_v30  ;;  %v4518_v5 = vld [vmem:[#allocation3] sm:$0x30] }
 0xac1   :  { %v4571_v14 = vld [vmem:[#allocation5 + $0x28] sm:$0xff]  ;;  %4465 = vst [vmem:[#allocation5 + $0x78] sm:$0x3] %v4461_v44  ;;  %v4477_v38 = vrot.slane %v4461_v44, 6  ;;  %v4452_v21 = vmul.f32 %v4444_v9, %v4436_v53  ;;  %v4530_v53 = vld [vmem:[#allocation2 + $0x60] sm:$0xc0] }
 0xac2   :  { %v4603_v39 = vmul.f32 %v4571_v14, %v3231_v52  ;;  %v4483_v31 = vmul.f32 %v4475_v41, %v4467_v58  ;;  %v4573_v28 = vld [vmem:[#allocation5 + $0x20] sm:$0xff]  ;;  %4462 = vst [vmem:[#allocation5 + $0x58] sm:$0x3] %v4458_v60  ;;  %v4474_v54 = vrot.slane %v4458_v60, 6  ;;  %v4551_v14 = vld [vmem:[#allocation3 + $0x8] sm:$0xc0] }
 0xac3   :  { %v4605_v19 = vmul.f32 %v4573_v28, %v3320_v40  ;;  %v4485_v57 = vmul.f32 %v4477_v38, %v4469_v63  ;;  %v4570_v32 = vld [vmem:[#allocation5 + $0x40] sm:$0xff]  ;;  %v4460_v10 = vadd.f32 %v4456_v23, %v4452_v21  ;;  %v4500_v40 = vld [vmem:[#allocation2 + $0x78] sm:$0x30]  ;;  %v4533_v9 = vld [vmem:[#allocation2 + $0x28] sm:$0xc0] }
 0xac4   :  { %4748 = vmatprep.mubr.f32.mxu0 %v4603_v39  ;;  %v4491_v7 = vadd.f32 %v4487_v3, %v4483_v31  ;;  %v4602_v20 = vmul.f32 %v4570_v32, %v3229_v62  ;;  %v4482_v18 = vmul.f32 %v4474_v54, %v4466_v12  ;;  %v4520_v38 = vld [vmem:[#allocation3 + $0x60] sm:$0x30]  ;;  %v4553_v60 = vld [vmem:[#allocation3 + $0x50] sm:$0xc0]  ;;  %v4550_v63 = vld [vmem:[#allocation3] sm:$0xc0] }
 0xac5   :  { %4833 = vmatprep.mubr.f32.mxu1 %v4605_v19  ;;  %v4493_v26 = vadd.f32 %v4489_v25, %v4485_v57  ;;  %4464 = vst [vmem:[#allocation5 + $0x50] sm:$0x3] %v4460_v10  ;;  %v4476_v24 = vrot.slane %v4460_v10, 6  ;;  %v4552_v54 = vld [vmem:[#allocation3 + $0x60] sm:$0xc0]  ;;  %v3326_v25 = vadd.f32 %v7425_v15, %v7751_v0 }
 0xac6   :  { %4495 = vst [vmem:[#allocation5 + $0x30] sm:$0xc] %v4491_v7  ;;  %v4507_v46 = vrot.slane %v4491_v7, 6  ;;  %4749 = vmatmul.mubr.f32.gmra.mxu0 %v4602_v20  ;;  %v4572_v2 = vld [vmem:[#allocation5 + $0x70] sm:$0xff]  ;;  %v4490_v13 = vadd.f32 %v4486_v35, %v4482_v18  ;;  %v4532_v7 = vld [vmem:[#allocation2 + $0x78] sm:$0xc0] }
 0xac7   :  { %4497 = vst [vmem:[#allocation5 + $0x78] sm:$0xc] %v4493_v26  ;;  %v4509_v29 = vrot.slane %v4493_v26, 6  ;;  %v4604_v8 = vmul.f32 %v4572_v2, %v3318_v55  ;;  %v4484_v34 = vmul.f32 %v4476_v24, %v4468_v56  ;;  %v7885_v26 = vld [vmem:[#allocation27_spill] sm:$0xff]  ;;  %v4891_v2 = vld [vmem:[#allocation17 + $0x30] sm:$0xff] }
 0xac8   :  { %v4515_v47 = vmul.f32 %v4507_v46, %v4499_v61  ;;  %4494 = vst [vmem:[#allocation5 + $0x58] sm:$0xc] %v4490_v13  ;;  %v4506_v33 = vrot.slane %v4490_v13, 6  ;;  %v7886_v61 = vld [vmem:[#allocation26_spill] sm:$0xff] }
 0xac9   :  { %v4517_v50 = vmul.f32 %v4509_v29, %v4501_v37  ;;  %4834 = vmatmul.mubr.f32.gmra.mxu1 %v4604_v8  ;;  %v4492_v22 = vadd.f32 %v4488_v1, %v4484_v34  ;;  %v4892_v24 = vld [vmem:[#allocation17 + $0x38] sm:$0xff]  ;;  %v4873_v37 = vpop.permute.xlu0 %4872 }
 0xaca   :  { %v4523_v6 = vadd.f32 %v4519_v49, %v4515_v47  ;;  %v4514_v36 = vmul.f32 %v4506_v33, %v4498_v48  ;;  %5741 = vmatprep.subr.mxu0 %v4892_v24  ;;  %v4890_v47 = vld [vmem:[#allocation17 + $0x28] sm:$0xff] }
 0xacb   :  { %v4525_v17 = vadd.f32 %v4521_v51, %v4517_v50  ;;  %4496 = vst [vmem:[#allocation5 + $0x50] sm:$0xc] %v4492_v22  ;;  %v4508_v52 = vrot.slane %v4492_v22, 6  ;;  %5742 = vmatpush3.msra.mxu0 %v4892_v24 }
 0xacc   :  { %4527 = vst [vmem:[#allocation5 + $0x30] sm:$0x30] %v4523_v6  ;;  %v4539_v27 = vrot.slane %v4523_v6, 6  ;;  %v4522_v30 = vadd.f32 %v4518_v5, %v4514_v36  ;;  %5743 = vmatprep.subr.mxu0 %v4891_v2 }
 0xacd   :  { %4529 = vst [vmem:[#allocation5 + $0x78] sm:$0x30] %v4525_v17  ;;  %v4541_v44 = vrot.slane %v4525_v17, 6  ;;  %v4516_v58 = vmul.f32 %v4508_v52, %v4500_v40  ;;  %5744 = vmatpush3.msra.mxu0 %v4891_v2  ;;  %v4877_v40 = vpop.permute.xlu0 %4876 }
 0xace   :  { %v4547_v41 = vmul.f32 %v4539_v27, %v4531_v59  ;;  %4526 = vst [vmem:[#allocation5 + $0x58] sm:$0x30] %v4522_v30  ;;  %v4538_v31 = vrot.slane %v4522_v30, 6  ;;  %5745 = vmatprep.subr.mxu0 %v4890_v47  ;;  %v4875_v27 = vpop.permute.xlu1 %4874 }
 0xacf   :  { %v4549_v39 = vmul.f32 %v4541_v44, %v4533_v9  ;;  %v4524_v62 = vadd.f32 %v4520_v38, %v4516_v58  ;;  %5746 = vmatpush3.msra.mxu0 %v4890_v47 }
 0xad0   :  { %v4555_v4 = vadd.f32 %v4551_v14, %v4547_v41  ;;  %v4546_v3 = vmul.f32 %v4538_v31, %v4530_v53 }
 0xad1   :  { %v4557_v28 = vadd.f32 %v4553_v60, %v4549_v39  ;;  %4528 = vst [vmem:[#allocation5 + $0x50] sm:$0x30] %v4524_v62  ;;  %v4540_v21 = vrot.slane %v4524_v62, 6 }
 0xad2   :  { %4559 = vst [vmem:[#allocation5 + $0x30] sm:$0xc0] %v4555_v4  ;;  %v4554_v19 = vadd.f32 %v4550_v63, %v4546_v3  ;;  %v4879_v53 = vpop.permute.xlu1 %4878  ;;  %v5969_v63 = vld [vmem:[%s7844_s9 + $0x4] sm:$0x7] }
 0xad3   :  { %4561 = vst [vmem:[#allocation5 + $0x78] sm:$0xc0] %v4557_v28  ;;  %v4548_v57 = vmul.f32 %v4540_v21, %v4532_v7  ;;  %v4896_v21 = vrot.slane %v5969_v63, %v6372_v45 }
 0xad4   :  { %4558 = vst [vmem:[#allocation5 + $0x58] sm:$0xc0] %v4554_v19 }
 0xad5   :  { %v4556_v23 = vadd.f32 %v4552_v54, %v4548_v57 }
 0xad7   :  { %4560 = vst [vmem:[#allocation5 + $0x50] sm:$0xc0] %v4556_v23 }
 0xad9   :  { %v4575_v32 = vld [vmem:[#allocation5 + $0x30] sm:$0xff] }
 0xada   :  { %v4607_v12 = vmul.f32 %v4575_v32, %v7410_v11  ;;  %v4577_v10 = vld [vmem:[#allocation5 + $0x78] sm:$0xff] }
 0xadb   :  { %v4609_v20 = vmul.f32 %v4577_v10, %v3326_v25  ;;  %v4574_v46 = vld [vmem:[#allocation5 + $0x58] sm:$0xff] }
 0xadc   :  { %4753 = vmatprep.mubr.f32.mxu0 %v4607_v12  ;;  %v4606_v18 = vmul.f32 %v4574_v46, %v7885_v26  ;;  %v4889_v11 = vld [vmem:[#allocation17 + $0x20] sm:$0xff] }
 0xadd   :  { %4838 = vmatprep.mubr.f32.mxu1 %v4609_v20  ;;  %5747 = vmatprep.subr.mxu0 %v4889_v11 }
 0xade   :  { %4754 = vmatmul.mubr.f32.gmra.mxu0 %v4606_v18  ;;  %v4576_v55 = vld [vmem:[#allocation5 + $0x50] sm:$0xff] }
 0xadf   :  { %v4608_v35 = vmul.f32 %v4576_v55, %v7886_v61  ;;  %5748 = vmatpush3.msra.mxu0 %v4889_v11 }
 0xae0   :  { %5766 = vmatprep.subr.mxu0 %v7873_v16 }
 0xae1   :  { %4839 = vmatmul.mubr.f32.gmra.mxu1 %v4608_v35 }
 0xae2   :  { %5763 = vmatprep.mubr.msk.f32.mxu1 %vm6159_vm2, %v7873_v16 }
 0xb56   :  { %v5569_v15 = vpop.f32.mrf.mxu0 }
 0xb58   :  { %v5570_v29 = vpop.f32.mrf.mxu0 }
 0xb59   :  { %v5613_v0 = vpop.f32.mrf.mxu1  ;;  %v5571_v13 = vadd.f32 %v5570_v29, %v5569_v15 }
 0xb5b   :  { %v5614_v56 = vpop.f32.mrf.mxu1 }
 0xb5c   :  { %v5615_v8 = vadd.f32 %v5614_v56, %v5613_v0 }
 0xb5e   :  { %v4826_v49 = vadd.f32 %v5615_v8, %v5571_v13 }
 0xb60   :  { %v4884_v34 = vmul.f32 %v4873_v37, %v4826_v49 }
 0xb62   :  { %5749 = vmatprep.mubr.msk.f32.mxu0 %vm316_vm1, %v4884_v34 }
 0xb6e   :  { %v5572_v6 = vpop.f32.mrf.mxu0 }
 0xb70   :  { %v5573_v50 = vpop.f32.mrf.mxu0 }
 0xb71   :  { %v5616_v33 = vpop.f32.mrf.mxu1  ;;  %v5574_v1 = vadd.f32 %v5573_v50, %v5572_v6  ;;  %v5141_v6 = vld [vmem:[%s7851_s16 + $0x18] sm:$0xff]  ;;  %v5140_v50 = vld [vmem:[%s7851_s16 + $0x10] sm:$0xff] }
 0xb73   :  { %v5617_v51 = vpop.f32.mrf.mxu1 }
 0xb74   :  { %v5618_v48 = vadd.f32 %v5617_v51, %v5616_v33  ;;  %v5139_v33 = vld [vmem:[%s7851_s16 + $0x8] sm:$0xff] }
 0xb76   :  { %v4831_v22 = vadd.f32 %v5618_v48, %v5574_v1 }
 0xb78   :  { %v4885_v17 = vmul.f32 %v4875_v27, %v4831_v22 }
 0xb7a   :  { %5750 = vmatmul.mubr.msk.f32.vlgmr.msra.gmra.mxu0 %vm316_vm1, %v4885_v17 }
 0xb7b   :  { %5767 = vmatpush3.msra.mxu0 %v5141_v6 }
 0xb7c   :  { %5768 = vmatprep.subr.mxu0 %v7873_v16 }
 0xb7d   :  { %5769 = vmatpush3.msra.mxu0 %v5140_v50 }
 0xb7e   :  { %5770 = vmatprep.subr.mxu0 %v7873_v16 }
 0xb7f   :  { %5771 = vmatpush3.msra.mxu0 %v5139_v33 }
 0xb80   :  { %5772 = vmatprep.subr.mxu0 %v7873_v16 }
 0xb86   :  { %v5575_v36 = vpop.f32.mrf.mxu0 }
 0xb88   :  { %v5576_v59 = vpop.f32.mrf.mxu0 }
 0xb89   :  { %v5619_v5 = vpop.f32.mrf.mxu1  ;;  %v5577_v52 = vadd.f32 %v5576_v59, %v5575_v36 }
 0xb8b   :  { %v5620_v41 = vpop.f32.mrf.mxu1 }
 0xb8c   :  { %v5621_v44 = vadd.f32 %v5620_v41, %v5619_v5 }
 0xb8e   :  { %v4836_v30 = vadd.f32 %v5621_v44, %v5577_v52 }
 0xb90   :  { %v4886_v14 = vmul.f32 %v4877_v40, %v4836_v30  ;;  %v5035_v30 = vld [vmem:[%s7850_s15] sm:$0x3] }
 0xb91   :  { %v5051_v40 = vrot.slane %v5035_v30, %v6364_v42 }
 0xb92   :  { %5752 = vmatprep.mubr.msk.f32.mxu0 %vm316_vm1, %v4886_v14 }
 0xb9e   :  { %v5578_v9 = vpop.f32.mrf.mxu0 }
 0xba0   :  { %v5579_v58 = vpop.f32.mrf.mxu0 }
 0xba1   :  { %v5622_v4 = vpop.f32.mrf.mxu1  ;;  %v5580_v39 = vadd.f32 %v5579_v58, %v5578_v9  ;;  %v5059_v58 = vrot.slane %v5035_v30, %v6367_v43 }
 0xba3   :  { %v5623_v31 = vpop.f32.mrf.mxu1 }
 0xba4   :  { %v5624_v38 = vadd.f32 %v5623_v31, %v5622_v4 }
 0xba6   :  { %v4841_v60 = vadd.f32 %v5624_v38, %v5580_v39 }
 0xba8   :  { %v4887_v62 = vmul.f32 %v4879_v53, %v4841_v60 }
 0xbaa   :  { %5753 = vmatmul.mubr.msk.f32.gmra.mxu0 %vm316_vm1, %v4887_v62 }
 0xbab   :  { %5774 = vmatprep.mubr.msk.f32.mxu0 %vm6159_vm2, %v7873_v16 }
 0xc3a   :  { %v5751_v28 = vpop.f32.mrf.mxu0 }
 0xc3b   :  { %v4981_v54 = vadd.f32 %v5751_v28, %v4896_v21 }
 0xc3c   :  { %v4975_v3 = vpop.f32.mrf.mxu0 }
 0xc3d   :  { %v4976_v12 = vadd.f32 %v4975_v3, %v4896_v21  ;;  %v4997_v10 = vsel %vm316_vm1, %v4981_v54, 0.0 }
 0xc3f   :  { %v4994_v20 = vsel %vm316_vm1, %v4976_v12, 0.0 }
 0xc6a   :  { %v5754_v19 = vpop.f32.mrf.mxu0 }
 0xc6b   :  { %v4991_v7 = vadd.f32 %v5754_v19, %v4896_v21 }
 0xc6c   :  { %v4985_v57 = vpop.f32.mrf.mxu0 }
 0xc6d   :  { %v4986_v23 = vadd.f32 %v4985_v57, %v4896_v21  ;;  %v5003_v32 = vsel %vm316_vm1, %v4991_v7, 0.0  ;;  %v5138_v57 = vld [vmem:[%s7851_s16] sm:$0xff] }
 0xc6e   :  { %5004 = vadd.xlane.f32.xlu0 %v5003_v32  ;;  %5773 = vmatpush3.msra.mxu0 %v5138_v57 }
 0xc6f   :  { %v5000_v25 = vsel %vm316_vm1, %v4986_v23, 0.0 }
 0xc70   :  { %5001 = vadd.xlane.f32.xlu1 %v5000_v25 }
 0xc72   :  { %4998 = vadd.xlane.f32.xlu0 %v4997_v10 }
 0xc76   :  { %4995 = vadd.xlane.f32.xlu0 %v4994_v20 }
 0xcf7   :  { %v5005_v46 = vpop.xlane.xlu0 %5004 }
 0xcf8   :  { %v5010_v45 = vmul.f32 0.03125, %v5005_v46 }
 0xcf9   :  { %v5002_v26 = vpop.xlane.xlu1 %5001 }
 0xcfa   :  { %v5014_v18 = vsub.f32 %v4991_v7, %v5010_v45  ;;  %v5009_v55 = vmul.f32 0.03125, %v5002_v26  ;;  %v5064_v7 = vld [vmem:[%s7887_s11] sm:$0x3] }
 0xcfb   :  { %v4999_v61 = vpop.xlane.xlu0 %4998 }
 0xcfc   :  { %v5013_v35 = vsub.f32 %v4986_v23, %v5009_v55  ;;  %v5008_v24 = vmul.f32 0.03125, %v4999_v61  ;;  %v5018_v2 = vmul.f32 %v5014_v18, %v5014_v18 }
 0xcfe   :  { %v5012_v47 = vsub.f32 %v4981_v54, %v5008_v24  ;;  %v5028_v11 = vsel %vm316_vm1, %v5018_v2, 0.0  ;;  %v5017_v15 = vmul.f32 %v5013_v35, %v5013_v35 }
 0xcff   :  { %5029 = vadd.xlane.f32.xlu1 %v5028_v11  ;;  %v4996_v0 = vpop.xlane.xlu0 %4995 }
 0xd00   :  { %v5007_v29 = vmul.f32 0.03125, %v4996_v0  ;;  %v5025_v13 = vsel %vm316_vm1, %v5017_v15, 0.0  ;;  %v5016_v56 = vmul.f32 %v5012_v47, %v5012_v47 }
 0xd01   :  { %5026 = vadd.xlane.f32.xlu0 %v5025_v13 }
 0xd02   :  { %v5011_v8 = vsub.f32 %v4976_v12, %v5007_v29  ;;  %v5022_v49 = vsel %vm316_vm1, %v5016_v56, 0.0 }
 0xd03   :  { %5023 = vadd.xlane.f32.xlu1 %v5022_v49 }
 0xd04   :  { %v5015_v37 = vmul.f32 %v5011_v8, %v5011_v8 }
 0xd06   :  { %v5019_v34 = vsel %vm316_vm1, %v5015_v37, 0.0 }
 0xd07   :  { %5020 = vadd.xlane.f32.xlu0 %v5019_v34 }
 0xd88   :  { %v5030_v1 = vpop.xlane.xlu1 %5029 }
 0xd89   :  { %v5034_v51 = vmul.f32 0.03125, %v5030_v1 }
 0xd8a   :  { %v5027_v48 = vpop.xlane.xlu0 %5026 }
 0xd8b   :  { %v5039_v22 = vadd.f32 1e-05, %v5034_v51  ;;  %v5033_v27 = vmul.f32 0.03125, %v5027_v48 }
 0xd8c   :  { %v5024_v17 = vpop.xlane.xlu1 %5023 }
 0xd8d   :  { %5958 = vrsqrt.f32 %v5039_v22  ;;  %v5038_v36 = vadd.f32 1e-05, %v5033_v27  ;;  %v5032_v59 = vmul.f32 0.03125, %v5024_v17 }
 0xd8f   :  { %5960 = vrsqrt.f32 %v5038_v36  ;;  %v5037_v5 = vadd.f32 1e-05, %v5032_v59 }
 0xd90   :  { %v5021_v52 = vpop.xlane.xlu0 %5020 }
 0xd91   :  { %5962 = vrsqrt.f32 %v5037_v5  ;;  %v5031_v41 = vmul.f32 0.03125, %v5021_v52 }
 0xd93   :  { %v5036_v44 = vadd.f32 1e-05, %v5031_v41 }
 0xd95   :  { %5964 = vrsqrt.f32 %v5036_v44 }
 0xd9a   :  { %v5959_v14 = vpop.eup %5958 }
 0xd9b   :  { %v5047_v9 = vmul.f32 %v5959_v14, %v5014_v18 }
 0xd9c   :  { %v5961_v4 = vpop.eup %5960 }
 0xd9d   :  { %v5055_v39 = vmul.f32 %v5051_v40, %v5047_v9  ;;  %v5046_v31 = vmul.f32 %v5961_v4, %v5013_v35 }
 0xd9e   :  { %v5963_v38 = vpop.eup %5962 }
 0xd9f   :  { %v5063_v60 = vadd.f32 %v5059_v58, %v5055_v39  ;;  %v5054_v53 = vmul.f32 %v5051_v40, %v5046_v31  ;;  %v5045_v62 = vmul.f32 %v5963_v38, %v5012_v47 }
 0xda1   :  { %5756 = vmatpush3.msra.mxu1 %v5063_v60  ;;  %v5062_v28 = vadd.f32 %v5059_v58, %v5054_v53  ;;  %v5053_v3 = vmul.f32 %v5051_v40, %v5045_v62 }
 0xda2   :  { %v5965_v63 = vpop.eup %5964  ;;  %5757 = vmatprep.subr.mxu1 %v7873_v16 }
 0xda3   :  { %5758 = vmatpush3.msra.mxu1 %v5062_v28  ;;  %v5061_v21 = vadd.f32 %v5059_v58, %v5053_v3  ;;  %v5044_v42 = vmul.f32 %v5965_v63, %v5011_v8 }
 0xda4   :  { %5759 = vmatprep.subr.mxu1 %v7873_v16 }
 0xda5   :  { %5760 = vmatpush3.msra.mxu1 %v5061_v21  ;;  %v5052_v43 = vmul.f32 %v5051_v40, %v5044_v42 }
 0xda6   :  { %5761 = vmatprep.subr.mxu1 %v7873_v16  ;;  %v5390_v16 = vld [vmem:[%s7852_s17] ss:$0 sm:$0xff] }
 0xda7   :  { %v5060_v19 = vadd.f32 %v5059_v58, %v5052_v43 }
 0xda9   :  { %5762 = vmatpush3.msra.mxu1 %v5060_v19 }
 0xdaa   :  { %5764 = vmatmul.mubr.msk.f32.vlgmr.msra.gmra.mxu1 %vm316_vm1, %v5064_v7 }
 0xe6a   :  { %v5134_v54 = vpop.f32.mrf.mxu1 }
 0xe6b   :  { %5775 = vmatmul.mubr.msk.f32.vlgmr.msra.gmra.mxu0 %vm316_vm1, %v5134_v54 }
 0xe6c   :  { %v5765_v23 = vpop.f32.mrf.mxu1 }
 0xf2b   :  { %v5218_v32 = vpop.f32.mrf.mxu0 }
 0xf2c   :  { %v5219_v25 = vadd.f32 %v5390_v16, %v5218_v32 }
 0xf2d   :  { %v5776_v12 = vpop.f32.mrf.mxu0 }
 0xf2e   :  { %5223 = vst.msk [vmem:[#allocation18] sm:$0x3] %vm5222_vm3, %v5219_v25 }
 0xf2f   :  { %6121 = shalt.err (!%p6118_p11)
}
 0xf30   :  { %5233 = dma.vmem_to_hbm [thread:$0]  %s5231_s6, 32, %s7853_s18, [#allocation8]  }
 0xf31   :  { %6138 = dma.done.wait [#allocation8], 32  }
 0xf32   :  { %6139 = vsyncadd [#allocation8], 4294967264 }
 0xf33   :  { %5237 = vsyncpa [#allocation7], 1 }
 0xf34   :  { %5238 = vsyncpa [#allocation10], 1 }
 0xf35   :  { %5239 = vsyncpa [#allocation13], 1 }
 0xf36   :  { %5240 = vsyncpa [#allocation16], 1 }
 0xf37   :  { %5241 = vsyncpa [#allocation8], 1 }

</bundles_post_ra>
